<compile_context>
chip_gen: v7x
topology: tpu7x:2x2x1
jax: 0.10.0
libtpu: 0.0.40
codegen_flags: <defaults>
</compile_context>

<pallas_src>
import functools

import jax
import jax.numpy as jnp
from jax.experimental import pallas as pl
from jax.experimental.pallas import tpu as pltpu


def _round_up(x, m):
    return ((x + m - 1) // m) * m


def _vmem_budget_bytes():
    """~75% of this chip's VMEM capacity (headroom for compiler scratch)."""
    cap = 64 * 1024 * 1024  # conservative fallback == v7x physical per-TC VMEM
    try:
        info = pltpu.get_tpu_info()
        cap = int(getattr(info, "vmem_capacity_bytes", cap))
    except Exception:
        pass
    return (cap * 3) // 4


def _siren_kernel(x_ref, wt_ref, b_ref, o_ref, *, is_last):
    # x_ref:  (TM, in_w)         streamed input-row tile (native dtype)
    # wt_ref: (in_w, out_f_pad)  resident pre-transposed weight (w0 folded in)
    # b_ref:  (1, out_f_pad)     resident bias row, f32 (w0 folded in)
    # o_ref:  (TM, out_f_pad)    output tile
    y = jnp.dot(x_ref[...], wt_ref[...], preferred_element_type=jnp.float32)
    y = y + b_ref[...]
    if not is_last:
        y = jnp.sin(y)  # w0 already folded into wt/b -> no extra VPU multiply
    o_ref[...] = y.astype(o_ref.dtype)


def prepare_siren_params(weight, bias, *, w0=200.0, is_last=False,
                         x_width=None, x_dtype=jnp.float32, pad_lanes=None):
    """Pre-transpose / zero-pad / w0-fold SirenLayer params (cache across steps).

    Returns (wt, b, out_f, out_f_pad) with
      wt: (x_width, out_f_pad) = [w0 *] weight^T, zero-padded, in x's dtype
      b : (1, out_f_pad)       = [w0 *] bias, zero-padded, f32
    If x_width > in_f the extra input columns are assumed zero-valued (the
    padded activations a previous lane-padded SIREN layer produces).
    """
    out_f, in_f = weight.shape
    if x_width is None:
        x_width = in_f
    assert x_width >= in_f, (x_width, in_f)
    if pad_lanes is None:
        # Only lane-pad when the padding ratio is modest; tiny out_f (e.g. the
        # final RGB layer) is cheaper with masked partial stores than with a
        # 128-wide padded output plus a slice pass over HBM.
        pad_lanes = (out_f >= 64) and (out_f % 128 != 0)
    out_f_pad = _round_up(out_f, 128) if pad_lanes else out_f

    wt = weight.astype(jnp.float32).T                 # (in_f, out_f)
    b = bias.astype(jnp.float32).reshape(1, out_f)
    if not is_last:
        # sin(w0*(x@W^T + b)) == sin(x@(w0*W)^T + w0*b): fold w0 once here.
        wt = wt * jnp.float32(w0)
        b = b * jnp.float32(w0)
    if (x_width != in_f) or (out_f_pad != out_f):
        wt = jnp.pad(wt, ((0, x_width - in_f), (0, out_f_pad - out_f)))
        b = jnp.pad(b, ((0, 0), (0, out_f_pad - out_f)))
    wt = wt.astype(x_dtype)  # MXU runs native in x's dtype, accumulates f32
    return wt, b, out_f, out_f_pad


def siren_layer_forward(x, weight=None, bias=None, *, w0=200.0, is_last=False,
                        tm=None, prepared=None, return_padded=False,
                        pad_lanes=None, out_dtype=None, core_parallel=False):
    """x: (N, x_width); weight: (out_f, in_f); bias: (out_f,).

    Returns (N, out_f), or (N, out_f_pad) if return_padded=True (for chaining
    lane-padded layers without a per-layer slice pass).
    """
    N, x_width = x.shape
    if prepared is None:
        prepared = prepare_siren_params(
            weight, bias, w0=w0, is_last=is_last,
            x_width=x_width, x_dtype=x.dtype, pad_lanes=pad_lanes)
    wt, b2, out_f, out_f_pad = prepared
    in_w = wt.shape[0]
    assert in_w == x_width, (in_w, x_width)
    out_dtype = x.dtype if out_dtype is None else out_dtype

    x_item = jnp.dtype(x.dtype).itemsize
    w_item = jnp.dtype(wt.dtype).itemsize
    o_item = jnp.dtype(out_dtype).itemsize

    # --- VMEM-aware row tile -------------------------------------------------
    budget = _vmem_budget_bytes()
    # Resident W^T + bias are still double-buffered by the default pipeline.
    resident = 2 * (in_w * out_f_pad * w_item + out_f_pad * 4)

    def footprint(t):  # double-buffered x/out tiles + resident params
        return resident + 2 * t * (in_w * x_item + out_f_pad * o_item)

    tm_cap = _round_up(N, 8)
    tm_eff = min(8192 if tm is None else int(tm), tm_cap)
    tm_eff = max(8, (tm_eff // 8) * 8)
    while tm_eff > 8 and footprint(tm_eff) > budget:
        tm_eff = max(8, (tm_eff // 2 // 8) * 8)  # shrink tm, never the limit

    grid = (pl.cdiv(N, tm_eff),)
    vmem_limit = int(min(budget, footprint(tm_eff) + (8 << 20)))

    # Advisory cost estimate so XLA schedules surrounding ops around the kernel.
    cost = pl.CostEstimate(
        flops=2 * N * in_w * out_f_pad,
        transcendentals=0 if is_last else N * out_f_pad,
        bytes_accessed=(N * in_w * x_item + in_w * out_f_pad * w_item
                        + out_f_pad * 4 + N * out_f_pad * o_item),
    )

    row_sem = pltpu.CORE_PARALLEL if core_parallel else "parallel"
    kernel = functools.partial(_siren_kernel, is_last=bool(is_last))

    out = pl.pallas_call(
        kernel,
        out_shape=jax.ShapeDtypeStruct((N, out_f_pad), out_dtype),
        grid_spec=pltpu.PrefetchScalarGridSpec(
            num_scalar_prefetch=0,
            grid=grid,
            in_specs=[
                pl.BlockSpec((tm_eff, in_w), lambda i: (i, 0)),      # streamed x tile
                pl.BlockSpec((in_w, out_f_pad), lambda i: (0, 0)),   # resident W^T
                pl.BlockSpec((1, out_f_pad), lambda i: (0, 0)),      # resident bias
            ],
            out_specs=pl.BlockSpec((tm_eff, out_f_pad), lambda i: (i, 0)),
        ),
        compiler_params=pltpu.CompilerParams(
            dimension_semantics=(row_sem,),
            vmem_limit_bytes=vmem_limit,
        ),
        cost_estimate=cost,
    )(x, wt, b2)

    if return_padded or out_f_pad == out_f:
        return out
    return out[:, :out_f]


def init_siren_params(key, in_f, out_f, *, w0=200.0, is_first=False):
    """Deterministic SIREN init matching the PyTorch module's init_weights()."""
    if is_first:
        b = 1.0 / in_f
    else:
        b = (6.0 / in_f) ** 0.5 / w0
    wkey, _ = jax.random.split(key)
    weight = jax.random.uniform(
        wkey, (out_f, in_f), dtype=jnp.float32, minval=-b, maxval=b)
    bias = jnp.zeros((out_f,), dtype=jnp.float32)
    return weight, bias


def siren_layer_reference(x, weight, bias, *, w0=200.0, is_last=False):
    y = x @ weight.T + bias
    return y if is_last else jnp.sin(w0 * y)


if __name__ == "__main__":
    key = jax.random.PRNGKey(0)
    kx, kp1, kp2 = jax.random.split(key, 3)
    w0 = 200.0

    # --- hidden layer: N=256 coords, 32 -> 64 features (lane-padded to 128) ---
    N, in_f, out_f = 256, 32, 64
    x = jax.random.normal(kx, (N, in_f), dtype=jnp.float32)
    weight, bias = init_siren_params(kp1, in_f, out_f, w0=w0, is_first=False)

    out = siren_layer_forward(x, weight, bias, w0=w0, is_last=False)
    out = jax.block_until_ready(out)
    ref = siren_layer_reference(x, weight, bias, w0=w0, is_last=False)
    assert out.shape == (N, out_f)
    assert jnp.allclose(out, ref, atol=1e-4, rtol=1e-4), "hidden-layer mismatch"

    # --- last layer (is_last=True, out_f=3): tiny out_f -> no lane padding ---
    w2, b2 = init_siren_params(kp2, out_f, 3, w0=w0, is_first=False)
    out2 = siren_layer_forward(out, w2, b2, w0=w0, is_last=True)
    out2 = jax.block_until_ready(out2)
    ref2 = siren_layer_reference(ref, w2, b2, w0=w0, is_last=True)
    assert out2.shape == (N, 3)
    assert jnp.allclose(out2, ref2, atol=1e-4, rtol=1e-4), "last-layer mismatch"

    # --- non-divisible N (partial last row block), explicit small tm ---------
    N3 = 200
    x3 = jax.random.normal(kx, (N3, in_f), dtype=jnp.float32)
    out3 = siren_layer_forward(x3, weight, bias, w0=w0, is_last=False, tm=128)
    out3 = jax.block_until_ready(out3)
    ref3 = siren_layer_reference(x3, weight, bias, w0=w0, is_last=False)
    assert out3.shape == (N3, out_f)
    assert jnp.allclose(out3, ref3, atol=1e-4, rtol=1e-4), "ragged-N mismatch"

    # --- chained layers keeping the 128-padded width (no per-layer slice) ----
    act_pad = siren_layer_forward(x, weight, bias, w0=w0, is_last=False,
                                  return_padded=True)
    prep_last = prepare_siren_params(w2, b2, w0=w0, is_last=True,
                                     x_width=act_pad.shape[1],
                                     x_dtype=act_pad.dtype)
    out4 = siren_layer_forward(act_pad, prepared=prep_last, is_last=True)
    out4 = jax.block_until_ready(out4)
    assert out4.shape == (N, 3)
    assert jnp.allclose(out4, ref2, atol=1e-4, rtol=1e-4), "chained-padded mismatch"

    print("KERNEL_OK")
</pallas_src>

<mosaic_0001>
module attributes {stable_mosaic.version = 11 : i64} {
  func.func @_siren_kernel(%arg0: i32, %arg1: memref<256x32xf32, #tpu.memory_space<vmem>>, %arg2: memref<32x128xf32, #tpu.memory_space<vmem>>, %arg3: memref<1x128xf32, #tpu.memory_space<vmem>>, %arg4: memref<256x128xf32, #tpu.memory_space<vmem>>) attributes {dimension_semantics = [#tpu.dimension_semantics<parallel>], iteration_bounds = array<i64: 1>, scalar_prefetch = 0 : i64, scratch_operands = 0 : i64, tpu.core_type = #tpu.core_type<tc>, window_params = [{transform_indices = @transform_0, window_bounds = array<i64: 256, 32>}, {pipeline_mode = #tpu.pipeline_mode<synchronous>, transform_indices = @transform_1, window_bounds = array<i64: 32, 128>}, {pipeline_mode = #tpu.pipeline_mode<synchronous>, transform_indices = @transform_2, window_bounds = array<i64: 1, 128>}, {transform_indices = @transform_3, window_bounds = array<i64: 256, 128>}]} {
    %c0 = arith.constant 0 : index
    %c0_0 = arith.constant 0 : index
    %0 = vector.load %arg1[%c0, %c0_0] : memref<256x32xf32, #tpu.memory_space<vmem>>, vector<256x32xf32>
    %c0_1 = arith.constant 0 : index
    %c0_2 = arith.constant 0 : index
    %1 = vector.load %arg2[%c0_1, %c0_2] : memref<32x128xf32, #tpu.memory_space<vmem>>, vector<32x128xf32>
    %cst = arith.constant dense<0.000000e+00> : vector<256x128xf32>
    %2 = tpu.matmul %0, %1, %cst {dimension_numbers = #tpu.dot_dimension_numbers<[1], [0], [0], [1], [0, 0, 1, 1], [], []>} : vector<256x32xf32>, vector<32x128xf32>, vector<256x128xf32> -> vector<256x128xf32>
    %c0_3 = arith.constant 0 : index
    %c0_4 = arith.constant 0 : index
    %3 = vector.load %arg3[%c0_3, %c0_4] : memref<1x128xf32, #tpu.memory_space<vmem>>, vector<1x128xf32>
    %4 = vector.broadcast %3 : vector<1x128xf32> to vector<256x128xf32>
    %5 = arith.addf %2, %4 : vector<256x128xf32>
    %6 = math.sin %5 : vector<256x128xf32>
    %c0_5 = arith.constant 0 : index
    %c0_6 = arith.constant 0 : index
    %7 = vector.load %arg4[%c0_5, %c0_6] : memref<256x128xf32, #tpu.memory_space<vmem>>, vector<256x128xf32>
    tpu.vector_store %arg4[%c0_5, %c0_6], %6 {strides = array<i32>} : memref<256x128xf32, #tpu.memory_space<vmem>>, vector<256x128xf32>,
    return
  }
  func.func @transform_0(%arg0: i32) -> (i32, i32) {
    %c0_i32 = arith.constant 0 : i32
    %c0_i32_0 = arith.constant 0 : i32
    return %arg0, %c0_i32 : i32, i32
  }
  func.func @transform_1(%arg0: i32) -> (i32, i32) {
    %c0_i32 = arith.constant 0 : i32
    %c0_i32_0 = arith.constant 0 : i32
    %c0_i32_1 = arith.constant 0 : i32
    return %c0_i32, %c0_i32_0 : i32, i32
  }
  func.func @transform_2(%arg0: i32) -> (i32, i32) {
    %c0_i32 = arith.constant 0 : i32
    %c0_i32_0 = arith.constant 0 : i32
    %c0_i32_1 = arith.constant 0 : i32
    return %c0_i32, %c0_i32_0 : i32, i32
  }
  func.func @transform_3(%arg0: i32) -> (i32, i32) {
    %c0_i32 = arith.constant 0 : i32
    %c0_i32_0 = arith.constant 0 : i32
    return %arg0, %c0_i32 : i32, i32
  }
}

</mosaic_0001>

<bundles_post_ra>
// kernel: tpu_custom_call.1
= control target key start
LH: loop header
LB: loop body
LE: loop exit
PB: predicated region body
PF: predicated region fallthrough
CT: control target
= control target key end

     0   :  { %vm58_vm0 = vcmask 261120   ;;  %s7131_s0 = inlined_call_operand.vmem [shape: f32[256,32], index: 0, kind: input, shape index: {}]   ;;  %s7132_s1 = inlined_call_operand.vmem [shape: f32[32,128], index: 1, kind: input, shape index: {}]   ;;  %s7133_s2 = inlined_call_operand.vmem [shape: f32[1,128], index: 2, kind: input, shape index: {}]   ;;  %s7134_s3 = inlined_call_operand.hbm [shape: f32[256,128], index: 3, kind: output, shape index: {}]  }
   0x1   :  { %v47_v0 = vld [vmem:[%s7132_s1] sm:$0xff]  ;;  %v48_v1 = vld [vmem:[%s7132_s1 + $0x8] sm:$0xff]  ;;  %v49_v2 = vld [vmem:[%s7132_s1 + $0x10] sm:$0xff] }
   0x2   :  { %v4009_v3 = vpack.c.bf16 %v48_v1, %v47_v0  ;;  %v50_v4 = vld [vmem:[%s7132_s1 + $0x18] sm:$0xff]  ;;  %v15_v5 = vld [vmem:[%s7131_s0] sm:$0xff]  ;;  %v16_v8 = vld [vmem:[%s7131_s0 + $0x8] sm:$0xff] }
   0x3   :  { %v31_v6 = vld [vmem:[%s7131_s0 + $0x80] sm:$0xff]  ;;  %v4013_v7 = vpack.c.bf16 %v50_v4, %v49_v2  ;;  %3961 = vmatprep.mubr.msk.f32.mxu0 %vm58_vm0, %v15_v5  ;;  %v32_v9 = vld [vmem:[%s7131_s0 + $0x88] sm:$0xff]  ;;  %v17_v10 = vld [vmem:[%s7131_s0 + $0x10] sm:$0xff] }
   0x4   :  { %3985 = vmatprep.mubr.msk.f32.mxu1 %vm58_vm0, %v31_v6  ;;  %4010 = vmatprep.subr.bf16.mxu0 %v4009_v3  ;;  %v33_v11 = vld [vmem:[%s7131_s0 + $0x90] sm:$0xff]  ;;  %v18_v12 = vld [vmem:[%s7131_s0 + $0x18] sm:$0xff] }
   0x5   :  { %4017 = vmatprep.subr.bf16.mxu1 %v4009_v3  ;;  %4012 = vmatpush3.bf16.msra.mxu0 %v4009_v3  ;;  %v34_v13 = vld [vmem:[%s7131_s0 + $0x98] sm:$0xff] }
   0x6   :  { %4019 = vmatpush3.bf16.msra.mxu1 %v4009_v3  ;;  %4014 = vmatprep.subr.bf16.mxu0 %v4013_v7 }
   0x7   :  { %4018 = vmatprep.subr.bf16.mxu1 %v4013_v7 }
   0x9   :  { %4016 = vmatpush3.bf16.msra.mxu0 %v4013_v7 }
   0xa   :  { %4020 = vmatpush3.bf16.msra.mxu1 %v4013_v7 }
   0xc   :  { %3962 = vmatmul.mubr.msk.f32.vlgmr.msra.gmra.mrb[0].mxu0 %vm58_vm0, %v16_v8 }
   0xd   :  { %3986 = vmatmul.mubr.msk.f32.vlgmr.msra.gmra.mrb[0].mxu1 %vm58_vm0, %v32_v9  ;;  %3964 = vmatprep.mubr.msk.f32.mxu0 %vm58_vm0, %v17_v10 }
   0xe   :  { %3988 = vmatprep.mubr.msk.f32.mxu1 %vm58_vm0, %v33_v11 }
   0xf   :  { %8 = vsyncpa [#allocation3], 0  ;;  %v19_v14 = vld [vmem:[%s7131_s0 + $0x20] sm:$0xff]  ;;  %v20_v16 = vld [vmem:[%s7131_s0 + $0x28] sm:$0xff] }
  0x10   :  { %v35_v15 = vld [vmem:[%s7131_s0 + $0xa0] sm:$0xff]  ;;  %3965 = vmatmul.mubr.msk.f32.gmra.mrb[2].mxu0 %vm58_vm0, %v18_v12  ;;  %v36_v17 = vld [vmem:[%s7131_s0 + $0xa8] sm:$0xff]  ;;  %v21_v18 = vld [vmem:[%s7131_s0 + $0x30] sm:$0xff] }
  0x11   :  { %3989 = vmatmul.mubr.msk.f32.gmra.mrb[2].mxu1 %vm58_vm0, %v34_v13  ;;  %3967 = vmatprep.mubr.msk.f32.mxu0 %vm58_vm0, %v19_v14  ;;  %v37_v19 = vld [vmem:[%s7131_s0 + $0xb0] sm:$0xff]  ;;  %v22_v20 = vld [vmem:[%s7131_s0 + $0x38] sm:$0xff]  ;;  %v23_v22 = vld [vmem:[%s7131_s0 + $0x40] sm:$0xff] }
  0x12   :  { %3991 = vmatprep.mubr.msk.f32.mxu1 %vm58_vm0, %v35_v15  ;;  %v38_v21 = vld [vmem:[%s7131_s0 + $0xb8] sm:$0xff]  ;;  %v39_v23 = vld [vmem:[%s7131_s0 + $0xc0] sm:$0xff]  ;;  %v24_v24 = vld [vmem:[%s7131_s0 + $0x48] sm:$0xff]  ;;  %v4315_v15 = vmov 683565275  }
  0x13   :  { %v40_v25 = vld [vmem:[%s7131_s0 + $0xc8] sm:$0xff]  ;;  %v25_v26 = vld [vmem:[%s7131_s0 + $0x50] sm:$0xff]  ;;  %v26_v28 = vld [vmem:[%s7131_s0 + $0x58] sm:$0xff] }
  0x14   :  { %3968 = vmatmul.mubr.msk.f32.gmra.mrb[4].mxu0 %vm58_vm0, %v20_v16  ;;  %v41_v27 = vld [vmem:[%s7131_s0 + $0xd0] sm:$0xff]  ;;  %v42_v29 = vld [vmem:[%s7131_s0 + $0xd8] sm:$0xff]  ;;  %v27_v30 = vld [vmem:[%s7131_s0 + $0x60] sm:$0xff] }
  0x15   :  { %3992 = vmatmul.mubr.msk.f32.gmra.mrb[4].mxu1 %vm58_vm0, %v36_v17  ;;  %3970 = vmatprep.mubr.msk.f32.mxu0 %vm58_vm0, %v21_v18  ;;  %v43_v31 = vld [vmem:[%s7131_s0 + $0xe0] sm:$0xff]  ;;  %v28_v32 = vld [vmem:[%s7131_s0 + $0x68] sm:$0xff]  ;;  %v29_v34 = vld [vmem:[%s7131_s0 + $0x70] sm:$0xff] }
  0x16   :  { %3994 = vmatprep.mubr.msk.f32.mxu1 %vm58_vm0, %v37_v19  ;;  %v44_v33 = vld [vmem:[%s7131_s0 + $0xe8] sm:$0xff]  ;;  %v45_v35 = vld [vmem:[%s7131_s0 + $0xf0] sm:$0xff]  ;;  %v30_v36 = vld [vmem:[%s7131_s0 + $0x78] sm:$0xff]  ;;  %v4316_v19 = vmov 2475754826  }
  0x17   :  { %v46_v37 = vld [vmem:[%s7131_s0 + $0xf8] sm:$0xff]  ;;  %v4487_v38 = vld [vmem:[%s7133_s2] ss:$0 sm:$0xff] }
  0x18   :  { %3971 = vmatmul.mubr.msk.f32.gmra.mrb[6].mxu0 %vm58_vm0, %v22_v20 }
  0x19   :  { %3995 = vmatmul.mubr.msk.f32.gmra.mrb[6].mxu1 %vm58_vm0, %v38_v21  ;;  %3973 = vmatprep.mubr.msk.f32.mxu0 %vm58_vm0, %v23_v22  ;;  %v4317_v21 = vmov 2131351028  }
  0x1a   :  { %3997 = vmatprep.mubr.msk.f32.mxu1 %vm58_vm0, %v39_v23  ;;  %v4318_v23 = vmov 2102212464  }
  0x1c   :  { %3974 = vmatmul.mubr.msk.f32.gmra.mrb[8].mxu0 %vm58_vm0, %v24_v24 }
  0x1d   :  { %3998 = vmatmul.mubr.msk.f32.gmra.mrb[8].mxu1 %vm58_vm0, %v40_v25  ;;  %3976 = vmatprep.mubr.msk.f32.mxu0 %vm58_vm0, %v25_v26  ;;  %v4319_v25 = vmov 920167782  }
  0x1e   :  { %4000 = vmatprep.mubr.msk.f32.mxu1 %vm58_vm0, %v41_v27 }
  0x20   :  { %3977 = vmatmul.mubr.msk.f32.gmra.mrb[10].mxu0 %vm58_vm0, %v26_v28 }
  0x21   :  { %4001 = vmatmul.mubr.msk.f32.gmra.mrb[10].mxu1 %vm58_vm0, %v42_v29  ;;  %3979 = vmatprep.mubr.msk.f32.mxu0 %vm58_vm0, %v27_v30 }
  0x22   :  { %4003 = vmatprep.mubr.msk.f32.mxu1 %vm58_vm0, %v43_v31 }
  0x24   :  { %3980 = vmatmul.mubr.msk.f32.gmra.mrb[12].mxu0 %vm58_vm0, %v28_v32  ;;  %v4320_v32 = vmov 1326507024  }
  0x25   :  { %4004 = vmatmul.mubr.msk.f32.gmra.mrb[12].mxu1 %vm58_vm0, %v44_v33  ;;  %3982 = vmatprep.mubr.msk.f32.mxu0 %vm58_vm0, %v29_v34 }
  0x26   :  { %4006 = vmatprep.mubr.msk.f32.mxu1 %vm58_vm0, %v45_v35 }
  0x28   :  { %3983 = vmatmul.mubr.msk.f32.gmra.mrb[14].mxu0 %vm58_vm0, %v30_v36 }
  0x29   :  { %4007 = vmatmul.mubr.msk.f32.gmra.mrb[14].mxu1 %vm58_vm0, %v46_v37 }
  0xdf   :  { %v3963_v39 = vpop.f32.mrb[0].mxu0 }
  0xe0   :  { %v3987_v40 = vpop.f32.mrb[0].mxu1  ;;  %v4490_v41 = vadd.f32 %v3963_v39, %v4487_v38  ;;  %v221_v43 = vpop.f32.mrb[1].mxu0 }
  0xe1   :  { %v4493_v42 = vadd.f32 %v3987_v40, %v4487_v38  ;;  %v301_v44 = vpop.f32.mrb[1].mxu1  ;;  %v4496_v45 = vadd.f32 %v4487_v38, %v221_v43 }
  0xe2   :  { %v484_v46 = vand.u32 2147483647, %v4490_v41  ;;  %v487_v47 = vand.u32 2139095040, %v4490_v41  ;;  %v4514_v63 = vadd.f32 %v4487_v38, %v301_v44  ;;  %vm486_vm14 = vcmp.lt.s32.totalorder %v4490_v41, 0 }
  0xe3   :  { %v2148_v48 = vand.u32 2147483647, %v4493_v42  ;;  %v2151_v49 = vand.u32 2139095040, %v4493_v42  ;;  %v4502_v50 = vpop.f32.mrb[2].mxu0  ;;  %v383_v56 = vand.u32 2139095040, %v4496_v45 }
  0xe4   :  { %v4504_v51 = vpop.f32.mrb[2].mxu1  ;;  %v488_v52 = vshrl.u32 %v487_v47, 23  ;;  %v491_v53 = vand.u32 8388607, %v484_v46  ;;  %v4511_v58 = vpop.f32.mrb[3].mxu0  ;;  %v2047_v13 = vand.u32 2139095040, %v4514_v63 }
  0xe5   :  { %v2152_v54 = vshrl.u32 %v2151_v49, 23  ;;  %v2155_v55 = vand.u32 8388607, %v2148_v48  ;;  %v384_v60 = vshrl.u32 %v383_v56, 23  ;;  %v380_v2 = vand.u32 2147483647, %v4496_v45 }
  0xe6   :  { %v3793_v57 = vadd.s32 4294967169, %v488_v52  ;;  %v492_v61 = vor.u32 8388608, %v491_v53  ;;  %v4517_v4 = vpop.f32.mrb[3].mxu1  ;;  %vm4617_vm15 = vcmp.le.f32.partialorder %v484_v46, 0.7853982 }
  0xe7   :  { %v3857_v59 = vadd.s32 4294967169, %v2152_v54  ;;  %v2156_v0 = vor.u32 8388608, %v2155_v55  ;;  %v3789_v3 = vadd.s32 4294967169, %v384_v60  ;;  %v4525_v11 = vand.u32 8388607, %v380_v2 }
  0xe8   :  { %v494_v62 = vadd.s32 1, %v3793_v57  ;;  %v4519_v8 = vshll.u32 %v492_v61, 8 }
  0xe9   :  { %v2158_v1 = vadd.s32 1, %v3857_v59  ;;  %v4521_v10 = vshll.u32 %v2156_v0, 8  ;;  %v4527_v12 = vadd.s32 1, %v3789_v3 }
  0xea   :  { %vm495_vm1 = vcmp.gt.s32.totalorder %v494_v62, 0 }
  0xeb   :  { %v496_v5 = vsel %vm495_vm1, %v494_v62, 0  ;;  %vm2159_vm2 = vcmp.gt.s32.totalorder %v2158_v1, 0  ;;  %vm391_vm7 = vcmp.gt.s32.totalorder %v4527_v12, 0 }
  0xec   :  { %v497_v6 = vshrl.u32 %v496_v5, 5  ;;  %v498_v7 = vand.u32 31, %v496_v5  ;;  %v2160_v9 = vsel %vm2159_vm2, %v2158_v1, 0 }
  0xed   :  { %v4531_v17 = vshrl.u32 %v2160_v9, 5  ;;  %v2162_v18 = vand.u32 31, %v2160_v9 }
  0xee   :  { %v499_v14 = vsub.s32 32, %v498_v7  ;;  %v501_v16 = vshll.u32 %v4315_v15, %v498_v7  ;;  %v504_v20 = vshll.u32 %v4316_v19, %v498_v7  ;;  %v507_v22 = vshll.u32 %v4317_v21, %v498_v7 }
  0xef   :  { %v510_v24 = vshll.u32 %v4318_v23, %v498_v7  ;;  %v513_v26 = vshll.u32 %v4319_v25, %v498_v7  ;;  %vm516_vm3 = vcmp.lt.s32.totalorder %v497_v6, 1  ;;  %vm517_vm4 = vcmp.lt.s32.totalorder %v497_v6, 2 }
  0xf0   :  { %v502_v27 = vshrl.u32 %v4316_v19, %v499_v14  ;;  %v505_v28 = vshrl.u32 %v4317_v21, %v499_v14  ;;  %v508_v29 = vshrl.u32 %v4318_v23, %v499_v14  ;;  %v500_v30 = vshrl.u32 %v4315_v15, %v499_v14 }
  0xf1   :  { %v511_v31 = vshrl.u32 %v4319_v25, %v499_v14  ;;  %v514_v33 = vshrl.u32 %v4320_v32, %v499_v14  ;;  %v2163_v37 = vsub.s32 32, %v2162_v18  ;;  %vm518_vm5 = vcmp.lt.s32.totalorder %v497_v6, 3 }
  0xf2   :  { %v503_v34 = vor.u32 %v502_v27, %v501_v16  ;;  %v506_v35 = vor.u32 %v505_v28, %v504_v20  ;;  %v509_v36 = vor.u32 %v508_v29, %v507_v22  ;;  %vm519_vm6 = vcmp.lt.s32.totalorder %v497_v6, 4 }
  0xf3   :  { %v512_v39 = vor.u32 %v511_v31, %v510_v24  ;;  %v515_v40 = vor.u32 %v514_v33, %v513_v26  ;;  %v2165_v55 = vshll.u32 %v4315_v15, %v2162_v18  ;;  %v2166_v59 = vshrl.u32 %v4316_v19, %v2163_v37 }
  0xf4   :  { %v520_v43 = vsel %vm516_vm3, %v500_v30, %v503_v34  ;;  %v521_v44 = vsel %vm519_vm6, %v509_v36, 2102212464  ;;  %v524_v47 = vsel %vm516_vm3, %v503_v34, %v506_v35  ;;  %v528_v49 = vsel %vm516_vm3, %v506_v35, %v509_v36 }
  0xf5   :  { %v522_v52 = vsel %vm518_vm5, %v506_v35, %v521_v44  ;;  %v525_v53 = vsel %vm519_vm6, %v512_v39, 920167782  ;;  %v529_v54 = vsel %vm519_vm6, %v515_v40, 1326507024  ;;  %v2168_v60 = vshll.u32 %v4316_v19, %v2162_v18 }
  0xf6   :  { %v526_v56 = vsel %vm518_vm5, %v509_v36, %v525_v53  ;;  %v530_v57 = vsel %vm518_vm5, %v512_v39, %v529_v54  ;;  %v523_v61 = vsel %vm517_vm4, %v520_v43, %v522_v52  ;;  %v2169_v1 = vshrl.u32 %v4317_v21, %v2163_v37 }
  0xf7   :  { %v527_v62 = vsel %vm517_vm4, %v524_v47, %v526_v56  ;;  %v531_v0 = vsel %vm517_vm4, %v528_v49, %v530_v57  ;;  %v2167_v14 = vor.u32 %v2166_v59, %v2165_v55  ;;  %v2171_v20 = vshll.u32 %v4317_v21, %v2162_v18 }
  0xf8   :  { %v4555_v3 = vmul.u32.u64.low %v4519_v8, %v531_v0  ;;  %v4556_v5 = vmul.u32.u64.high %v4519_v8, %v531_v0, %v4555_v3  ;;  %v4559_v7 = vmul.u32.u64.low %v4519_v8, %v527_v62  ;;  %v4560_v9 = vmul.u32.u64.high %v4519_v8, %v527_v62, %v4559_v7 }
  0xf9   :  { %v2170_v16 = vor.u32 %v2169_v1, %v2168_v60  ;;  %v2172_v22 = vshrl.u32 %v4318_v23, %v2163_v37  ;;  %v2164_v24 = vshrl.u32 %v4315_v15, %v2163_v37  ;;  %v2174_v6 = vshll.u32 %v4318_v23, %v2162_v18 }
  0xfa   :  { %v2175_v26 = vshrl.u32 %v4319_v25, %v2163_v37  ;;  %v2178_v27 = vshrl.u32 %v4320_v32, %v2163_v37  ;;  %v539_v28 = vmul.u32 %v4519_v8, %v523_v61  ;;  %v2177_v30 = vshll.u32 %v4319_v25, %v2162_v18 }
  0xfb   :  { %v2173_v29 = vor.u32 %v2172_v22, %v2171_v20  ;;  %vm2180_vm8 = vcmp.lt.s32.totalorder %v4531_v17, 1  ;;  %vm541_vm9 = vc.u32 %v4556_v5, %v4559_v7  ;;  %v542_v31 = vadd.s32 1, %v4560_v9  ;;  %v4600_v20 = vpop.f32.mrb[4].mxu0 }
  0xfc   :  { %v2176_v33 = vor.u32 %v2175_v26, %v2174_v6  ;;  %vm2181_vm10 = vcmp.lt.s32.totalorder %v4531_v17, 2  ;;  %v2179_v34 = vor.u32 %v2178_v27, %v2177_v30  ;;  %vm2182_vm11 = vcmp.lt.s32.totalorder %v4531_v17, 3 }
  0xfd   :  { %vm2183_vm12 = vcmp.lt.s32.totalorder %v4531_v17, 4  ;;  %v2188_v35 = vsel %vm2180_vm8, %v2167_v14, %v2170_v16  ;;  %v543_v8 = vsel %vm541_vm9, %v542_v31, %v4560_v9  ;;  %v2192_v18 = vsel %vm2180_vm8, %v2170_v16, %v2173_v29 }
  0xfe   :  { %v2185_v36 = vsel %vm2183_vm12, %v2173_v29, 2102212464  ;;  %v2189_v37 = vsel %vm2183_vm12, %v2176_v33, 920167782  ;;  %v544_v39 = vadd.s32 %v543_v8, %v539_v28  ;;  %v2184_v40 = vsel %vm2180_vm8, %v2164_v24, %v2167_v14 }
  0xff   :  { %v2190_v43 = vsel %vm2182_vm11, %v2173_v29, %v2189_v37  ;;  %v2193_v44 = vsel %vm2183_vm12, %v2179_v34, 1326507024  ;;  %v2186_v47 = vsel %vm2182_vm11, %v2170_v16, %v2185_v36  ;;  %v392_v53 = vsel %vm391_vm7, %v4527_v12, 0 }
 0x100   :  { %v2191_v49 = vsel %vm2181_vm10, %v2188_v35, %v2190_v43  ;;  %v2194_v52 = vsel %vm2182_vm11, %v2176_v33, %v2193_v44  ;;  %v545_v54 = vadd.s32 536870912, %v544_v39  ;;  %v2044_v61 = vand.u32 2147483647, %v4514_v63 }
 0x101   :  { %v2195_v55 = vsel %vm2181_vm10, %v2192_v18, %v2194_v52  ;;  %v4585_v56 = vmul.u32.u64.low %v4521_v10, %v2191_v49  ;;  %v4586_v57 = vmul.u32.u64.high %v4521_v10, %v2191_v49, %v4585_v56  ;;  %v2187_v0 = vsel %vm2181_vm10, %v2184_v40, %v2186_v47 }
 0x102   :  { %v4590_v59 = vmul.u32.u64.low %v4521_v10, %v2195_v55  ;;  %v4591_v60 = vmul.u32.u64.high %v4521_v10, %v2195_v55, %v4590_v59  ;;  %v546_v62 = vshrl.u32 %v545_v54, 30  ;;  %v388_v12 = vor.u32 8388608, %v4525_v11 }
 0x103   :  { %v394_v1 = vand.u32 31, %v392_v53  ;;  %v2206_v9 = vadd.s32 1, %v4586_v57  ;;  %v2048_v16 = vshrl.u32 %v2047_v13, 23  ;;  %v2203_v22 = vmul.u32 %v4521_v10, %v2187_v0 }
 0x104   :  { %v547_v3 = vshll.u32 %v546_v62, 30  ;;  %vm2205_vm13 = vc.u32 %v4591_v60, %v4585_v56  ;;  %v4607_v17 = vand.u32 8388607, %v2044_v61  ;;  %v4613_v6 = vshll.u32 %v388_v12, 8 }
 0x105   :  { %v395_v14 = vsub.s32 32, %v394_v1  ;;  %v2207_v24 = vsel %vm2205_vm13, %v2206_v9, %v4586_v57  ;;  %v540_v10 = vadd.s32 %v4559_v7, %v4556_v5  ;;  %v4622_v27 = vshrl.u32 %v392_v53, 5 }
 0x106   :  { %v4610_v11 = vsub.s32 %v544_v39, %v547_v3  ;;  %v2208_v26 = vadd.s32 %v2207_v24, %v2203_v22  ;;  %v3853_v33 = vadd.s32 4294967169, %v2048_v16  ;;  %v570_v34 = vsub.s32 4, %v546_v62 }
 0x107   :  { %v398_v28 = vshrl.u32 %v4316_v19, %v395_v14  ;;  %v401_v30 = vshrl.u32 %v4317_v21, %v395_v14  ;;  %v404_v31 = vshrl.u32 %v4318_v23, %v395_v14  ;;  %v397_v46 = vshll.u32 %v4315_v15, %v394_v1 }
 0x108   :  { %v550_v29 = vsub.s32 0, %v4610_v11  ;;  %v2209_v35 = vadd.s32 536870912, %v2208_v26  ;;  %v2052_v8 = vor.u32 8388608, %v4607_v17  ;;  %v400_v7 = vshll.u32 %v4316_v19, %v394_v1 }
 0x109   :  { %v403_v36 = vshll.u32 %v4317_v21, %v394_v1  ;;  %v407_v37 = vshrl.u32 %v4319_v25, %v395_v14  ;;  %v399_v39 = vor.u32 %v398_v28, %v397_v46  ;;  %v406_v40 = vshll.u32 %v4318_v23, %v394_v1 }
 0x10a   :  { %v3794_v5 = vmin.u32 %v550_v29, %v4610_v11  ;;  %v2210_v18 = vshrl.u32 %v2209_v35, 30  ;;  %v410_v43 = vshrl.u32 %v4320_v32, %v395_v14  ;;  %v402_v47 = vor.u32 %v401_v30, %v400_v7 }
 0x10b   :  { %v405_v49 = vor.u32 %v404_v31, %v403_v36  ;;  %v409_v52 = vshll.u32 %v4319_v25, %v394_v1  ;;  %v571_v53 = vsel %vm486_vm14, %v570_v34, %v546_v62  ;;  %v408_v55 = vor.u32 %v407_v37, %v406_v40 }
 0x10c   :  { %v552_v44 = vclz %v3794_v5  ;;  %v2211_v54 = vshll.u32 %v2210_v18, 30  ;;  %vm412_vm0 = vcmp.lt.s32.totalorder %v4622_v27, 1  ;;  %vm413_vm1 = vcmp.lt.s32.totalorder %v4622_v27, 2 }
 0x10d   :  { %v411_v59 = vor.u32 %v410_v43, %v409_v52  ;;  %vm415_vm2 = vcmp.lt.s32.totalorder %v4622_v27, 4  ;;  %vm2150_vm3 = vcmp.lt.s32.totalorder %v4493_v42, 0  ;;  %v396_v12 = vshrl.u32 %v4315_v15, %v395_v14 }
 0x10e   :  { %v3795_v57 = vadd.s32 4294967294, %v552_v44  ;;  %v4643_v0 = vsub.s32 %v2208_v26, %v2211_v54  ;;  %vm414_vm4 = vcmp.lt.s32.totalorder %v4622_v27, 3  ;;  %v421_v62 = vsel %vm415_vm2, %v408_v55, 920167782 }
 0x10f   :  { %v573_v1 = vsel %vm4617_vm15, 0, %v571_v53  ;;  %v420_v3 = vsel %vm412_vm0, %v399_v39, %v402_v47  ;;  %v422_v9 = vsel %vm414_vm4, %v405_v49, %v421_v62  ;;  %v2234_v24 = vsub.s32 4, %v2210_v18 }
 0x110   :  { %vm3796_vm5 = vcmp.lt.s32.totalorder %v3795_v57, 0  ;;  %v2214_v22 = vsub.s32 0, %v4643_v0  ;;  %v424_v14 = vsel %vm412_vm0, %v402_v47, %v405_v49  ;;  %vm4660_vm6 = vcmp.le.f32.partialorder %v2148_v48, 0.7853982 }
 0x111   :  { %v555_v16 = vsel %vm3796_vm5, 0, %v3795_v57  ;;  %v417_v30 = vsel %vm415_vm2, %v405_v49, 2102212464  ;;  %v425_v31 = vsel %vm415_vm2, %v411_v59, 1326507024  ;;  %v423_v46 = vsel %vm413_vm1, %v420_v3, %v422_v9  ;;  %v4680_v49 = vpop.f32.mrb[4].mxu1 }
 0x112   :  { %v556_v26 = vsub.s32 32, %v555_v16  ;;  %v560_v28 = vsub.s32 4294967266, %v555_v16  ;;  %v557_v34 = vshll.u32 %v4610_v11, %v555_v16  ;;  %v3858_v35 = vmin.u32 %v2214_v22, %v4643_v0 }
 0x113   :  { %v426_v5 = vsel %vm414_vm4, %v408_v55, %v425_v31  ;;  %v2054_v37 = vadd.s32 1, %v3853_v33  ;;  %v577_v40 = vadd.s32 3, %v573_v1  ;;  %v416_v44 = vsel %vm412_vm0, %v396_v12, %v399_v39 }
 0x114   :  { %v558_v48 = vshrl.u32 %v540_v10, %v556_v26  ;;  %v561_v7 = vadd.s32 127, %v560_v28  ;;  %v427_v36 = vsel %vm413_vm1, %v424_v14, %v426_v5  ;;  %v2216_v43 = vclz %v3858_v35 }
 0x115   :  { %v418_v11 = vsel %vm414_vm4, %v402_v47, %v417_v30  ;;  %v4683_v54 = vmul.u32.u64.low %v4613_v6, %v427_v36  ;;  %v4684_v10 = vmul.u32.u64.high %v4613_v6, %v427_v36, %v4683_v54  ;;  %vm2055_vm7 = vcmp.gt.s32.totalorder %v2054_v37, 0 }
 0x116   :  { %v559_v52 = vor.u32 %v558_v48, %v557_v34  ;;  %v562_v53 = vshll.u32 %v561_v7, 23  ;;  %v3859_v55 = vadd.s32 4294967294, %v2216_v43  ;;  %v2204_v39 = vadd.s32 %v4585_v56, %v4591_v60 }
 0x117   :  { %v4687_v57 = vmul.u32.u64.low %v4613_v6, %v423_v46  ;;  %v4688_v33 = vmul.u32.u64.high %v4613_v6, %v423_v46, %v4687_v57  ;;  %v2235_v47 = vsel %vm2150_vm3, %v2234_v24, %v2210_v18  ;;  %v2056_v12 = vsel %vm2055_vm7, %v2054_v37, 0 }
 0x118   :  { %v563_v59 = vor.u32 4788187, %v562_v53  ;;  %v4695_v62 = vand.u32 3, %v577_v40  ;;  %vm3860_vm8 = vcmp.lt.s32.totalorder %v3859_v55, 0  ;;  %v419_v1 = vsel %vm413_vm1, %v416_v44, %v418_v11 }
 0x119   :  { %v2058_v3 = vand.u32 31, %v2056_v12  ;;  %v566_v16 = vcvt.s32.f32 %v559_v52  ;;  %v2219_v22 = vsel %vm3860_vm8, 0, %v3859_v55  ;;  %vm437_vm9 = vc.u32 %v4684_v10, %v4687_v57 }
 0x11a   :  { %v564_v9 = vand.u32 2147483647, %v563_v59  ;;  %v2220_v14 = vsub.s32 32, %v2219_v22  ;;  %v2224_v26 = vsub.s32 4294967266, %v2219_v22  ;;  %v2237_v56 = vsel %vm4660_vm6, 0, %v2235_v47 }
 0x11b   :  { %v438_v60 = vadd.s32 1, %v4688_v33  ;;  %v435_v24 = vmul.u32 %v4613_v6, %v419_v1  ;;  %v4705_v28 = vshrl.u32 %v2056_v12, 5  ;;  %v2059_v27 = vsub.s32 32, %v2058_v3 }
 0x11c   :  { %v567_v18 = vmul.f32 %v566_v16, %v564_v9  ;;  %v2221_v30 = vshll.u32 %v4643_v0, %v2219_v22  ;;  %v2222_v31 = vshrl.u32 %v2204_v39, %v2220_v14  ;;  %v2225_v34 = vadd.s32 127, %v2224_v26 }
 0x11d   :  { %v439_v35 = vsel %vm437_vm9, %v438_v60, %v4688_v33  ;;  %v2061_v48 = vshll.u32 %v4315_v15, %v2058_v3  ;;  %v2062_v7 = vshrl.u32 %v4316_v19, %v2059_v27  ;;  %v2064_v40 = vshll.u32 %v4316_v19, %v2058_v3 }
 0x11e   :  { %v568_v46 = vxor.u32 2147483648, %v567_v18  ;;  %v440_v5 = vadd.s32 %v439_v35, %v435_v24  ;;  %v2223_v36 = vor.u32 %v2222_v31, %v2221_v30  ;;  %v2226_v37 = vshll.u32 %v2225_v34, 23 }
 0x11f   :  { %v2065_v6 = vshrl.u32 %v4317_v21, %v2059_v27  ;;  %v2067_v44 = vshll.u32 %v4317_v21, %v2058_v3  ;;  %v2068_v11 = vshrl.u32 %v4318_v23, %v2059_v27  ;;  %v2063_v54 = vor.u32 %v2062_v7, %v2061_v48 }
 0x120   :  { %v569_v43 = vsel %vm486_vm14, %v568_v46, %v567_v18  ;;  %v441_v0 = vadd.s32 536870912, %v440_v5  ;;  %v2227_v53 = vor.u32 4788187, %v2226_v37  ;;  %v2070_v55 = vshll.u32 %v4318_v23, %v2058_v3 }
 0x121   :  { %v572_v52 = vsel %vm4617_vm15, %v4490_v41, %v569_v43  ;;  %v2230_v33 = vcvt.s32.f32 %v2223_v36  ;;  %v2071_v39 = vshrl.u32 %v4319_v25, %v2059_v27  ;;  %v2066_v12 = vor.u32 %v2065_v6, %v2064_v40 }
 0x122   :  { %4158 = vcosq.f32 %v572_v52  ;;  %v4721_v59 = vshrl.u32 %v441_v0, 30  ;;  %v2228_v47 = vand.u32 2147483647, %v2227_v53  ;;  %v2074_v1 = vshrl.u32 %v4320_v32, %v2059_v27 }
 0x123   :  { %4160 = vsinq.f32 %v572_v52  ;;  %v2072_v16 = vor.u32 %v2071_v39, %v2070_v55  ;;  %v2069_v22 = vor.u32 %v2068_v11, %v2067_v44  ;;  %v2073_v14 = vshll.u32 %v4319_v25, %v2058_v3 }
 0x124   :  { %v443_v9 = vshll.u32 %v4721_v59, 30  ;;  %v2231_v13 = vmul.f32 %v2230_v33, %v2228_v47  ;;  %v2241_v26 = vadd.s32 3, %v2237_v56  ;;  %vm2076_vm10 = vcmp.lt.s32.totalorder %v4705_v28, 1 }
 0x125   :  { %v4732_v18 = vshll.u32 %v2052_v8, 8  ;;  %vm580_vm11 = vcmp.eq.s32.totalorder %v4695_v62, 0  ;;  %v2075_v30 = vor.u32 %v2074_v1, %v2073_v14  ;;  %vm2079_vm12 = vcmp.lt.s32.totalorder %v4705_v28, 4 }
 0x126   :  { %v4727_v60 = vsub.s32 %v440_v5, %v443_v9  ;;  %v2232_v24 = vxor.u32 2147483648, %v2231_v13  ;;  %v2084_v31 = vsel %vm2076_vm10, %v2063_v54, %v2066_v12  ;;  %vm579_vm13 = vcmp.lt.s32.totalorder %v4695_v62, 2 }
 0x127   :  { %v2060_v56 = vshrl.u32 %v4315_v15, %v2059_v27  ;;  %vm2078_vm14 = vcmp.lt.s32.totalorder %v4705_v28, 3  ;;  %v2085_v17 = vsel %vm2079_vm12, %v2072_v16, 920167782  ;;  %vm576_vm15 = vweird.f32 %v4490_v41 }
 0x128   :  { %v446_v3 = vsub.s32 0, %v4727_v60  ;;  %v2233_v8 = vsel %vm2150_vm3, %v2232_v24, %v2231_v13  ;;  %vm382_vm0 = vcmp.lt.s32.totalorder %v4496_v45, 0  ;;  %vm2077_vm1 = vcmp.lt.s32.totalorder %v4705_v28, 2 }
 0x129   :  { %v2081_v34 = vsel %vm2079_vm12, %v2069_v22, 2102212464  ;;  %v2086_v27 = vsel %vm2078_vm14, %v2069_v22, %v2085_v17  ;;  %v2236_v35 = vsel %vm4660_vm6, %v4493_v42, %v2233_v8  ;;  %v2088_v48 = vsel %vm2076_vm10, %v2066_v12, %v2069_v22  ;;  %v4808_v8 = vpop.f32.mrb[5].mxu0 }
 0x12a   :  { %v3790_v46 = vmin.u32 %v446_v3, %v4727_v60  ;;  %v2087_v5 = vsel %vm2077_vm1, %v2084_v31, %v2086_v27  ;;  %4162 = vcosq.f32 %v2236_v35  ;;  %v2089_v7 = vsel %vm2079_vm12, %v2075_v30, 1326507024 }
 0x12b   :  { %v4764_v36 = vmul.u32.u64.low %v4732_v18, %v2087_v5  ;;  %v4765_v37 = vmul.u32.u64.high %v4732_v18, %v2087_v5, %v4764_v36  ;;  %vm583_vm2 = vcmp.eq.s32.totalorder %v4695_v62, 2  ;;  %4164 = vsinq.f32 %v2236_v35 }
 0x12c   :  { %v4159_v40 = vpop.eup %4158  ;;  %v448_v29 = vclz %v3790_v46  ;;  %v466_v6 = vsub.s32 4, %v4721_v59  ;;  %v2080_v44 = vsel %vm2076_vm10, %v2060_v56, %v2063_v54  ;;  %v2082_v11 = vsel %vm2078_vm14, %v2066_v12, %v2081_v34 }
 0x12d   :  { %v4161_v43 = vpop.eup %4160  ;;  %v584_v0 = vxor.u32 2147483648, %v4159_v40  ;;  %v2090_v52 = vsel %vm2078_vm14, %v2072_v16, %v2089_v7  ;;  %v4780_v39 = vadd.f32 %v4502_v50, %v4487_v38  ;;  %v2242_v1 = vand.u32 3, %v2241_v26 }
 0x12e   :  { %v581_v53 = vxor.u32 2147483648, %v4161_v43  ;;  %v3791_v55 = vadd.s32 4294967294, %v448_v29  ;;  %v2091_v33 = vsel %vm2077_vm1, %v2088_v48, %v2090_v52  ;;  %v2083_v16 = vsel %vm2077_vm1, %v2080_v44, %v2082_v11 }
 0x12f   :  { %v585_v47 = vsel %vm583_vm2, %v584_v0, %v4161_v43  ;;  %v4783_v9 = vmul.u32.u64.low %v4732_v18, %v2091_v33  ;;  %v4784_v54 = vmul.u32.u64.high %v4732_v18, %v2091_v33, %v4783_v9  ;;  %v2102_v13 = vadd.s32 1, %v4765_v37 }
 0x130   :  { %v582_v12 = vsel %vm580_vm11, %v4159_v40, %v581_v53  ;;  %vm3792_vm3 = vcmp.lt.s32.totalorder %v3791_v55, 0  ;;  %v436_v50 = vadd.s32 %v4687_v57, %v4684_v10  ;;  %v695_v26 = vand.u32 2139095040, %v4780_v39 }
 0x131   :  { %v586_v22 = vsel %vm579_vm13, %v582_v12, %v585_v47  ;;  %v451_v14 = vsel %vm3792_vm3, 0, %v3791_v55  ;;  %vm2240_vm4 = vweird.f32 %v4493_v42  ;;  %v467_v28 = vsel %vm382_vm0, %v466_v6, %v4721_v59 }
 0x132   :  { %v587_v24 = vsel %vm576_vm15, nan, %v586_v22  ;;  %v452_v30 = vsub.s32 32, %v451_v14  ;;  %v456_v31 = vsub.s32 4294967266, %v451_v14  ;;  %v2099_v62 = vmul.u32 %v4732_v18, %v2083_v16 }
 0x133   :  { %3709 = vst [vmem:[#allocation2 + $0x8] sm:$0xff] %v587_v24  ;;  %vm2101_vm5 = vc.u32 %v4784_v54, %v4764_v36  ;;  %v692_v10 = vand.u32 2147483647, %v4780_v39  ;;  %v696_v57 = vshrl.u32 %v695_v26, 23  ;;  %v453_v41 = vshll.u32 %v4727_v60, %v451_v14 }
 0x134   :  { %v454_v3 = vshrl.u32 %v436_v50, %v452_v30  ;;  %v457_v56 = vadd.s32 127, %v456_v31  ;;  %v2103_v17 = vsel %vm2101_vm5, %v2102_v13, %v4765_v37  ;;  %v4163_v34 = vpop.eup %4162  ;;  %vm2247_vm6 = vcmp.eq.s32.totalorder %v2242_v1, 2 }
 0x135   :  { %vm4812_vm7 = vcmp.le.f32.partialorder %v380_v2, 0.7853982  ;;  %v2104_v18 = vadd.s32 %v2103_v17, %v2099_v62  ;;  %v3801_v27 = vadd.s32 4294967169, %v696_v57  ;;  %v4165_v35 = vpop.eup %4164  ;;  %v2248_v46 = vxor.u32 2147483648, %v4163_v34 }
 0x136   :  { %v455_v5 = vor.u32 %v454_v3, %v453_v41  ;;  %v458_v60 = vshll.u32 %v457_v56, 23  ;;  %v469_v48 = vsel %vm4812_vm7, 0, %v467_v28  ;;  %v2245_v7 = vxor.u32 2147483648, %v4165_v35 }
 0x137   :  { %v2105_v37 = vadd.s32 536870912, %v2104_v18  ;;  %v699_v40 = vand.u32 8388607, %v692_v10  ;;  %v702_v29 = vadd.s32 1, %v3801_v27  ;;  %vm2243_vm8 = vcmp.lt.s32.totalorder %v2242_v1, 2 }
 0x138   :  { %vm2244_vm9 = vcmp.eq.s32.totalorder %v2242_v1, 0  ;;  %v2249_v2 = vsel %vm2247_vm6, %v2248_v46, %v4165_v35  ;;  %v459_v6 = vor.u32 4788187, %v458_v60  ;;  %v473_v0 = vadd.s32 3, %v469_v48 }
 0x139   :  { %v2246_v43 = vsel %vm2244_vm9, %v4163_v34, %v2245_v7  ;;  %v4820_v44 = vshrl.u32 %v2105_v37, 30  ;;  %vm703_vm10 = vcmp.gt.s32.totalorder %v702_v29, 0  ;;  %v462_v53 = vcvt.s32.f32 %v455_v5 }
 0x13a   :  { %v2250_v11 = vsel %vm2243_vm8, %v2246_v43, %v2249_v2  ;;  %v460_v52 = vand.u32 2147483647, %v459_v6  ;;  %v704_v55 = vsel %vm703_vm10, %v702_v29, 0  ;;  %v700_v9 = vor.u32 8388608, %v699_v40  ;;  %v4874_v2 = vpop.f32.mrb[5].mxu1 }
 0x13b   :  { %v2251_v33 = vsel %vm2240_vm4, nan, %v2250_v11  ;;  %v2107_v47 = vshll.u32 %v4820_v44, 30  ;;  %v706_v1 = vand.u32 31, %v704_v55  ;;  %v4825_v16 = vand.u32 3, %v473_v0 }
 0x13c   :  { %3725 = vst [vmem:[#allocation2 + $0x88] sm:$0xff] %v2251_v33  ;;  %v463_v12 = vmul.f32 %v462_v53, %v460_v52  ;;  %v2100_v50 = vadd.s32 %v4764_v36, %v4784_v54  ;;  %v4833_v26 = vadd.f32 %v4504_v51, %v4487_v38  ;;  %v4836_v24 = vshrl.u32 %v704_v55, 5 }
 0x13d   :  { %v4827_v13 = vsub.s32 %v2104_v18, %v2107_v47  ;;  %v707_v14 = vsub.s32 32, %v706_v1  ;;  %v4838_v30 = vshll.u32 %v700_v9, 8  ;;  %v4842_v31 = vadd.f32 %v4487_v38, %v4511_v58 }
 0x13e   :  { %v464_v22 = vxor.u32 2147483648, %v463_v12  ;;  %v709_v36 = vshll.u32 %v4315_v15, %v706_v1  ;;  %v712_v41 = vshll.u32 %v4316_v19, %v706_v1  ;;  %v2130_v58 = vsub.s32 4, %v4820_v44 }
 0x13f   :  { %v2110_v42 = vsub.s32 0, %v4827_v13  ;;  %v710_v54 = vshrl.u32 %v4316_v19, %v707_v14  ;;  %v713_v51 = vshrl.u32 %v4317_v21, %v707_v14  ;;  %v716_v38 = vshrl.u32 %v4318_v23, %v707_v14 }
 0x140   :  { %v465_v28 = vsel %vm382_vm0, %v464_v22, %v463_v12  ;;  %v715_v3 = vshll.u32 %v4317_v21, %v706_v1  ;;  %v2359_v56 = vand.u32 2139095040, %v4833_v26  ;;  %v718_v59 = vshll.u32 %v4318_v23, %v706_v1 }
 0x141   :  { %v468_v62 = vsel %vm4812_vm7, %v4496_v45, %v465_v28  ;;  %v3854_v57 = vmin.u32 %v2110_v42, %v4827_v13  ;;  %v711_v34 = vor.u32 %v710_v54, %v709_v36  ;;  %v714_v18 = vor.u32 %v713_v51, %v712_v41 }
 0x142   :  { %4166 = vcosq.f32 %v468_v62  ;;  %v717_v27 = vor.u32 %v716_v38, %v715_v3  ;;  %v719_v35 = vshrl.u32 %v4319_v25, %v707_v14  ;;  %vm724_vm11 = vcmp.lt.s32.totalorder %v4836_v24, 1 }
 0x143   :  { %4168 = vsinq.f32 %v468_v62  ;;  %v2112_v17 = vclz %v3854_v57  ;;  %v721_v5 = vshll.u32 %v4319_v25, %v706_v1  ;;  %v722_v60 = vshrl.u32 %v4320_v32, %v707_v14 }
 0x144   :  { %vm725_vm12 = vcmp.lt.s32.totalorder %v4836_v24, 2  ;;  %vm479_vm13 = vcmp.eq.s32.totalorder %v4825_v16, 2  ;;  %v708_v48 = vshrl.u32 %v4315_v15, %v707_v14  ;;  %v720_v7 = vor.u32 %v719_v35, %v718_v59 }
 0x145   :  { %v3855_v46 = vadd.s32 4294967294, %v2112_v17  ;;  %vm726_vm14 = vcmp.lt.s32.totalorder %v4836_v24, 3  ;;  %vm727_vm15 = vcmp.lt.s32.totalorder %v4836_v24, 4  ;;  %vm476_vm0 = vcmp.eq.s32.totalorder %v4825_v16, 0 }
 0x146   :  { %vm2046_vm1 = vcmp.lt.s32.totalorder %v4514_v63, 0  ;;  %v723_v37 = vor.u32 %v722_v60, %v721_v5  ;;  %v729_v40 = vsel %vm727_vm15, %v717_v27, 2102212464  ;;  %v732_v29 = vsel %vm724_vm11, %v711_v34, %v714_v18 }
 0x147   :  { %vm3856_vm2 = vcmp.lt.s32.totalorder %v3855_v46, 0  ;;  %vm475_vm3 = vcmp.lt.s32.totalorder %v4825_v16, 2  ;;  %v728_v43 = vsel %vm724_vm11, %v708_v48, %v711_v34  ;;  %v733_v0 = vsel %vm727_vm15, %v720_v7, 920167782 }
 0x148   :  { %v2115_v6 = vsel %vm3856_vm2, 0, %v3855_v46  ;;  %v2360_v11 = vshrl.u32 %v2359_v56, 23  ;;  %vm472_vm4 = vweird.f32 %v4496_v45  ;;  %v734_v55 = vsel %vm726_vm14, %v717_v27, %v733_v0 }
 0x149   :  { %v2116_v52 = vsub.s32 32, %v2115_v6  ;;  %v2120_v53 = vsub.s32 4294967266, %v2115_v6  ;;  %v736_v33 = vsel %vm724_vm11, %v714_v18, %v717_v27  ;;  %vm4888_vm5 = vcmp.le.f32.partialorder %v2044_v61, 0.7853982 }
 0x14a   :  { %v730_v9 = vsel %vm726_vm14, %v714_v18, %v729_v40  ;;  %v735_v12 = vsel %vm725_vm12, %v732_v29, %v734_v55  ;;  %v737_v1 = vsel %vm727_vm15, %v723_v37, 1326507024  ;;  %v3865_v22 = vadd.s32 4294967169, %v2360_v11 }
 0x14b   :  { %v2117_v14 = vshll.u32 %v4827_v13, %v2115_v6  ;;  %v2118_v42 = vshrl.u32 %v2100_v50, %v2116_v52  ;;  %v2121_v28 = vadd.s32 127, %v2120_v53  ;;  %v738_v61 = vsel %vm726_vm14, %v720_v7, %v737_v1 }
 0x14c   :  { %v4167_v36 = vpop.eup %4166  ;;  %v739_v54 = vsel %vm725_vm12, %v736_v33, %v738_v61  ;;  %v4904_v51 = vmul.u32.u64.low %v4838_v30, %v735_v12  ;;  %v4905_v62 = vmul.u32.u64.high %v4838_v30, %v735_v12, %v4904_v51  ;;  %v2366_v57 = vadd.s32 1, %v3865_v22 }
 0x14d   :  { %v4169_v41 = vpop.eup %4168  ;;  %v480_v38 = vxor.u32 2147483648, %v4167_v36  ;;  %v2119_v3 = vor.u32 %v2118_v42, %v2117_v14  ;;  %v2122_v56 = vshll.u32 %v2121_v28, 23  ;;  %v2356_v13 = vand.u32 2147483647, %v4833_v26 }
 0x14e   :  { %v477_v50 = vxor.u32 2147483648, %v4169_v41  ;;  %v4910_v17 = vmul.u32.u64.low %v4838_v30, %v739_v54  ;;  %v4911_v34 = vmul.u32.u64.high %v4838_v30, %v739_v54, %v4910_v17  ;;  %vm2367_vm6 = vcmp.gt.s32.totalorder %v2366_v57, 0 }
 0x14f   :  { %v481_v18 = vsel %vm479_vm13, %v480_v38, %v4169_v41  ;;  %v2123_v27 = vor.u32 4788187, %v2122_v56  ;;  %v731_v59 = vsel %vm725_vm12, %v728_v43, %v730_v9  ;;  %v2368_v35 = vsel %vm2367_vm6, %v2366_v57, 0 }
 0x150   :  { %v478_v46 = vsel %vm476_vm0, %v4167_v36, %v477_v50  ;;  %v2131_v5 = vsel %vm2046_vm1, %v2130_v58, %v4820_v44  ;;  %v750_v60 = vadd.s32 1, %v4905_v62  ;;  %v2370_v48 = vand.u32 31, %v2368_v35 }
 0x151   :  { %v482_v7 = vsel %vm475_vm3, %v478_v46, %v481_v18  ;;  %v2124_v37 = vand.u32 2147483647, %v2123_v27  ;;  %v2126_v40 = vcvt.s32.f32 %v2119_v3  ;;  %v2363_v24 = vand.u32 8388607, %v2356_v13 }
 0x152   :  { %v483_v29 = vsel %vm472_vm4, nan, %v482_v7  ;;  %v747_v6 = vmul.u32 %v4838_v30, %v731_v59  ;;  %vm749_vm7 = vc.u32 %v4911_v34, %v4904_v51  ;;  %v2371_v44 = vsub.s32 32, %v2370_v48 }
 0x153   :  { %3708 = vst [vmem:[#allocation2] sm:$0xff] %v483_v29  ;;  %v2127_v58 = vmul.f32 %v2126_v40, %v2124_v37  ;;  %v2133_v16 = vsel %vm4888_vm5, 0, %v2131_v5  ;;  %v751_v43 = vsel %vm749_vm7, %v750_v60, %v4905_v62  ;;  %v2369_v0 = vshrl.u32 %v2368_v35, 5 }
 0x154   :  { %v752_v11 = vadd.s32 %v751_v43, %v747_v6  ;;  %v2373_v52 = vshll.u32 %v4315_v15, %v2370_v48  ;;  %v2374_v45 = vshrl.u32 %v4316_v19, %v2371_v44  ;;  %v2377_v53 = vshrl.u32 %v4317_v21, %v2371_v44 }
 0x155   :  { %v2128_v30 = vxor.u32 2147483648, %v2127_v58  ;;  %v2376_v55 = vshll.u32 %v4316_v19, %v2370_v48  ;;  %v2379_v33 = vshll.u32 %v4317_v21, %v2370_v48  ;;  %v2380_v9 = vshrl.u32 %v4318_v23, %v2371_v44 }
 0x156   :  { %v753_v12 = vadd.s32 536870912, %v752_v11  ;;  %v2375_v1 = vor.u32 %v2374_v45, %v2373_v52  ;;  %v2382_v22 = vshll.u32 %v4318_v23, %v2370_v48  ;;  %v2383_v14 = vshrl.u32 %v4319_v25, %v2371_v44 }
 0x157   :  { %v2129_v42 = vsel %vm2046_vm1, %v2128_v30, %v2127_v58  ;;  %v2378_v28 = vor.u32 %v2377_v53, %v2376_v55  ;;  %v2381_v61 = vor.u32 %v2380_v9, %v2379_v33  ;;  %v2386_v36 = vshrl.u32 %v4320_v32, %v2371_v44 }
 0x158   :  { %v2132_v54 = vsel %vm4888_vm5, %v4514_v63, %v2129_v42  ;;  %v754_v62 = vshrl.u32 %v753_v12, 30  ;;  %v2384_v57 = vor.u32 %v2383_v14, %v2382_v22  ;;  %v2385_v41 = vshll.u32 %v4319_v25, %v2370_v48 }
 0x159   :  { %4170 = vcosq.f32 %v2132_v54  ;;  %v2137_v38 = vadd.s32 3, %v2133_v16  ;;  %v2364_v3 = vor.u32 8388608, %v2363_v24  ;;  %vm2388_vm8 = vcmp.lt.s32.totalorder %v2369_v0, 1 }
 0x15a   :  { %4172 = vsinq.f32 %v2132_v54  ;;  %v755_v56 = vshll.u32 %v754_v62, 30  ;;  %v2387_v50 = vor.u32 %v2386_v36, %v2385_v41  ;;  %vm2391_vm9 = vcmp.lt.s32.totalorder %v2369_v0, 4 }
 0x15b   :  { %v2372_v17 = vshrl.u32 %v4315_v15, %v2371_v44  ;;  %vm2390_vm10 = vcmp.lt.s32.totalorder %v2369_v0, 3  ;;  %v2396_v18 = vsel %vm2388_vm8, %v2375_v1, %v2378_v28  ;;  %v2397_v47 = vsel %vm2391_vm9, %v2384_v57, 920167782 }
 0x15c   :  { %v4955_v27 = vsub.s32 %v752_v11, %v755_v56  ;;  %vm2389_vm11 = vcmp.lt.s32.totalorder %v2369_v0, 2  ;;  %v2393_v59 = vsel %vm2391_vm9, %v2381_v61, 2102212464  ;;  %v2398_v35 = vsel %vm2390_vm10, %v2381_v61, %v2397_v47 }
 0x15d   :  { %v778_v46 = vsub.s32 4, %v754_v62  ;;  %v2399_v5 = vsel %vm2389_vm11, %v2396_v18, %v2398_v35  ;;  %v2400_v60 = vsel %vm2388_vm8, %v2378_v28, %v2381_v61  ;;  %v2404_v48 = vshll.u32 %v2364_v3, 8 }
 0x15e   :  { %v2138_v7 = vand.u32 3, %v2137_v38  ;;  %v758_v37 = vsub.s32 0, %v4955_v27  ;;  %v2392_v40 = vsel %vm2388_vm8, %v2372_v17, %v2375_v1  ;;  %v2401_v24 = vsel %vm2391_vm9, %v2387_v50, 1326507024 }
 0x15f   :  { %v2394_v29 = vsel %vm2390_vm10, %v2378_v28, %v2393_v59  ;;  %v2402_v6 = vsel %vm2390_vm10, %v2384_v57, %v2401_v24  ;;  %v4966_v44 = vmul.u32.u64.low %v2404_v48, %v2399_v5  ;;  %v4967_v58 = vmul.u32.u64.high %v2404_v48, %v2399_v5, %v4966_v44  ;;  %v5000_v5 = vpop.f32.mrb[6].mxu0 }
 0x160   :  { %vm2136_vm12 = vweird.f32 %v4514_v63  ;;  %vm694_vm13 = vcmp.lt.s32.totalorder %v4780_v39, 0  ;;  %v3802_v16 = vmin.u32 %v758_v37, %v4955_v27  ;;  %v2403_v43 = vsel %vm2389_vm11, %v2400_v60, %v2402_v6 }
 0x161   :  { %v779_v11 = vsel %vm694_vm13, %v778_v46, %v754_v62  ;;  %v4975_v52 = vmul.u32.u64.low %v2404_v48, %v2403_v43  ;;  %v4976_v45 = vmul.u32.u64.high %v2404_v48, %v2403_v43, %v4975_v52  ;;  %v591_v53 = vand.u32 2139095040, %v4842_v31 }
 0x162   :  { %vm4981_vm14 = vcmp.le.f32.partialorder %v692_v10, 0.7853982  ;;  %v760_v55 = vclz %v3802_v16  ;;  %v2395_v33 = vsel %vm2389_vm11, %v2392_v40, %v2394_v29  ;;  %v588_v9 = vand.u32 2147483647, %v4842_v31 }
 0x163   :  { %v4171_v12 = vpop.eup %4170  ;;  %vm2139_vm15 = vcmp.lt.s32.totalorder %v2138_v7, 2  ;;  %vm2140_vm0 = vcmp.eq.s32.totalorder %v2138_v7, 0  ;;  %v2414_v1 = vadd.s32 1, %v4967_v58  ;;  %v592_v22 = vshrl.u32 %v591_v53, 23 }
 0x164   :  { %v4173_v14 = vpop.eup %4172  ;;  %vm2143_vm1 = vcmp.eq.s32.totalorder %v2138_v7, 2  ;;  %v2144_v42 = vxor.u32 2147483648, %v4171_v12  ;;  %v3803_v28 = vadd.s32 4294967294, %v760_v55  ;;  %v781_v10 = vsel %vm4981_vm14, 0, %v779_v11 }
 0x165   :  { %v2141_v61 = vxor.u32 2147483648, %v4173_v14  ;;  %v2411_v36 = vmul.u32 %v2404_v48, %v2395_v33  ;;  %vm2413_vm2 = vc.u32 %v4976_v45, %v4966_v44  ;;  %v3797_v0 = vadd.s32 4294967169, %v592_v22 }
 0x166   :  { %v2145_v54 = vsel %vm2143_vm1, %v2144_v42, %v4173_v14  ;;  %vm3804_vm3 = vcmp.lt.s32.totalorder %v3803_v28, 0  ;;  %v2415_v62 = vsel %vm2413_vm2, %v2414_v1, %v4967_v58  ;;  %v595_v57 = vand.u32 8388607, %v588_v9 }
 0x167   :  { %v2142_v41 = vsel %vm2140_vm0, %v4171_v12, %v2141_v61  ;;  %v763_v38 = vsel %vm3804_vm3, 0, %v3803_v28  ;;  %v2416_v3 = vadd.s32 %v2415_v62, %v2411_v36  ;;  %v598_v56 = vadd.s32 1, %v3797_v0 }
 0x168   :  { %v2146_v50 = vsel %vm2139_vm15, %v2142_v41, %v2145_v54  ;;  %v748_v17 = vadd.s32 %v4904_v51, %v4911_v34  ;;  %v764_v18 = vsub.s32 32, %v763_v38  ;;  %v768_v47 = vsub.s32 4294967266, %v763_v38 }
 0x169   :  { %v2147_v59 = vsel %vm2136_vm12, nan, %v2146_v50  ;;  %v785_v35 = vadd.s32 3, %v781_v10  ;;  %v2417_v46 = vadd.s32 536870912, %v2416_v3  ;;  %vm599_vm4 = vcmp.gt.s32.totalorder %v598_v56, 0 }
 0x16a   :  { %3724 = vst [vmem:[#allocation2 + $0x80] sm:$0xff] %v2147_v59  ;;  %v765_v60 = vshll.u32 %v4955_v27, %v763_v38  ;;  %v766_v48 = vshrl.u32 %v748_v17, %v764_v18  ;;  %v769_v37 = vadd.s32 127, %v768_v47  ;;  %v600_v7 = vsel %vm599_vm4, %v598_v56, 0  ;;  %v5010_v27 = vld [vmem:[%s7133_s2] ss:$0 sm:$0xff] }
 0x16b   :  { %v2418_v40 = vshrl.u32 %v2417_v46, 30  ;;  %v596_v24 = vor.u32 8388608, %v595_v57  ;;  %v602_v29 = vand.u32 31, %v600_v7  ;;  %v5003_v6 = vand.u32 3, %v785_v35 }
 0x16c   :  { %v767_v51 = vor.u32 %v766_v48, %v765_v60  ;;  %v770_v34 = vshll.u32 %v769_v37, 23  ;;  %vm2358_vm5 = vcmp.lt.s32.totalorder %v4833_v26, 0  ;;  %v2412_v43 = vadd.s32 %v4966_v44, %v4976_v45 }
 0x16d   :  { %v2419_v63 = vshll.u32 %v2418_v40, 30  ;;  %v603_v58 = vsub.s32 32, %v602_v29  ;;  %v5014_v11 = vadd.f32 %v5010_v27, %v4517_v4  ;;  %v5018_v52 = vadd.f32 %v5010_v27, %v4600_v20 }
 0x16e   :  { %v771_v16 = vor.u32 4788187, %v770_v34  ;;  %v601_v55 = vshrl.u32 %v600_v7, 5  ;;  %v5023_v12 = vshll.u32 %v596_v24, 8  ;;  %v774_v45 = vcvt.s32.f32 %v767_v51 }
 0x16f   :  { %v5020_v53 = vsub.s32 %v2416_v3, %v2419_v63  ;;  %v606_v33 = vshrl.u32 %v4316_v19, %v603_v58  ;;  %v609_v1 = vshrl.u32 %v4317_v21, %v603_v58  ;;  %v612_v22 = vshrl.u32 %v4318_v23, %v603_v58 }
 0x170   :  { %v772_v44 = vand.u32 2147483647, %v771_v16  ;;  %v2442_v14 = vsub.s32 4, %v2418_v40  ;;  %v605_v42 = vshll.u32 %v4315_v15, %v602_v29  ;;  %v608_v20 = vshll.u32 %v4316_v19, %v602_v29 }
 0x171   :  { %v2422_v4 = vsub.s32 0, %v5020_v53  ;;  %v611_v10 = vshll.u32 %v4317_v21, %v602_v29  ;;  %v614_v61 = vshll.u32 %v4318_v23, %v602_v29  ;;  %v615_v36 = vshrl.u32 %v4319_v25, %v603_v58 }
 0x172   :  { %v775_v28 = vmul.f32 %v774_v45, %v772_v44  ;;  %v607_v54 = vor.u32 %v606_v33, %v605_v42  ;;  %v610_v62 = vor.u32 %v609_v1, %v608_v20  ;;  %v618_v57 = vshrl.u32 %v4320_v32, %v603_v58 }
 0x173   :  { %v3866_v0 = vmin.u32 %v2422_v4, %v5020_v53  ;;  %v613_v38 = vor.u32 %v612_v22, %v611_v10  ;;  %v616_v3 = vor.u32 %v615_v36, %v614_v61  ;;  %v617_v56 = vshll.u32 %v4319_v25, %v602_v29  ;;  %v5048_v29 = vpop.f32.mrb[6].mxu1 }
 0x174   :  { %v776_v41 = vxor.u32 2147483648, %v775_v28  ;;  %v2443_v17 = vsel %vm2358_vm5, %v2442_v14, %v2418_v40  ;;  %v604_v18 = vshrl.u32 %v4315_v15, %v603_v58  ;;  %v2255_v47 = vand.u32 2139095040, %v5014_v11 }
 0x175   :  { %v2424_v50 = vclz %v3866_v0  ;;  %v619_v35 = vor.u32 %v618_v57, %v617_v56  ;;  %vm620_vm6 = vcmp.lt.s32.totalorder %v601_v55, 1  ;;  %vm621_vm7 = vcmp.lt.s32.totalorder %v601_v55, 2 }
 0x176   :  { %v777_v59 = vsel %vm694_vm13, %v776_v41, %v775_v28  ;;  %vm622_vm8 = vcmp.lt.s32.totalorder %v601_v55, 3  ;;  %vm623_vm9 = vcmp.lt.s32.totalorder %v601_v55, 4  ;;  %v628_v37 = vsel %vm620_vm6, %v607_v54, %v610_v62 }
 0x177   :  { %v780_v46 = vsel %vm4981_vm14, %v4780_v39, %v777_v59  ;;  %v3867_v60 = vadd.s32 4294967294, %v2424_v50  ;;  %v625_v48 = vsel %vm623_vm9, %v613_v38, 2102212464  ;;  %v629_v7 = vsel %vm623_vm9, %v616_v3, 920167782 }
 0x178   :  { %4174 = vcosq.f32 %v780_v46  ;;  %v624_v40 = vsel %vm620_vm6, %v604_v18, %v607_v54  ;;  %v630_v24 = vsel %vm622_vm8, %v613_v38, %v629_v7  ;;  %v632_v34 = vsel %vm620_vm6, %v610_v62, %v613_v38 }
 0x179   :  { %4176 = vsinq.f32 %v780_v46  ;;  %vm3868_vm10 = vcmp.lt.s32.totalorder %v3867_v60, 0  ;;  %v631_v30 = vsel %vm621_vm7, %v628_v37, %v630_v24  ;;  %v633_v63 = vsel %vm623_vm9, %v619_v35, 1326507024 }
 0x17a   :  { %v2427_v51 = vsel %vm3868_vm10, 0, %v3867_v60  ;;  %v626_v33 = vsel %vm622_vm8, %v610_v62, %v625_v48  ;;  %v634_v44 = vsel %vm622_vm8, %v616_v3, %v633_v63  ;;  %vm5067_vm11 = vcmp.le.f32.partialorder %v2356_v13, 0.7853982 }
 0x17b   :  { %v2428_v58 = vsub.s32 32, %v2427_v51  ;;  %v2432_v16 = vsub.s32 4294967266, %v2427_v51  ;;  %v2429_v45 = vshll.u32 %v5020_v53, %v2427_v51  ;;  %v635_v1 = vsel %vm621_vm7, %v632_v34, %v634_v44 }
 0x17c   :  { %v5057_v22 = vmul.u32.u64.low %v5023_v12, %v631_v30  ;;  %v5058_v4 = vmul.u32.u64.high %v5023_v12, %v631_v30, %v5057_v22  ;;  %v5062_v20 = vmul.u32.u64.low %v5023_v12, %v635_v1  ;;  %v5063_v28 = vmul.u32.u64.high %v5023_v12, %v635_v1, %v5062_v20 }
 0x17d   :  { %v2430_v14 = vshrl.u32 %v2412_v43, %v2428_v58  ;;  %v2433_v42 = vadd.s32 127, %v2432_v16  ;;  %v627_v53 = vsel %vm621_vm7, %v624_v40, %v626_v33  ;;  %v2256_v61 = vshrl.u32 %v2255_v47, 23 }
 0x17e   :  { %v2445_v54 = vsel %vm5067_vm11, 0, %v2443_v17  ;;  %v646_v43 = vadd.s32 1, %v5058_v4  ;;  %v2252_v62 = vand.u32 2147483647, %v5014_v11  ;;  %v903_v41 = vand.u32 2139095040, %v5018_v52 }
 0x17f   :  { %v2431_v36 = vor.u32 %v2430_v14, %v2429_v45  ;;  %v2434_v0 = vshll.u32 %v2433_v42, 23  ;;  %v3861_v57 = vadd.s32 4294967169, %v2256_v61  ;;  %vm788_vm12 = vcmp.eq.s32.totalorder %v5003_v6, 0 }
 0x180   :  { %v643_v38 = vmul.u32 %v5023_v12, %v627_v53  ;;  %vm645_vm13 = vc.u32 %v5063_v28, %v5057_v22  ;;  %vm791_vm14 = vcmp.eq.s32.totalorder %v5003_v6, 2  ;;  %v2449_v3 = vadd.s32 3, %v2445_v54 }
 0x181   :  { %v2435_v13 = vor.u32 4788187, %v2434_v0  ;;  %v647_v56 = vsel %vm645_vm13, %v646_v43, %v5058_v4  ;;  %v2262_v50 = vadd.s32 1, %v3861_v57  ;;  %v2438_v59 = vcvt.s32.f32 %v2431_v36 }
 0x182   :  { %v4175_v55 = vpop.eup %4174  ;;  %v648_v35 = vadd.s32 %v647_v56, %v643_v38  ;;  %v2259_v60 = vand.u32 8388607, %v2252_v62  ;;  %v904_v12 = vshrl.u32 %v903_v41, 23  ;;  %vm784_vm0 = vweird.f32 %v4780_v39 }
 0x183   :  { %v4177_v17 = vpop.eup %4176  ;;  %v792_v18 = vxor.u32 2147483648, %v4175_v55  ;;  %v2436_v47 = vand.u32 2147483647, %v2435_v13  ;;  %vm2263_vm15 = vcmp.gt.s32.totalorder %v2262_v50, 0  ;;  %vm787_vm1 = vcmp.lt.s32.totalorder %v5003_v6, 2 }
 0x184   :  { %v789_v46 = vxor.u32 2147483648, %v4177_v17  ;;  %v649_v7 = vadd.s32 536870912, %v648_v35  ;;  %v2264_v40 = vsel %vm2263_vm15, %v2262_v50, 0  ;;  %v5089_v63 = vand.u32 3, %v2449_v3 }
 0x185   :  { %v793_v48 = vsel %vm791_vm14, %v792_v18, %v4177_v17  ;;  %v2439_v37 = vmul.f32 %v2438_v59, %v2436_v47  ;;  %v2266_v51 = vand.u32 31, %v2264_v40  ;;  %v2260_v33 = vor.u32 8388608, %v2259_v60 }
 0x186   :  { %v790_v24 = vsel %vm788_vm12, %v4175_v55, %v789_v46  ;;  %v5091_v58 = vshrl.u32 %v649_v7, 30  ;;  %v900_v45 = vand.u32 2147483647, %v5018_v52  ;;  %v3809_v4 = vadd.s32 4294967169, %v904_v12 }
 0x187   :  { %v794_v30 = vsel %vm787_vm1, %v790_v24, %v793_v48  ;;  %v2440_v34 = vxor.u32 2147483648, %v2439_v37  ;;  %v2267_v44 = vsub.s32 32, %v2266_v51  ;;  %v2269_v6 = vshll.u32 %v4315_v15, %v2266_v51 }
 0x188   :  { %v795_v16 = vsel %vm784_vm0, nan, %v794_v30  ;;  %v651_v1 = vshll.u32 %v5091_v58, 30  ;;  %v2272_v20 = vshll.u32 %v4316_v19, %v2266_v51  ;;  %v2275_v36 = vshll.u32 %v4317_v21, %v2266_v51 }
 0x189   :  { %3711 = vst [vmem:[#allocation2 + $0x18] sm:$0xff] %v795_v16  ;;  %v2441_v39 = vsel %vm2358_vm5, %v2440_v34, %v2439_v37  ;;  %v2270_v42 = vshrl.u32 %v4316_v19, %v2267_v44  ;;  %v2273_v53 = vshrl.u32 %v4317_v21, %v2267_v44  ;;  %v2276_v0 = vshrl.u32 %v4318_v23, %v2267_v44 }
 0x18a   :  { %v2444_v14 = vsel %vm5067_vm11, %v4833_v26, %v2441_v39  ;;  %v5104_v61 = vsub.s32 %v648_v35, %v651_v1  ;;  %v644_v54 = vadd.s32 %v5057_v22, %v5063_v28  ;;  %v2265_v43 = vshrl.u32 %v2264_v40, 5 }
 0x18b   :  { %4178 = vcosq.f32 %v2444_v14  ;;  %v5110_v10 = vshll.u32 %v2260_v33, 8  ;;  %v2271_v41 = vor.u32 %v2270_v42, %v2269_v6  ;;  %v2274_v13 = vor.u32 %v2273_v53, %v2272_v20  ;;  %v5140_v53 = vpop.f32.mrb[7].mxu0 }
 0x18c   :  { %4180 = vsinq.f32 %v2444_v14  ;;  %v654_v57 = vsub.s32 0, %v5104_v61  ;;  %v2277_v38 = vor.u32 %v2276_v0, %v2275_v36  ;;  %v2278_v55 = vshll.u32 %v4318_v23, %v2266_v51 }
 0x18d   :  { %v2279_v3 = vshrl.u32 %v4319_v25, %v2267_v44  ;;  %v2281_v56 = vshll.u32 %v4319_v25, %v2266_v51  ;;  %v2282_v50 = vshrl.u32 %v4320_v32, %v2267_v44  ;;  %vm2455_vm2 = vcmp.eq.s32.totalorder %v5089_v63, 2 }
 0x18e   :  { %v3798_v22 = vmin.u32 %v654_v57, %v5104_v61  ;;  %v674_v28 = vsub.s32 4, %v5091_v58  ;;  %v5122_v17 = vand.u32 8388607, %v900_v45  ;;  %v910_v18 = vadd.s32 1, %v3809_v4 }
 0x18f   :  { %vm2452_vm3 = vcmp.eq.s32.totalorder %v5089_v63, 0  ;;  %v2268_v47 = vshrl.u32 %v4315_v15, %v2267_v44  ;;  %v2280_v59 = vor.u32 %v2279_v3, %v2278_v55  ;;  %v2283_v35 = vor.u32 %v2282_v50, %v2281_v56 }
 0x190   :  { %vm2284_vm4 = vcmp.lt.s32.totalorder %v2265_v43, 1  ;;  %vm2451_vm5 = vcmp.lt.s32.totalorder %v5089_v63, 2  ;;  %vm590_vm6 = vcmp.lt.s32.totalorder %v4842_v31, 0  ;;  %v656_v46 = vclz %v3798_v22 }
 0x191   :  { %vm2285_vm7 = vcmp.lt.s32.totalorder %v2265_v43, 2  ;;  %vm2286_vm8 = vcmp.lt.s32.totalorder %v2265_v43, 3  ;;  %vm2287_vm9 = vcmp.lt.s32.totalorder %v2265_v43, 4  ;;  %vm2448_vm10 = vweird.f32 %v4833_v26 }
 0x192   :  { %v2289_v60 = vsel %vm2287_vm9, %v2277_v38, 2102212464  ;;  %v2292_v12 = vsel %vm2284_vm4, %v2271_v41, %v2274_v13  ;;  %v2293_v48 = vsel %vm2287_vm9, %v2280_v59, 920167782  ;;  %v2296_v37 = vsel %vm2284_vm4, %v2274_v13, %v2277_v38 }
 0x193   :  { %v3799_v7 = vadd.s32 4294967294, %v656_v46  ;;  %v2288_v40 = vsel %vm2284_vm4, %v2268_v47, %v2271_v41  ;;  %v2294_v24 = vsel %vm2286_vm8, %v2277_v38, %v2293_v48  ;;  %v2297_v51 = vsel %vm2287_vm9, %v2283_v35, 1326507024 }
 0x194   :  { %v2290_v30 = vsel %vm2286_vm8, %v2274_v13, %v2289_v60  ;;  %v2295_v34 = vsel %vm2285_vm7, %v2292_v12, %v2294_v24  ;;  %v2298_v16 = vsel %vm2286_vm8, %v2280_v59, %v2297_v51  ;;  %vm911_vm11 = vcmp.gt.s32.totalorder %v910_v18, 0 }
 0x195   :  { %v4179_v33 = vpop.eup %4178  ;;  %vm3800_vm12 = vcmp.lt.s32.totalorder %v3799_v7, 0  ;;  %v2299_v44 = vsel %vm2285_vm7, %v2296_v37, %v2298_v16  ;;  %v5132_v39 = vmul.u32.u64.low %v5110_v10, %v2295_v34  ;;  %v5133_v1 = vmul.u32.u64.high %v5110_v10, %v2295_v34, %v5132_v39 }
 0x196   :  { %v4181_v6 = vpop.eup %4180  ;;  %v2456_v4 = vxor.u32 2147483648, %v4179_v33  ;;  %v659_v14 = vsel %vm3800_vm12, 0, %v3799_v7  ;;  %v5137_v42 = vmul.u32.u64.low %v5110_v10, %v2299_v44  ;;  %v5138_v20 = vmul.u32.u64.high %v5110_v10, %v2299_v44, %v5137_v42 }
 0x197   :  { %v2453_v36 = vxor.u32 2147483648, %v4181_v6  ;;  %v660_v0 = vsub.s32 32, %v659_v14  ;;  %v664_v57 = vsub.s32 4294967266, %v659_v14  ;;  %v2291_v41 = vsel %vm2285_vm7, %v2288_v40, %v2290_v30 }
 0x198   :  { %v2457_v13 = vsel %vm2455_vm2, %v2456_v4, %v4181_v6  ;;  %v661_v38 = vshll.u32 %v5104_v61, %v659_v14  ;;  %v908_v55 = vor.u32 8388608, %v5122_v17  ;;  %v912_v3 = vsel %vm911_vm11, %v910_v18, 0 }
 0x199   :  { %v2454_v56 = vsel %vm2452_vm3, %v4179_v33, %v2453_v36  ;;  %v662_v50 = vshrl.u32 %v644_v54, %v660_v0  ;;  %v665_v22 = vadd.s32 127, %v664_v57  ;;  %v2310_v47 = vadd.s32 1, %v5133_v1 }
 0x19a   :  { %v2458_v43 = vsel %vm2451_vm5, %v2454_v56, %v2457_v13  ;;  %v675_v59 = vsel %vm590_vm6, %v674_v28, %v5091_v58  ;;  %v2307_v61 = vmul.u32 %v5110_v10, %v2291_v41  ;;  %vm2309_vm13 = vc.u32 %v5138_v20, %v5132_v39 }
 0x19b   :  { %v2459_v17 = vsel %vm2448_vm10, nan, %v2458_v43  ;;  %v663_v18 = vor.u32 %v662_v50, %v661_v38  ;;  %v666_v54 = vshll.u32 %v665_v22, 23  ;;  %v2311_v35 = vsel %vm2309_vm13, %v2310_v47, %v5133_v1 }
 0x19c   :  { %3727 = vst [vmem:[#allocation2 + $0x98] sm:$0xff] %v2459_v17  ;;  %vm5164_vm14 = vcmp.le.f32.partialorder %v588_v9, 0.7853982  ;;  %v2312_v58 = vadd.s32 %v2311_v35, %v2307_v61  ;;  %v914_v28 = vand.u32 31, %v912_v3  ;;  %v5170_v60 = vshll.u32 %v908_v55, 8 }
 0x19d   :  { %v667_v10 = vor.u32 4788187, %v666_v54  ;;  %v677_v46 = vsel %vm5164_vm14, 0, %v675_v59  ;;  %v670_v26 = vcvt.s32.f32 %v663_v18  ;;  %v5172_v48 = vshrl.u32 %v912_v3, 5 }
 0x19e   :  { %v2313_v12 = vadd.s32 536870912, %v2312_v58  ;;  %v915_v37 = vsub.s32 32, %v914_v28  ;;  %v917_v40 = vshll.u32 %v4315_v15, %v914_v28  ;;  %v920_v9 = vshll.u32 %v4316_v19, %v914_v28 }
 0x19f   :  { %v668_v7 = vand.u32 2147483647, %v667_v10  ;;  %v923_v24 = vshll.u32 %v4317_v21, %v914_v28  ;;  %v926_v16 = vshll.u32 %v4318_v23, %v914_v28  ;;  %v681_v4 = vadd.s32 3, %v677_v46 }
 0x1a0   :  { %v2314_v51 = vshrl.u32 %v2313_v12, 30  ;;  %v918_v30 = vshrl.u32 %v4316_v19, %v915_v37  ;;  %v921_v34 = vshrl.u32 %v4317_v21, %v915_v37  ;;  %v924_v44 = vshrl.u32 %v4318_v23, %v915_v37 }
 0x1a1   :  { %v671_v33 = vmul.f32 %v670_v26, %v668_v7  ;;  %v927_v1 = vshrl.u32 %v4319_v25, %v915_v37  ;;  %v930_v6 = vshrl.u32 %v4320_v32, %v915_v37  ;;  %v929_v13 = vshll.u32 %v4319_v25, %v914_v28  ;;  %v5221_v26 = vpop.f32.mrb[7].mxu1 }
 0x1a2   :  { %v2315_v14 = vshll.u32 %v2314_v51, 30  ;;  %v919_v42 = vor.u32 %v918_v30, %v917_v40  ;;  %v922_v36 = vor.u32 %v921_v34, %v920_v9  ;;  %v925_v57 = vor.u32 %v924_v44, %v923_v24 }
 0x1a3   :  { %v672_v0 = vxor.u32 2147483648, %v671_v33  ;;  %v928_v41 = vor.u32 %v927_v1, %v926_v16  ;;  %vm932_vm15 = vcmp.lt.s32.totalorder %v5172_v48, 1  ;;  %vm935_vm0 = vcmp.lt.s32.totalorder %v5172_v48, 4 }
 0x1a4   :  { %v5184_v38 = vsub.s32 %v2312_v58, %v2315_v14  ;;  %v5190_v55 = vadd.f32 %v5010_v27, %v4680_v49  ;;  %v931_v56 = vor.u32 %v930_v6, %v929_v13  ;;  %v940_v50 = vsel %vm932_vm15, %v919_v42, %v922_v36 }
 0x1a5   :  { %v673_v3 = vsel %vm590_vm6, %v672_v0, %v671_v33  ;;  %v941_v22 = vsel %vm935_vm0, %v928_v41, 920167782  ;;  %vm933_vm1 = vcmp.lt.s32.totalorder %v5172_v48, 2  ;;  %vm934_vm2 = vcmp.lt.s32.totalorder %v5172_v48, 3 }
 0x1a6   :  { %v676_v47 = vsel %vm5164_vm14, %v4842_v31, %v673_v3  ;;  %v2318_v43 = vsub.s32 0, %v5184_v38  ;;  %v2338_v49 = vsub.s32 4, %v2314_v51  ;;  %v916_v59 = vshrl.u32 %v4315_v15, %v915_v37 }
 0x1a7   :  { %4182 = vcosq.f32 %v676_v47  ;;  %v942_v61 = vsel %vm934_vm2, %v925_v57, %v941_v22  ;;  %v937_v18 = vsel %vm935_vm0, %v925_v57, 2102212464  ;;  %v944_v35 = vsel %vm932_vm15, %v922_v36, %v925_v57 }
 0x1a8   :  { %4184 = vsinq.f32 %v676_v47  ;;  %v3862_v17 = vmin.u32 %v2318_v43, %v5184_v38  ;;  %v943_v54 = vsel %vm933_vm1, %v940_v50, %v942_v61  ;;  %v945_v63 = vsel %vm935_vm0, %v931_v56, 1326507024 }
 0x1a9   :  { %v5217_v58 = vmul.u32.u64.low %v5170_v60, %v943_v54  ;;  %v5218_v28 = vmul.u32.u64.high %v5170_v60, %v943_v54, %v5217_v58  ;;  %v682_v10 = vand.u32 3, %v681_v4  ;;  %v936_v12 = vsel %vm932_vm15, %v916_v59, %v919_v42 }
 0x1aa   :  { %v2320_v46 = vclz %v3862_v17  ;;  %v938_v37 = vsel %vm934_vm2, %v922_v36, %v937_v18  ;;  %v946_v7 = vsel %vm934_vm2, %v928_v41, %v945_v63  ;;  %v2567_v40 = vand.u32 2139095040, %v5190_v55 }
 0x1ab   :  { %vm5232_vm3 = vcmp.le.f32.partialorder %v2252_v62, 0.7853982  ;;  %vm2254_vm4 = vcmp.lt.s32.totalorder %v5014_v11, 0  ;;  %v947_v30 = vsel %vm933_vm1, %v944_v35, %v946_v7  ;;  %v2564_v44 = vand.u32 2147483647, %v5190_v55 }
 0x1ac   :  { %v3863_v24 = vadd.s32 4294967294, %v2320_v46  ;;  %v2339_v34 = vsel %vm2254_vm4, %v2338_v49, %v2314_v51  ;;  %v5242_v16 = vmul.u32.u64.low %v5170_v60, %v947_v30  ;;  %v5243_v33 = vmul.u32.u64.high %v5170_v60, %v947_v30, %v5242_v16 }
 0x1ad   :  { %vm680_vm5 = vweird.f32 %v4842_v31  ;;  %v939_v62 = vsel %vm933_vm1, %v936_v12, %v938_v37  ;;  %v958_v1 = vadd.s32 1, %v5218_v28  ;;  %v2568_v6 = vshrl.u32 %v2567_v40, 23 }
 0x1ae   :  { %vm3864_vm6 = vcmp.lt.s32.totalorder %v3863_v24, 0  ;;  %vm683_vm7 = vcmp.lt.s32.totalorder %v682_v10, 2  ;;  %vm687_vm8 = vcmp.eq.s32.totalorder %v682_v10, 2  ;;  %v2308_v51 = vadd.s32 %v5132_v39, %v5138_v20 }
 0x1af   :  { %v2323_v4 = vsel %vm3864_vm6, 0, %v3863_v24  ;;  %v2341_v36 = vsel %vm5232_vm3, 0, %v2339_v34  ;;  %v3873_v0 = vadd.s32 4294967169, %v2568_v6  ;;  %v955_v48 = vmul.u32 %v5170_v60, %v939_v62 }
 0x1b0   :  { %v2324_v14 = vsub.s32 32, %v2323_v4  ;;  %v2328_v42 = vsub.s32 4294967266, %v2323_v4  ;;  %v2325_v41 = vshll.u32 %v5184_v38, %v2323_v4  ;;  %vm957_vm9 = vc.u32 %v5243_v33, %v5217_v58 }
 0x1b1   :  { %v4183_v57 = vpop.eup %4182  ;;  %v2571_v13 = vand.u32 8388607, %v2564_v44  ;;  %v959_v50 = vsel %vm957_vm9, %v958_v1, %v5218_v28  ;;  %v2574_v43 = vadd.s32 1, %v3873_v0  ;;  %v5263_v38 = vadd.f32 %v5010_v27, %v4808_v8 }
 0x1b2   :  { %v4185_v3 = vpop.eup %4184  ;;  %v688_v39 = vxor.u32 2147483648, %v4183_v57  ;;  %v2326_v20 = vshrl.u32 %v2308_v51, %v2324_v14  ;;  %v2329_v56 = vadd.s32 127, %v2328_v42  ;;  %v960_v47 = vadd.s32 %v959_v50, %v955_v48 }
 0x1b3   :  { %v685_v22 = vxor.u32 2147483648, %v4185_v3  ;;  %vm684_vm10 = vcmp.eq.s32.totalorder %v682_v10, 0  ;;  %v2345_v17 = vadd.s32 3, %v2341_v36  ;;  %vm2575_vm11 = vcmp.gt.s32.totalorder %v2574_v43, 0 }
 0x1b4   :  { %v689_v60 = vsel %vm687_vm8, %v688_v39, %v4185_v3  ;;  %v2327_v49 = vor.u32 %v2326_v20, %v2325_v41  ;;  %v2330_v59 = vshll.u32 %v2329_v56, 23  ;;  %v961_v18 = vadd.s32 536870912, %v960_v47 }
 0x1b5   :  { %v686_v61 = vsel %vm684_vm10, %v4183_v57, %v685_v22  ;;  %v2572_v63 = vor.u32 8388608, %v2571_v13  ;;  %v2576_v28 = vsel %vm2575_vm11, %v2574_v43, 0  ;;  %v799_v37 = vand.u32 2139095040, %v5263_v38 }
 0x1b6   :  { %v690_v54 = vsel %vm683_vm7, %v686_v61, %v689_v60  ;;  %v2331_v35 = vor.u32 4788187, %v2330_v59  ;;  %v962_v12 = vshrl.u32 %v961_v18, 30  ;;  %v2578_v8 = vand.u32 31, %v2576_v28 }
 0x1b7   :  { %v691_v46 = vsel %vm680_vm5, nan, %v690_v54  ;;  %v2334_v40 = vcvt.s32.f32 %v2327_v49  ;;  %vm902_vm12 = vcmp.lt.s32.totalorder %v5018_v52, 0  ;;  %v5271_v24 = vand.u32 3, %v2345_v17 }
 0x1b8   :  { %3710 = vst [vmem:[#allocation2 + $0x10] sm:$0xff] %v691_v46  ;;  %v2332_v7 = vand.u32 2147483647, %v2331_v35  ;;  %vm5275_vm13 = vcmp.le.f32.partialorder %v900_v45, 0.7853982  ;;  %v963_v30 = vshll.u32 %v962_v12, 30  ;;  %v956_v62 = vadd.s32 %v5217_v58, %v5243_v33 }
 0x1b9   :  { %v2579_v31 = vsub.s32 32, %v2578_v8  ;;  %v796_v34 = vand.u32 2147483647, %v5263_v38  ;;  %v986_v1 = vsub.s32 4, %v962_v12  ;;  %v5282_v6 = vshll.u32 %v2572_v63, 8 }
 0x1ba   :  { %v2335_v16 = vmul.f32 %v2334_v40, %v2332_v7  ;;  %v5284_v51 = vsub.s32 %v960_v47, %v963_v30  ;;  %v5286_v4 = vshrl.u32 %v2576_v28, 5  ;;  %v800_v14 = vshrl.u32 %v799_v37, 23 }
 0x1bb   :  { %v2582_v45 = vshrl.u32 %v4316_v19, %v2579_v31  ;;  %v2581_v36 = vshll.u32 %v4315_v15, %v2578_v8  ;;  %v2585_v0 = vshrl.u32 %v4317_v21, %v2579_v31  ;;  %v2588_v57 = vshrl.u32 %v4318_v23, %v2579_v31 }
 0x1bc   :  { %v2336_v42 = vxor.u32 2147483648, %v2335_v16  ;;  %v966_v41 = vsub.s32 0, %v5284_v51  ;;  %v2584_v58 = vshll.u32 %v4316_v19, %v2578_v8  ;;  %v2587_v33 = vshll.u32 %v4317_v21, %v2578_v8 }
 0x1bd   :  { %v2591_v48 = vshrl.u32 %v4319_v25, %v2579_v31  ;;  %v987_v3 = vsel %vm902_vm12, %v986_v1, %v962_v12  ;;  %v2583_v39 = vor.u32 %v2582_v45, %v2581_v36  ;;  %v2590_v20 = vshll.u32 %v4318_v23, %v2578_v8 }
 0x1be   :  { %v2337_v13 = vsel %vm2254_vm4, %v2336_v42, %v2335_v16  ;;  %v3810_v50 = vmin.u32 %v966_v41, %v5284_v51  ;;  %v2586_v22 = vor.u32 %v2585_v0, %v2584_v58  ;;  %v2589_v47 = vor.u32 %v2588_v57, %v2587_v33 }
 0x1bf   :  { %v2340_v56 = vsel %vm5232_vm3, %v5014_v11, %v2337_v13  ;;  %v2592_v43 = vor.u32 %v2591_v48, %v2590_v20  ;;  %v2593_v60 = vshll.u32 %v4319_v25, %v2578_v8  ;;  %v2594_v49 = vshrl.u32 %v4320_v32, %v2579_v31  ;;  %v5340_v13 = vpop.f32.mrb[8].mxu0 }
 0x1c0   :  { %4186 = vcosq.f32 %v2340_v56  ;;  %v968_v59 = vclz %v3810_v50  ;;  %v3805_v61 = vadd.s32 4294967169, %v800_v14  ;;  %v5309_v17 = vand.u32 8388607, %v796_v34 }
 0x1c1   :  { %4188 = vsinq.f32 %v2340_v56  ;;  %v989_v9 = vsel %vm5275_vm13, 0, %v987_v3  ;;  %v2580_v18 = vshrl.u32 %v4315_v15, %v2579_v31  ;;  %v2595_v54 = vor.u32 %v2594_v49, %v2593_v60 }
 0x1c2   :  { %vm2596_vm14 = vcmp.lt.s32.totalorder %v5286_v4, 1  ;;  %v3811_v35 = vadd.s32 4294967294, %v968_v59  ;;  %vm2598_vm15 = vcmp.lt.s32.totalorder %v5286_v4, 3  ;;  %vm2599_vm0 = vcmp.lt.s32.totalorder %v5286_v4, 4 }
 0x1c3   :  { %v2604_v63 = vsel %vm2596_vm14, %v2583_v39, %v2586_v22  ;;  %v2601_v28 = vsel %vm2599_vm0, %v2589_v47, 2102212464  ;;  %v2605_v46 = vsel %vm2599_vm0, %v2592_v43, 920167782  ;;  %v2608_v12 = vsel %vm2596_vm14, %v2586_v22, %v2589_v47 }
 0x1c4   :  { %v2609_v8 = vsel %vm2599_vm0, %v2595_v54, 1326507024  ;;  %vm3812_vm1 = vcmp.lt.s32.totalorder %v3811_v35, 0  ;;  %vm2597_vm2 = vcmp.lt.s32.totalorder %v5286_v4, 2  ;;  %v2606_v37 = vsel %vm2598_vm15, %v2589_v47, %v2605_v46 }
 0x1c5   :  { %v2610_v7 = vsel %vm2598_vm15, %v2592_v43, %v2609_v8  ;;  %vm2347_vm3 = vcmp.lt.s32.totalorder %v5271_v24, 2  ;;  %v971_v40 = vsel %vm3812_vm1, 0, %v3811_v35  ;;  %v2600_v30 = vsel %vm2596_vm14, %v2580_v18, %v2583_v39 }
 0x1c6   :  { %v2607_v31 = vsel %vm2597_vm2, %v2604_v63, %v2606_v37  ;;  %v2611_v16 = vsel %vm2597_vm2, %v2608_v12, %v2610_v7  ;;  %vm2344_vm4 = vweird.f32 %v5014_v11  ;;  %v972_v1 = vsub.s32 32, %v971_v40 }
 0x1c7   :  { %v976_v45 = vsub.s32 4294967266, %v971_v40  ;;  %v2602_v14 = vsel %vm2598_vm15, %v2586_v22, %v2601_v28  ;;  %v806_v42 = vadd.s32 1, %v3805_v61  ;;  %v973_v58 = vshll.u32 %v5284_v51, %v971_v40 }
 0x1c8   :  { %v5331_v36 = vmul.u32.u64.low %v5282_v6, %v2611_v16  ;;  %v5332_v0 = vmul.u32.u64.high %v5282_v6, %v2611_v16, %v5331_v36  ;;  %v5335_v57 = vmul.u32.u64.low %v5282_v6, %v2607_v31  ;;  %v5336_v41 = vmul.u32.u64.high %v5282_v6, %v2607_v31, %v5335_v57 }
 0x1c9   :  { %v974_v33 = vshrl.u32 %v956_v62, %v972_v1  ;;  %v977_v48 = vadd.s32 127, %v976_v45  ;;  %vm807_vm5 = vcmp.gt.s32.totalorder %v806_v42, 0  ;;  %vm2348_vm6 = vcmp.eq.s32.totalorder %v5271_v24, 0 }
 0x1ca   :  { %v4187_v3 = vpop.eup %4186  ;;  %vm2351_vm7 = vcmp.eq.s32.totalorder %v5271_v24, 2  ;;  %v2603_v39 = vsel %vm2597_vm2, %v2600_v30, %v2602_v14  ;;  %v808_v20 = vsel %vm807_vm5, %v806_v42, 0  ;;  %v804_v51 = vor.u32 8388608, %v5309_v17 }
 0x1cb   :  { %v4189_v56 = vpop.eup %4188  ;;  %v2352_v50 = vxor.u32 2147483648, %v4187_v3  ;;  %v975_v22 = vor.u32 %v974_v33, %v973_v58  ;;  %v978_v47 = vshll.u32 %v977_v48, 23  ;;  %v993_v43 = vadd.s32 3, %v989_v9 }
 0x1cc   :  { %v2349_v62 = vxor.u32 2147483648, %v4189_v56  ;;  %vm2621_vm8 = vc.u32 %v5332_v0, %v5335_v57  ;;  %v2622_v60 = vadd.s32 1, %v5336_v41  ;;  %v2619_v61 = vmul.u32 %v5282_v6, %v2603_v39 }
 0x1cd   :  { %v2353_v49 = vsel %vm2351_vm7, %v2352_v50, %v4189_v56  ;;  %v979_v59 = vor.u32 4788187, %v978_v47  ;;  %v810_v4 = vand.u32 31, %v808_v20  ;;  %v982_v54 = vcvt.s32.f32 %v975_v22 }
 0x1ce   :  { %v2350_v18 = vsel %vm2348_vm6, %v4187_v3, %v2349_v62  ;;  %v2623_v35 = vsel %vm2621_vm8, %v2622_v60, %v5336_v41  ;;  %v5356_v17 = vadd.f32 %v5010_v27, %v4874_v2  ;;  %v5362_v12 = vand.u32 3, %v993_v43 }
 0x1cf   :  { %v2354_v9 = vsel %vm2347_vm3, %v2350_v18, %v2353_v49  ;;  %v980_v63 = vand.u32 2147483647, %v979_v59  ;;  %v2624_v28 = vadd.s32 %v2623_v35, %v2619_v61  ;;  %v811_v46 = vsub.s32 32, %v810_v4 }
 0x1d0   :  { %v2355_v6 = vsel %vm2344_vm4, nan, %v2354_v9  ;;  %v809_v8 = vshrl.u32 %v808_v20, 5  ;;  %v813_v37 = vshll.u32 %v4315_v15, %v810_v4  ;;  %v816_v30 = vshll.u32 %v4316_v19, %v810_v4 }
 0x1d1   :  { %3726 = vst [vmem:[#allocation2 + $0x90] sm:$0xff] %v2355_v6  ;;  %v983_v7 = vmul.f32 %v982_v54, %v980_v63  ;;  %v2625_v40 = vadd.s32 536870912, %v2624_v28  ;;  %v814_v2 = vshrl.u32 %v4316_v19, %v811_v46  ;;  %v817_v24 = vshrl.u32 %v4317_v21, %v811_v46 }
 0x1d2   :  { %v819_v31 = vshll.u32 %v4317_v21, %v810_v4  ;;  %v820_v16 = vshrl.u32 %v4318_v23, %v811_v46  ;;  %v823_v11 = vshrl.u32 %v4319_v25, %v811_v46  ;;  %v822_v42 = vshll.u32 %v4318_v23, %v810_v4 }
 0x1d3   :  { %v984_v1 = vxor.u32 2147483648, %v983_v7  ;;  %v2626_v45 = vshrl.u32 %v2625_v40, 30  ;;  %v815_v14 = vor.u32 %v814_v2, %v813_v37  ;;  %v818_v36 = vor.u32 %v817_v24, %v816_v30 }
 0x1d4   :  { %v821_v41 = vor.u32 %v820_v16, %v819_v31  ;;  %v825_v58 = vshll.u32 %v4319_v25, %v810_v4  ;;  %v826_v33 = vshrl.u32 %v4320_v32, %v811_v46  ;;  %v824_v39 = vor.u32 %v823_v11, %v822_v42 }
 0x1d5   :  { %v985_v48 = vsel %vm902_vm12, %v984_v1, %v983_v7  ;;  %v2627_v3 = vshll.u32 %v2626_v45, 30  ;;  %v5376_v20 = vshll.u32 %v804_v51, 8  ;;  %vm828_vm9 = vcmp.lt.s32.totalorder %v809_v8, 1 }
 0x1d6   :  { %v988_v56 = vsel %vm5275_vm13, %v5018_v52, %v985_v48  ;;  %v827_v50 = vor.u32 %v826_v33, %v825_v58  ;;  %v2463_v22 = vand.u32 2139095040, %v5356_v17  ;;  %vm829_vm10 = vcmp.lt.s32.totalorder %v809_v8, 2 }
 0x1d7   :  { %4190 = vcosq.f32 %v988_v56  ;;  %v5382_v47 = vsub.s32 %v2624_v28, %v2627_v3  ;;  %vm831_vm11 = vcmp.lt.s32.totalorder %v809_v8, 4  ;;  %v812_v62 = vshrl.u32 %v4315_v15, %v811_v46 }
 0x1d8   :  { %4192 = vsinq.f32 %v988_v56  ;;  %v833_v43 = vsel %vm831_vm11, %v821_v41, 2102212464  ;;  %v836_v51 = vsel %vm828_vm9, %v815_v14, %v818_v36  ;;  %v2650_v49 = vsub.s32 4, %v2626_v45 }
 0x1d9   :  { %v2630_v60 = vsub.s32 0, %v5382_v47  ;;  %vm830_vm12 = vcmp.lt.s32.totalorder %v809_v8, 3  ;;  %v837_v10 = vsel %vm831_vm11, %v824_v39, 920167782  ;;  %v832_v59 = vsel %vm828_vm9, %v812_v62, %v815_v14  ;;  %v5416_v8 = vpop.f32.mrb[8].mxu1 }
 0x1da   :  { %v838_v61 = vsel %vm830_vm12, %v821_v41, %v837_v10  ;;  %v840_v4 = vsel %vm828_vm9, %v818_v36, %v821_v41  ;;  %v841_v18 = vsel %vm831_vm11, %v827_v50, 1326507024  ;;  %v834_v35 = vsel %vm830_vm12, %v818_v36, %v833_v43 }
 0x1db   :  { %v3874_v54 = vmin.u32 %v2630_v60, %v5382_v47  ;;  %v839_v9 = vsel %vm829_vm10, %v836_v51, %v838_v61  ;;  %v842_v63 = vsel %vm830_vm12, %v824_v39, %v841_v18  ;;  %vm2566_vm13 = vcmp.lt.s32.totalorder %v5190_v55, 0 }
 0x1dc   :  { %v843_v28 = vsel %vm829_vm10, %v840_v4, %v842_v63  ;;  %v5394_v46 = vmul.u32.u64.low %v5376_v20, %v839_v9  ;;  %v5395_v6 = vmul.u32.u64.high %v5376_v20, %v839_v9, %v5394_v46  ;;  %v2651_v7 = vsel %vm2566_vm13, %v2650_v49, %v2626_v45 }
 0x1dd   :  { %v2632_v37 = vclz %v3874_v54  ;;  %v2460_v40 = vand.u32 2147483647, %v5356_v17  ;;  %v835_v2 = vsel %vm829_vm10, %v832_v59, %v834_v35  ;;  %v2464_v31 = vshrl.u32 %v2463_v22, 23 }
 0x1de   :  { %v5402_v30 = vmul.u32.u64.low %v5376_v20, %v843_v28  ;;  %v5403_v24 = vmul.u32.u64.high %v5376_v20, %v843_v28, %v5402_v30  ;;  %vm995_vm14 = vcmp.lt.s32.totalorder %v5362_v12, 2  ;;  %vm5408_vm15 = vcmp.le.f32.partialorder %v2564_v44, 0.7853982 }
 0x1df   :  { %v3875_v11 = vadd.s32 4294967294, %v2632_v37  ;;  %v5414_v1 = vadd.f32 %v5010_v27, %v5000_v5  ;;  %vm996_vm0 = vcmp.eq.s32.totalorder %v5362_v12, 0  ;;  %vm999_vm1 = vcmp.eq.s32.totalorder %v5362_v12, 2 }
 0x1e0   :  { %v854_v45 = vadd.s32 1, %v5395_v6  ;;  %v3869_v14 = vadd.s32 4294967169, %v2464_v31  ;;  %v2620_v44 = vadd.s32 %v5335_v57, %v5332_v0  ;;  %v2653_v36 = vsel %vm5408_vm15, 0, %v2651_v7 }
 0x1e1   :  { %v4191_v42 = vpop.eup %4190  ;;  %vm3876_vm2 = vcmp.lt.s32.totalorder %v3875_v11, 0  ;;  %v851_v5 = vmul.u32 %v5376_v20, %v835_v2  ;;  %vm853_vm3 = vc.u32 %v5403_v24, %v5394_v46  ;;  %v2467_v33 = vand.u32 8388607, %v2460_v40 }
 0x1e2   :  { %v4193_v27 = vpop.eup %4192  ;;  %v1000_v41 = vxor.u32 2147483648, %v4191_v42  ;;  %v2635_v58 = vsel %vm3876_vm2, 0, %v3875_v11  ;;  %v1111_v56 = vand.u32 2139095040, %v5414_v1  ;;  %v855_v20 = vsel %vm853_vm3, %v854_v45, %v5395_v6 }
 0x1e3   :  { %v997_v48 = vxor.u32 2147483648, %v4193_v27  ;;  %v2636_v3 = vsub.s32 32, %v2635_v58  ;;  %v2640_v39 = vsub.s32 4294967266, %v2635_v58  ;;  %v2637_v57 = vshll.u32 %v5382_v47, %v2635_v58 }
 0x1e4   :  { %v1001_v0 = vsel %vm999_vm1, %v1000_v41, %v4193_v27  ;;  %v2470_v50 = vadd.s32 1, %v3869_v14  ;;  %v856_v51 = vadd.s32 %v855_v20, %v851_v5  ;;  %vm992_vm4 = vweird.f32 %v5018_v52 }
 0x1e5   :  { %v998_v22 = vsel %vm996_vm0, %v4191_v42, %v997_v48  ;;  %v2638_v62 = vshrl.u32 %v2620_v44, %v2636_v3  ;;  %v2641_v43 = vadd.s32 127, %v2640_v39  ;;  %v2657_v49 = vadd.s32 3, %v2653_v36 }
 0x1e6   :  { %v1002_v60 = vsel %vm995_vm14, %v998_v22, %v1001_v0  ;;  %vm2471_vm5 = vcmp.gt.s32.totalorder %v2470_v50, 0  ;;  %v857_v47 = vadd.s32 536870912, %v856_v51  ;;  %v2468_v4 = vor.u32 8388608, %v2467_v33 }
 0x1e7   :  { %v1003_v10 = vsel %vm992_vm4, nan, %v1002_v60  ;;  %v2639_v59 = vor.u32 %v2638_v62, %v2637_v57  ;;  %v2642_v61 = vshll.u32 %v2641_v43, 23  ;;  %v2472_v18 = vsel %vm2471_vm5, %v2470_v50, 0 }
 0x1e8   :  { %3713 = vst [vmem:[#allocation2 + $0x28] sm:$0xff] %v1003_v10  ;;  %v858_v35 = vshrl.u32 %v857_v47, 30  ;;  %v1112_v9 = vshrl.u32 %v1111_v56, 23  ;;  %v2474_v63 = vand.u32 31, %v2472_v18  ;;  %v5439_v37 = vand.u32 3, %v2657_v49 }
 0x1e9   :  { %v2643_v54 = vor.u32 4788187, %v2642_v61  ;;  %v2646_v6 = vcvt.s32.f32 %v2639_v59  ;;  %vm798_vm6 = vcmp.lt.s32.totalorder %v5263_v38, 0  ;;  %v5443_v12 = vadd.s32 %v5394_v46, %v5403_v24 }
 0x1ea   :  { %v859_v52 = vshll.u32 %v858_v35, 30  ;;  %v2475_v7 = vsub.s32 32, %v2474_v63  ;;  %v5445_v2 = vshll.u32 %v2468_v4, 8  ;;  %v1108_v30 = vand.u32 2147483647, %v5414_v1 }
 0x1eb   :  { %v2644_v28 = vand.u32 2147483647, %v2643_v54  ;;  %v5450_v45 = vshrl.u32 %v2472_v18, 5  ;;  %v3817_v14 = vadd.s32 4294967169, %v1112_v9  ;;  %v882_v42 = vsub.s32 4, %v858_v35 }
 0x1ec   :  { %v5448_v11 = vsub.s32 %v856_v51, %v859_v52  ;;  %v2477_v44 = vshll.u32 %v4315_v15, %v2474_v63  ;;  %v2478_v36 = vshrl.u32 %v4316_v19, %v2475_v7  ;;  %v2481_v5 = vshrl.u32 %v4317_v21, %v2475_v7  ;;  %v5497_v52 = vpop.f32.mrb[9].mxu0 }
 0x1ed   :  { %v2647_v31 = vmul.f32 %v2646_v6, %v2644_v28  ;;  %vm5457_vm7 = vcmp.le.f32.partialorder %v796_v34, 0.7853982  ;;  %v2480_v41 = vshll.u32 %v4316_v19, %v2474_v63  ;;  %v2484_v58 = vshrl.u32 %v4318_v23, %v2475_v7 }
 0x1ee   :  { %v862_v27 = vsub.s32 0, %v5448_v11  ;;  %v2479_v33 = vor.u32 %v2478_v36, %v2477_v44  ;;  %v2483_v48 = vshll.u32 %v4317_v21, %v2474_v63  ;;  %v2486_v3 = vshll.u32 %v4318_v23, %v2474_v63 }
 0x1ef   :  { %v2648_v46 = vxor.u32 2147483648, %v2647_v31  ;;  %v2487_v39 = vshrl.u32 %v4319_v25, %v2475_v7  ;;  %v2482_v0 = vor.u32 %v2481_v5, %v2480_v41  ;;  %v2489_v57 = vshll.u32 %v4319_v25, %v2474_v63 }
 0x1f0   :  { %v3806_v34 = vmin.u32 %v862_v27, %v5448_v11  ;;  %v2485_v50 = vor.u32 %v2484_v58, %v2483_v48  ;;  %v2490_v62 = vshrl.u32 %v4320_v32, %v2475_v7  ;;  %vm2492_vm8 = vcmp.lt.s32.totalorder %v5450_v45, 1 }
 0x1f1   :  { %v2649_v56 = vsel %vm2566_vm13, %v2648_v46, %v2647_v31  ;;  %v2488_v22 = vor.u32 %v2487_v39, %v2486_v3  ;;  %v1118_v51 = vadd.s32 1, %v3817_v14  ;;  %v883_v60 = vsel %vm798_vm6, %v882_v42, %v858_v35 }
 0x1f2   :  { %v2652_v20 = vsel %vm5408_vm15, %v5190_v55, %v2649_v56  ;;  %v864_v43 = vclz %v3806_v34  ;;  %v2476_v49 = vshrl.u32 %v4315_v15, %v2475_v7  ;;  %v2491_v10 = vor.u32 %v2490_v62, %v2489_v57 }
 0x1f3   :  { %4194 = vcosq.f32 %v2652_v20  ;;  %vm2494_vm9 = vcmp.lt.s32.totalorder %v5450_v45, 3  ;;  %vm2495_vm10 = vcmp.lt.s32.totalorder %v5450_v45, 4  ;;  %v2500_v16 = vsel %vm2492_vm8, %v2479_v33, %v2482_v0 }
 0x1f4   :  { %4196 = vsinq.f32 %v2652_v20  ;;  %v3807_v59 = vadd.s32 4294967294, %v864_v43  ;;  %v2497_v61 = vsel %vm2495_vm10, %v2485_v50, 2102212464  ;;  %v2501_v47 = vsel %vm2495_vm10, %v2488_v22, 920167782 }
 0x1f5   :  { %v2504_v4 = vsel %vm2492_vm8, %v2482_v0, %v2485_v50  ;;  %v2505_v18 = vsel %vm2495_vm10, %v2491_v10, 1326507024  ;;  %vm2493_vm12 = vcmp.lt.s32.totalorder %v5450_v45, 2  ;;  %v2502_v54 = vsel %vm2494_vm9, %v2485_v50, %v2501_v47  ;;  %v5527_v45 = vld [vmem:[%s7133_s2] ss:$0 sm:$0xff] }
 0x1f6   :  { %vm3808_vm11 = vcmp.lt.s32.totalorder %v3807_v59, 0  ;;  %v2506_v35 = vsel %vm2494_vm9, %v2488_v22, %v2505_v18  ;;  %vm2660_vm13 = vcmp.eq.s32.totalorder %v5439_v37, 0  ;;  %v885_v63 = vsel %vm5457_vm7, 0, %v883_v60 }
 0x1f7   :  { %v867_v9 = vsel %vm3808_vm11, 0, %v3807_v59  ;;  %v2503_v28 = vsel %vm2493_vm12, %v2500_v16, %v2502_v54  ;;  %v2507_v6 = vsel %vm2493_vm12, %v2504_v4, %v2506_v35  ;;  %vm2659_vm14 = vcmp.lt.s32.totalorder %v5439_v37, 2 }
 0x1f8   :  { %v868_v7 = vsub.s32 32, %v867_v9  ;;  %v872_v31 = vsub.s32 4294967266, %v867_v9  ;;  %v2496_v14 = vsel %vm2492_vm8, %v2476_v49, %v2479_v33  ;;  %v2498_v42 = vsel %vm2494_vm9, %v2482_v0, %v2497_v61 }
 0x1f9   :  { %vm2656_vm15 = vweird.f32 %v5190_v55  ;;  %v5506_v44 = vmul.u32.u64.low %v5445_v2, %v2507_v6  ;;  %v5507_v36 = vmul.u32.u64.high %v5445_v2, %v2507_v6, %v5506_v44  ;;  %v869_v27 = vshll.u32 %v5448_v11, %v867_v9 }
 0x1fa   :  { %v5510_v5 = vmul.u32.u64.low %v5445_v2, %v2503_v28  ;;  %v5511_v46 = vmul.u32.u64.high %v5445_v2, %v2503_v28, %v5510_v5  ;;  %v870_v41 = vshrl.u32 %v5443_v12, %v868_v7  ;;  %v873_v58 = vadd.s32 127, %v872_v31 }
 0x1fb   :  { %vm1119_vm0 = vcmp.gt.s32.totalorder %v1118_v51, 0  ;;  %v889_v33 = vadd.s32 3, %v885_v63  ;;  %v2499_v48 = vsel %vm2493_vm12, %v2496_v14, %v2498_v42  ;;  %v1115_v3 = vand.u32 8388607, %v1108_v30 }
 0x1fc   :  { %v1120_v39 = vsel %vm1119_vm0, %v1118_v51, 0  ;;  %vm2663_vm1 = vcmp.eq.s32.totalorder %v5439_v37, 2  ;;  %v871_v34 = vor.u32 %v870_v41, %v869_v27  ;;  %v874_v0 = vshll.u32 %v873_v58, 23 }
 0x1fd   :  { %v4195_v56 = vpop.eup %4194  ;;  %v1122_v57 = vand.u32 31, %v1120_v39  ;;  %vm2517_vm2 = vc.u32 %v5507_v36, %v5510_v5  ;;  %v2518_v12 = vadd.s32 1, %v5511_v46  ;;  %v5531_v50 = vadd.f32 %v5527_v45, %v5048_v29 }
 0x1fe   :  { %v4197_v20 = vpop.eup %4196  ;;  %v2664_v11 = vxor.u32 2147483648, %v4195_v56  ;;  %v875_v62 = vor.u32 4788187, %v874_v0  ;;  %v2515_v43 = vmul.u32 %v5445_v2, %v2499_v48  ;;  %v5534_v49 = vand.u32 3, %v889_v33 }
 0x1ff   :  { %v2661_v22 = vxor.u32 2147483648, %v4197_v20  ;;  %v1123_v51 = vsub.s32 32, %v1122_v57  ;;  %v2519_v10 = vsel %vm2517_vm2, %v2518_v12, %v5511_v46  ;;  %v1116_v59 = vor.u32 8388608, %v1115_v3 }
 0x200   :  { %v2665_v60 = vsel %vm2663_vm1, %v2664_v11, %v4197_v20  ;;  %v876_v61 = vand.u32 2147483647, %v875_v62  ;;  %v878_v47 = vcvt.s32.f32 %v871_v34  ;;  %v2520_v4 = vadd.s32 %v2519_v10, %v2515_v43 }
 0x201   :  { %v2662_v16 = vsel %vm2660_vm13, %v4195_v56, %v2661_v22  ;;  %v1125_v18 = vshll.u32 %v4315_v15, %v1122_v57  ;;  %v1126_v2 = vshrl.u32 %v4316_v19, %v1123_v51  ;;  %v1129_v54 = vshrl.u32 %v4317_v21, %v1123_v51 }
 0x202   :  { %v2666_v29 = vsel %vm2659_vm14, %v2662_v16, %v2665_v60  ;;  %v879_v9 = vmul.f32 %v878_v47, %v876_v61  ;;  %v2521_v63 = vadd.s32 536870912, %v2520_v4  ;;  %v1132_v28 = vshrl.u32 %v4318_v23, %v1123_v51 }
 0x203   :  { %v2667_v35 = vsel %vm2656_vm15, nan, %v2666_v29  ;;  %v1121_v6 = vshrl.u32 %v1120_v39, 5  ;;  %v1128_v7 = vshll.u32 %v4316_v19, %v1122_v57  ;;  %v1131_v37 = vshll.u32 %v4317_v21, %v1122_v57 }
 0x204   :  { %3729 = vst [vmem:[#allocation2 + $0xa8] sm:$0xff] %v2667_v35  ;;  %v1135_v31 = vshrl.u32 %v4319_v25, %v1123_v51  ;;  %v880_v14 = vxor.u32 2147483648, %v879_v9  ;;  %v2522_v42 = vshrl.u32 %v2521_v63, 30  ;;  %v1127_v44 = vor.u32 %v1126_v2, %v1125_v18 }
 0x205   :  { %v1134_v46 = vshll.u32 %v4318_v23, %v1122_v57  ;;  %v1130_v27 = vor.u32 %v1129_v54, %v1128_v7  ;;  %v1133_v55 = vor.u32 %v1132_v28, %v1131_v37  ;;  %v1137_v41 = vshll.u32 %v4319_v25, %v1122_v57  ;;  %v5572_v54 = vpop.f32.mrb[9].mxu1 }
 0x206   :  { %v1138_v58 = vshrl.u32 %v4320_v32, %v1123_v51  ;;  %v881_v33 = vsel %vm798_vm6, %v880_v14, %v879_v9  ;;  %v2523_v48 = vshll.u32 %v2522_v42, 30  ;;  %v5555_v39 = vshll.u32 %v1116_v59, 8 }
 0x207   :  { %v1136_v3 = vor.u32 %v1135_v31, %v1134_v46  ;;  %v884_v56 = vsel %vm5457_vm7, %v5263_v38, %v881_v33  ;;  %v1124_v34 = vshrl.u32 %v4315_v15, %v1123_v51  ;;  %v2775_v20 = vand.u32 2139095040, %v5531_v50 }
 0x208   :  { %v1139_v0 = vor.u32 %v1138_v58, %v1137_v41  ;;  %4198 = vcosq.f32 %v884_v56  ;;  %v5562_v57 = vsub.s32 %v2520_v4, %v2523_v48  ;;  %vm1140_vm3 = vcmp.lt.s32.totalorder %v1121_v6, 1 }
 0x209   :  { %vm1143_vm4 = vcmp.lt.s32.totalorder %v1121_v6, 4  ;;  %4200 = vsinq.f32 %v884_v56  ;;  %vm1141_vm5 = vcmp.lt.s32.totalorder %v1121_v6, 2  ;;  %v1148_v12 = vsel %vm1140_vm3, %v1127_v44, %v1130_v27 }
 0x20a   :  { %v1145_v11 = vsel %vm1143_vm4, %v1133_v55, 2102212464  ;;  %v2526_v22 = vsub.s32 0, %v5562_v57  ;;  %v2546_v62 = vsub.s32 4, %v2522_v42  ;;  %vm1142_vm6 = vcmp.lt.s32.totalorder %v1121_v6, 3 }
 0x20b   :  { %v1149_v24 = vsel %vm1143_vm4, %v1136_v3, 920167782  ;;  %v1144_v43 = vsel %vm1140_vm3, %v1124_v34, %v1127_v44  ;;  %v1152_v51 = vsel %vm1140_vm3, %v1130_v27, %v1133_v55  ;;  %v1153_v10 = vsel %vm1143_vm4, %v1139_v0, 1326507024 }
 0x20c   :  { %v1150_v60 = vsel %vm1142_vm6, %v1133_v55, %v1149_v24  ;;  %v3870_v59 = vmin.u32 %v2526_v22, %v5562_v57  ;;  %v1146_v16 = vsel %vm1142_vm6, %v1130_v27, %v1145_v11  ;;  %v1154_v47 = vsel %vm1142_vm6, %v1136_v3, %v1153_v10 }
 0x20d   :  { %v1151_v61 = vsel %vm1141_vm5, %v1148_v12, %v1150_v60  ;;  %v1155_v4 = vsel %vm1141_vm5, %v1152_v51, %v1154_v47  ;;  %v2776_v2 = vshrl.u32 %v2775_v20, 23  ;;  %vm5576_vm7 = vcmp.le.f32.partialorder %v2460_v40, 0.7853982 }
 0x20e   :  { %v5569_v29 = vmul.u32.u64.low %v5555_v39, %v1151_v61  ;;  %v5570_v18 = vmul.u32.u64.high %v5555_v39, %v1151_v61, %v5569_v29  ;;  %vm2462_vm8 = vcmp.lt.s32.totalorder %v5356_v17, 0  ;;  %v2528_v9 = vclz %v3870_v59 }
 0x20f   :  { %vm888_vm9 = vweird.f32 %v5263_v38  ;;  %v2547_v63 = vsel %vm2462_vm8, %v2546_v62, %v2522_v42  ;;  %v5585_v28 = vmul.u32.u64.low %v5555_v39, %v1155_v4  ;;  %v5586_v7 = vmul.u32.u64.high %v5555_v39, %v1155_v4, %v5585_v28 }
 0x210   :  { %v3881_v37 = vadd.s32 4294967169, %v2776_v2  ;;  %v3871_v31 = vadd.s32 4294967294, %v2528_v9  ;;  %v1147_v14 = vsel %vm1141_vm5, %v1144_v43, %v1146_v16  ;;  %v2772_v40 = vand.u32 2147483647, %v5531_v50 }
 0x211   :  { %v5592_v44 = vadd.f32 %v5527_v45, %v5140_v53  ;;  %vm891_vm10 = vcmp.lt.s32.totalorder %v5534_v49, 2  ;;  %vm892_vm11 = vcmp.eq.s32.totalorder %v5534_v49, 0  ;;  %v1166_v42 = vadd.s32 1, %v5570_v18 }
 0x212   :  { %v2782_v46 = vadd.s32 1, %v3881_v37  ;;  %v4199_v27 = vpop.eup %4198  ;;  %vm895_vm12 = vcmp.eq.s32.totalorder %v5534_v49, 2  ;;  %v2516_v6 = vadd.s32 %v5510_v5, %v5507_v36  ;;  %vm3872_vm13 = vcmp.lt.s32.totalorder %v3871_v31, 0 }
 0x213   :  { %v2549_v55 = vsel %vm5576_vm7, 0, %v2547_v63  ;;  %v4201_v41 = vpop.eup %4200  ;;  %v896_v53 = vxor.u32 2147483648, %v4199_v27  ;;  %v2531_v58 = vsel %vm3872_vm13, 0, %v3871_v31  ;;  %v1163_v33 = vmul.u32 %v5555_v39, %v1147_v14 }
 0x214   :  { %vm1165_vm14 = vc.u32 %v5586_v7, %v5569_v29  ;;  %v893_v48 = vxor.u32 2147483648, %v4201_v41  ;;  %v2532_v3 = vsub.s32 32, %v2531_v58  ;;  %v2536_v56 = vsub.s32 4294967266, %v2531_v58 }
 0x215   :  { %v2779_v34 = vand.u32 8388607, %v2772_v40  ;;  %v897_v0 = vsel %vm895_vm12, %v896_v53, %v4201_v41  ;;  %v2533_v36 = vshll.u32 %v5562_v57, %v2531_v58  ;;  %v1167_v5 = vsel %vm1165_vm14, %v1166_v42, %v5570_v18 }
 0x216   :  { %vm2783_vm15 = vcmp.gt.s32.totalorder %v2782_v46, 0  ;;  %v894_v20 = vsel %vm892_vm11, %v4199_v27, %v893_v48  ;;  %v2534_v11 = vshrl.u32 %v2516_v6, %v2532_v3  ;;  %v2537_v12 = vadd.s32 127, %v2536_v56 }
 0x217   :  { %v1168_v39 = vadd.s32 %v1167_v5, %v1163_v33  ;;  %v898_v22 = vsel %vm891_vm10, %v894_v20, %v897_v0  ;;  %v2553_v62 = vadd.s32 3, %v2549_v55  ;;  %v2784_v24 = vsel %vm2783_vm15, %v2782_v46, 0 }
 0x218   :  { %v1004_v43 = vand.u32 2147483647, %v5592_v44  ;;  %v899_v60 = vsel %vm888_vm9, nan, %v898_v22  ;;  %v2535_v57 = vor.u32 %v2534_v11, %v2533_v36  ;;  %v2538_v51 = vshll.u32 %v2537_v12, 23 }
 0x219   :  { %v1169_v10 = vadd.s32 536870912, %v1168_v39  ;;  %3712 = vst [vmem:[#allocation2 + $0x20] sm:$0xff] %v899_v60  ;;  %v2780_v59 = vor.u32 8388608, %v2779_v34  ;;  %v2786_v16 = vand.u32 31, %v2784_v24  ;;  %v5617_v4 = vand.u32 3, %v2553_v62 }
 0x21a   :  { %v2539_v61 = vor.u32 4788187, %v2538_v51  ;;  %v1007_v18 = vand.u32 2139095040, %v5592_v44  ;;  %v5622_v2 = vand.u32 8388607, %v1004_v43  ;;  %v2542_v9 = vcvt.s32.f32 %v2535_v57 }
 0x21b   :  { %v5615_v47 = vshrl.u32 %v1169_v10, 30  ;;  %v2787_v49 = vsub.s32 32, %v2786_v16  ;;  %v5625_v63 = vadd.s32 %v5569_v29, %v5586_v7  ;;  %v5631_v42 = vshll.u32 %v2780_v59, 8 }
 0x21c   :  { %v2540_v38 = vand.u32 2147483647, %v2539_v61  ;;  %v2789_v6 = vshll.u32 %v4315_v15, %v2786_v16  ;;  %v2785_v41 = vshrl.u32 %v2784_v24, 5  ;;  %v2792_v29 = vshll.u32 %v4316_v19, %v2786_v16 }
 0x21d   :  { %v1171_v28 = vshll.u32 %v5615_v47, 30  ;;  %v2790_v37 = vshrl.u32 %v4316_v19, %v2787_v49  ;;  %v2793_v31 = vshrl.u32 %v4317_v21, %v2787_v49  ;;  %v2796_v14 = vshrl.u32 %v4318_v23, %v2787_v49 }
 0x21e   :  { %v2543_v46 = vmul.f32 %v2542_v9, %v2540_v38  ;;  %v2799_v55 = vshrl.u32 %v4319_v25, %v2787_v49  ;;  %v2795_v7 = vshll.u32 %v4317_v21, %v2786_v16  ;;  %v1008_v53 = vshrl.u32 %v1007_v18, 23 }
 0x21f   :  { %v5633_v27 = vsub.s32 %v1168_v39, %v1171_v28  ;;  %v2791_v48 = vor.u32 %v2790_v37, %v2789_v6  ;;  %v2798_v3 = vshll.u32 %v4318_v23, %v2786_v16  ;;  %v2794_v56 = vor.u32 %v2793_v31, %v2792_v29 }
 0x220   :  { %v2544_v58 = vxor.u32 2147483648, %v2543_v46  ;;  %v2797_v34 = vor.u32 %v2796_v14, %v2795_v7  ;;  %v2801_v0 = vshll.u32 %v4319_v25, %v2786_v16  ;;  %v2802_v36 = vshrl.u32 %v4320_v32, %v2787_v49 }
 0x221   :  { %v1174_v33 = vsub.s32 0, %v5633_v27  ;;  %v2800_v11 = vor.u32 %v2799_v55, %v2798_v3  ;;  %v1012_v12 = vor.u32 8388608, %v5622_v2  ;;  %v2788_v22 = vshrl.u32 %v4315_v15, %v2787_v49 }
 0x222   :  { %v2545_v5 = vsel %vm2462_vm8, %v2544_v58, %v2543_v46  ;;  %v2803_v62 = vor.u32 %v2802_v36, %v2801_v0  ;;  %v3813_v24 = vadd.s32 4294967169, %v1008_v53  ;;  %vm2804_vm0 = vcmp.lt.s32.totalorder %v2785_v41, 1 }
 0x223   :  { %v3818_v20 = vmin.u32 %v1174_v33, %v5633_v27  ;;  %v2548_v39 = vsel %vm5576_vm7, %v5356_v17, %v2545_v5  ;;  %vm2807_vm1 = vcmp.lt.s32.totalorder %v2785_v41, 4  ;;  %vm1110_vm2 = vcmp.lt.s32.totalorder %v5414_v1, 0  ;;  %v5666_v33 = vpop.f32.mrb[10].mxu0 }
 0x224   :  { %4202 = vcosq.f32 %v2548_v39  ;;  %vm2805_vm3 = vcmp.lt.s32.totalorder %v2785_v41, 2  ;;  %v2809_v57 = vsel %vm2807_vm1, %v2797_v34, 2102212464  ;;  %v2812_v51 = vsel %vm2804_vm0, %v2791_v48, %v2794_v56 }
 0x225   :  { %v1176_v60 = vclz %v3818_v20  ;;  %4204 = vsinq.f32 %v2548_v39  ;;  %vm2806_vm4 = vcmp.lt.s32.totalorder %v2785_v41, 3  ;;  %v2813_v59 = vsel %vm2807_vm1, %v2800_v11, 920167782 }
 0x226   :  { %v2816_v16 = vsel %vm2804_vm0, %v2794_v56, %v2797_v34  ;;  %v2808_v35 = vsel %vm2804_vm0, %v2788_v22, %v2791_v48  ;;  %v2814_v61 = vsel %vm2806_vm4, %v2797_v34, %v2813_v59  ;;  %v2817_v18 = vsel %vm2807_vm1, %v2803_v62, 1326507024 }
 0x227   :  { %v3819_v10 = vadd.s32 4294967294, %v1176_v60  ;;  %v1014_v49 = vadd.s32 1, %v3813_v24  ;;  %v2810_v2 = vsel %vm2806_vm4, %v2794_v56, %v2809_v57  ;;  %v2815_v38 = vsel %vm2805_vm3, %v2812_v51, %v2814_v61 }
 0x228   :  { %v2818_v9 = vsel %vm2806_vm4, %v2800_v11, %v2817_v18  ;;  %v5655_v31 = vmul.u32.u64.low %v5631_v42, %v2815_v38  ;;  %v5656_v14 = vmul.u32.u64.high %v5631_v42, %v2815_v38, %v5655_v31  ;;  %v1194_v55 = vsub.s32 4, %v5615_v47 }
 0x229   :  { %vm3820_vm5 = vcmp.lt.s32.totalorder %v3819_v10, 0  ;;  %v2819_v37 = vsel %vm2805_vm3, %v2816_v16, %v2818_v9  ;;  %vm1015_vm6 = vcmp.gt.s32.totalorder %v1014_v49, 0  ;;  %vm2552_vm7 = vweird.f32 %v5356_v17 }
 0x22a   :  { %v1179_v28 = vsel %vm3820_vm5, 0, %v3819_v10  ;;  %v2811_v29 = vsel %vm2805_vm3, %v2808_v35, %v2810_v2  ;;  %v5663_v7 = vmul.u32.u64.low %v5631_v42, %v2819_v37  ;;  %v5664_v53 = vmul.u32.u64.high %v5631_v42, %v2819_v37, %v5663_v7 }
 0x22b   :  { %v1180_v46 = vsub.s32 32, %v1179_v28  ;;  %v1184_v6 = vsub.s32 4294967266, %v1179_v28  ;;  %v1016_v58 = vsel %vm1015_vm6, %v1014_v49, 0  ;;  %v1181_v48 = vshll.u32 %v5633_v27, %v1179_v28 }
 0x22c   :  { %v1018_v34 = vand.u32 31, %v1016_v58  ;;  %vm2555_vm8 = vcmp.lt.s32.totalorder %v5617_v4, 2  ;;  %vm2556_vm9 = vcmp.eq.s32.totalorder %v5617_v4, 0  ;;  %vm5674_vm10 = vcmp.le.f32.partialorder %v1108_v30, 0.7853982 }
 0x22d   :  { %v1182_v3 = vshrl.u32 %v5625_v63, %v1180_v46  ;;  %v1185_v56 = vadd.s32 127, %v1184_v6  ;;  %v2830_v0 = vadd.s32 1, %v5656_v14  ;;  %vm2559_vm11 = vcmp.eq.s32.totalorder %v5617_v4, 2 }
 0x22e   :  { %v4203_v36 = vpop.eup %4202  ;;  %v1195_v63 = vsel %vm1110_vm2, %v1194_v55, %v5615_v47  ;;  %v2827_v39 = vmul.u32 %v5631_v42, %v2811_v29  ;;  %vm2829_vm12 = vc.u32 %v5664_v53, %v5655_v31  ;;  %v1019_v30 = vsub.s32 32, %v1018_v34 }
 0x22f   :  { %v1183_v27 = vor.u32 %v1182_v3, %v1181_v48  ;;  %v1186_v5 = vshll.u32 %v1185_v56, 23  ;;  %v4205_v20 = vpop.eup %4204  ;;  %v2560_v11 = vxor.u32 2147483648, %v4203_v36  ;;  %v2831_v24 = vsel %vm2829_vm12, %v2830_v0, %v5656_v14 }
 0x230   :  { %v2557_v22 = vxor.u32 2147483648, %v4205_v20  ;;  %v5687_v60 = vshll.u32 %v1012_v12, 8  ;;  %v1197_v51 = vsel %vm5674_vm10, 0, %v1195_v63  ;;  %v2832_v10 = vadd.s32 %v2831_v24, %v2827_v39 }
 0x231   :  { %v1187_v62 = vor.u32 4788187, %v1186_v5  ;;  %v2561_v57 = vsel %vm2559_vm11, %v2560_v11, %v4205_v20  ;;  %v5693_v47 = vadd.f32 %v5527_v45, %v5221_v26  ;;  %v1190_v16 = vcvt.s32.f32 %v1183_v27 }
 0x232   :  { %v2558_v42 = vsel %vm2556_vm9, %v4203_v36, %v2557_v22  ;;  %v5697_v35 = vshrl.u32 %v1016_v58, 5  ;;  %v2833_v61 = vadd.s32 536870912, %v2832_v10  ;;  %v1022_v18 = vshrl.u32 %v4316_v19, %v1019_v30 }
 0x233   :  { %v1188_v59 = vand.u32 2147483647, %v1187_v62  ;;  %v2562_v12 = vsel %vm2555_vm8, %v2558_v42, %v2561_v57  ;;  %v1025_v49 = vshrl.u32 %v4317_v21, %v1019_v30  ;;  %v1021_v38 = vshll.u32 %v4315_v15, %v1018_v34 }
 0x234   :  { %v2563_v2 = vsel %vm2552_vm7, nan, %v2562_v12  ;;  %v1028_v9 = vshrl.u32 %v4318_v23, %v1019_v30  ;;  %v2834_v28 = vshrl.u32 %v2833_v61, 30  ;;  %v1024_v37 = vshll.u32 %v4316_v19, %v1018_v34 }
 0x235   :  { %v1191_v26 = vmul.f32 %v1190_v16, %v1188_v59  ;;  %3728 = vst [vmem:[#allocation2 + $0xa0] sm:$0xff] %v2563_v2  ;;  %v1027_v4 = vshll.u32 %v4317_v21, %v1018_v34  ;;  %v1031_v14 = vshrl.u32 %v4319_v25, %v1019_v30  ;;  %v1030_v6 = vshll.u32 %v4318_v23, %v1018_v34 }
 0x236   :  { %v1033_v55 = vshll.u32 %v4319_v25, %v1018_v34  ;;  %v1034_v17 = vshrl.u32 %v4320_v32, %v1019_v30  ;;  %v1201_v29 = vadd.s32 3, %v1197_v51  ;;  %v2835_v7 = vshll.u32 %v2834_v28, 30 }
 0x237   :  { %v1192_v46 = vxor.u32 2147483648, %v1191_v26  ;;  %v1023_v58 = vor.u32 %v1022_v18, %v1021_v38  ;;  %v1026_v48 = vor.u32 %v1025_v49, %v1024_v37  ;;  %v1029_v56 = vor.u32 %v1028_v9, %v1027_v4 }
 0x238   :  { %v1032_v0 = vor.u32 %v1031_v14, %v1030_v6  ;;  %v1035_v36 = vor.u32 %v1034_v17, %v1033_v55  ;;  %v5718_v5 = vsub.s32 %v2832_v10, %v2835_v7  ;;  %v1020_v34 = vshrl.u32 %v4315_v15, %v1019_v30 }
 0x239   :  { %v1193_v3 = vsel %vm1110_vm2, %v1192_v46, %v1191_v26  ;;  %v2671_v63 = vand.u32 2139095040, %v5693_v47  ;;  %vm1036_vm13 = vcmp.lt.s32.totalorder %v5697_v35, 1  ;;  %vm1037_vm14 = vcmp.lt.s32.totalorder %v5697_v35, 2 }
 0x23a   :  { %v1196_v27 = vsel %vm5674_vm10, %v5414_v1, %v1193_v3  ;;  %vm1038_vm15 = vcmp.lt.s32.totalorder %v5697_v35, 3  ;;  %v2838_v20 = vsub.s32 0, %v5718_v5  ;;  %vm1039_vm0 = vcmp.lt.s32.totalorder %v5697_v35, 4 }
 0x23b   :  { %4206 = vcosq.f32 %v1196_v27  ;;  %v1044_v41 = vsel %vm1036_vm13, %v1023_v58, %v1026_v48  ;;  %v1041_v11 = vsel %vm1039_vm0, %v1029_v56, 2102212464  ;;  %v1045_v39 = vsel %vm1039_vm0, %v1032_v0, 920167782 }
 0x23c   :  { %4208 = vsinq.f32 %v1196_v27  ;;  %v1048_v30 = vsel %vm1036_vm13, %v1026_v48, %v1029_v56  ;;  %v1049_v22 = vsel %vm1039_vm0, %v1035_v36, 1326507024  ;;  %v3882_v62 = vmin.u32 %v2838_v20, %v5718_v5 }
 0x23d   :  { %v2858_v24 = vsub.s32 4, %v2834_v28  ;;  %v1046_v57 = vsel %vm1038_vm15, %v1029_v56, %v1045_v39  ;;  %v1050_v51 = vsel %vm1038_vm15, %v1032_v0, %v1049_v22  ;;  %v1202_v10 = vand.u32 3, %v1201_v29 }
 0x23e   :  { %v1047_v42 = vsel %vm1037_vm14, %v1044_v41, %v1046_v57  ;;  %v1051_v59 = vsel %vm1037_vm14, %v1048_v30, %v1050_v51  ;;  %v2672_v16 = vshrl.u32 %v2671_v63, 23  ;;  %vm2774_vm1 = vcmp.lt.s32.totalorder %v5531_v50, 0 }
 0x23f   :  { %v2840_v12 = vclz %v3882_v62  ;;  %v1040_v61 = vsel %vm1036_vm13, %v1020_v34, %v1023_v58  ;;  %v1042_v18 = vsel %vm1038_vm15, %v1026_v48, %v1041_v11  ;;  %vm1200_vm2 = vweird.f32 %v5414_v1 }
 0x240   :  { %v5746_v49 = vmul.u32.u64.low %v5687_v60, %v1051_v59  ;;  %v5747_v2 = vmul.u32.u64.high %v5687_v60, %v1051_v59, %v5746_v49  ;;  %v5750_v26 = vmul.u32.u64.low %v5687_v60, %v1047_v42  ;;  %v5751_v38 = vmul.u32.u64.high %v5687_v60, %v1047_v42, %v5750_v26 }
 0x241   :  { %vm5757_vm3 = vcmp.le.f32.partialorder %v2772_v40, 0.7853982  ;;  %v3883_v37 = vadd.s32 4294967294, %v2840_v12  ;;  %v2859_v4 = vsel %vm2774_vm1, %v2858_v24, %v2834_v28  ;;  %v3877_v14 = vadd.s32 4294967169, %v2672_v16 }
 0x242   :  { %vm1203_vm4 = vcmp.lt.s32.totalorder %v1202_v10, 2  ;;  %vm1204_vm5 = vcmp.eq.s32.totalorder %v1202_v10, 0  ;;  %vm1207_vm6 = vcmp.eq.s32.totalorder %v1202_v10, 2  ;;  %v1043_v46 = vsel %vm1037_vm14, %v1040_v61, %v1042_v18 }
 0x243   :  { %v2828_v6 = vadd.s32 %v5655_v31, %v5664_v53  ;;  %vm3884_vm7 = vcmp.lt.s32.totalorder %v3883_v37, 0  ;;  %v2668_v40 = vand.u32 2147483647, %v5693_v47  ;;  %v2678_v55 = vadd.s32 1, %v3877_v14 }
 0x244   :  { %v2843_v29 = vsel %vm3884_vm7, 0, %v3883_v37  ;;  %v2861_v7 = vsel %vm5757_vm3, 0, %v2859_v4  ;;  %vm1061_vm8 = vc.u32 %v5747_v2, %v5750_v26  ;;  %v1062_v28 = vadd.s32 1, %v5751_v38  ;;  %v5795_v37 = vpop.f32.mrb[10].mxu1 }
 0x245   :  { %v4207_v17 = vpop.eup %4206  ;;  %v2844_v48 = vsub.s32 32, %v2843_v29  ;;  %v2848_v3 = vsub.s32 4294967266, %v2843_v29  ;;  %v1059_v31 = vmul.u32 %v5687_v60, %v1043_v46  ;;  %v2845_v56 = vshll.u32 %v5718_v5, %v2843_v29 }
 0x246   :  { %v4209_v58 = vpop.eup %4208  ;;  %v1208_v35 = vxor.u32 2147483648, %v4207_v17  ;;  %v1063_v0 = vsel %vm1061_vm8, %v1062_v28, %v5751_v38  ;;  %vm2679_vm9 = vcmp.gt.s32.totalorder %v2678_v55, 0  ;;  %v2865_v41 = vadd.s32 3, %v2861_v7 }
 0x247   :  { %v1205_v53 = vxor.u32 2147483648, %v4209_v58  ;;  %v2846_v27 = vshrl.u32 %v2828_v6, %v2844_v48  ;;  %v2849_v34 = vadd.s32 127, %v2848_v3  ;;  %v1064_v63 = vadd.s32 %v1063_v0, %v1059_v31 }
 0x248   :  { %v1209_v36 = vsel %vm1207_vm6, %v1208_v35, %v4209_v58  ;;  %v2675_v11 = vand.u32 8388607, %v2668_v40  ;;  %v2680_v39 = vsel %vm2679_vm9, %v2678_v55, 0  ;;  %v5785_v61 = vand.u32 3, %v2865_v41 }
 0x249   :  { %v1206_v20 = vsel %vm1204_vm5, %v4207_v17, %v1205_v53  ;;  %v2847_v30 = vor.u32 %v2846_v27, %v2845_v56  ;;  %v2850_v22 = vshll.u32 %v2849_v34, 23  ;;  %v1065_v5 = vadd.s32 536870912, %v1064_v63 }
 0x24a   :  { %v1210_v60 = vsel %vm1203_vm4, %v1206_v20, %v1209_v36  ;;  %v2682_v24 = vand.u32 31, %v2680_v39  ;;  %v2676_v42 = vor.u32 8388608, %v2675_v11  ;;  %v5793_v38 = vadd.f32 %v5527_v45, %v5340_v13 }
 0x24b   :  { %v1211_v62 = vsel %vm1200_vm2, nan, %v1210_v60  ;;  %v2851_v57 = vor.u32 4788187, %v2850_v22  ;;  %v5783_v51 = vshrl.u32 %v1065_v5, 30  ;;  %v2854_v12 = vcvt.s32.f32 %v2847_v30 }
 0x24c   :  { %3715 = vst [vmem:[#allocation2 + $0x38] sm:$0xff] %v1211_v62  ;;  %v2683_v59 = vsub.s32 32, %v2682_v24  ;;  %v2685_v46 = vshll.u32 %v4315_v15, %v2682_v24  ;;  %v2681_v55 = vshrl.u32 %v2680_v39, 5  ;;  %v2688_v17 = vshll.u32 %v4316_v19, %v2682_v24 }
 0x24d   :  { %v2852_v16 = vand.u32 2147483647, %v2851_v57  ;;  %v1067_v10 = vshll.u32 %v5783_v51, 30  ;;  %v2691_v29 = vshll.u32 %v4317_v21, %v2682_v24  ;;  %v5803_v7 = vshll.u32 %v2676_v42, 8 }
 0x24e   :  { %v2686_v18 = vshrl.u32 %v4316_v19, %v2683_v59  ;;  %v2689_v49 = vshrl.u32 %v4317_v21, %v2683_v59  ;;  %v2692_v1 = vshrl.u32 %v4318_v23, %v2683_v59  ;;  %v2695_v6 = vshrl.u32 %v4319_v25, %v2683_v59 }
 0x24f   :  { %v2855_v4 = vmul.f32 %v2854_v12, %v2852_v16  ;;  %v5797_v14 = vsub.s32 %v1064_v63, %v1067_v10  ;;  %v2694_v35 = vshll.u32 %v4318_v23, %v2682_v24  ;;  %v2697_v31 = vshll.u32 %v4319_v25, %v2682_v24 }
 0x250   :  { %v2687_v58 = vor.u32 %v2686_v18, %v2685_v46  ;;  %v2690_v48 = vor.u32 %v2689_v49, %v2688_v17  ;;  %v2693_v3 = vor.u32 %v2692_v1, %v2691_v29  ;;  %v2698_v53 = vshrl.u32 %v4320_v32, %v2683_v59 }
 0x251   :  { %v2856_v28 = vxor.u32 2147483648, %v2855_v4  ;;  %v1070_v13 = vsub.s32 0, %v5797_v14  ;;  %vm1006_vm10 = vcmp.lt.s32.totalorder %v5592_v44, 0  ;;  %v2696_v36 = vor.u32 %v2695_v6, %v2694_v35 }
 0x252   :  { %v1319_v27 = vand.u32 2139095040, %v5793_v38  ;;  %v1090_v63 = vsub.s32 4, %v5783_v51  ;;  %v2684_v20 = vshrl.u32 %v4315_v15, %v2683_v59  ;;  %v2699_v41 = vor.u32 %v2698_v53, %v2697_v31 }
 0x253   :  { %v2857_v56 = vsel %vm2774_vm1, %v2856_v28, %v2855_v4  ;;  %v3814_v0 = vmin.u32 %v1070_v13, %v5797_v14  ;;  %vm2700_vm11 = vcmp.lt.s32.totalorder %v2681_v55, 1  ;;  %vm2703_vm12 = vcmp.lt.s32.totalorder %v2681_v55, 4 }
 0x254   :  { %v2860_v34 = vsel %vm5757_vm3, %v5531_v50, %v2857_v56  ;;  %vm5821_vm13 = vcmp.le.f32.partialorder %v1004_v43, 0.7853982  ;;  %vm2701_vm14 = vcmp.lt.s32.totalorder %v2681_v55, 2  ;;  %v2705_v60 = vsel %vm2703_vm12, %v2693_v3, 2102212464 }
 0x255   :  { %4210 = vcosq.f32 %v2860_v34  ;;  %v1072_v11 = vclz %v3814_v0  ;;  %v2708_v9 = vsel %vm2700_vm11, %v2687_v58, %v2690_v48  ;;  %vm2702_vm15 = vcmp.lt.s32.totalorder %v2681_v55, 3 }
 0x256   :  { %4212 = vsinq.f32 %v2860_v34  ;;  %v2709_v22 = vsel %vm2703_vm12, %v2696_v36, 920167782  ;;  %v2712_v5 = vsel %vm2700_vm11, %v2690_v48, %v2693_v3  ;;  %v2704_v62 = vsel %vm2700_vm11, %v2684_v20, %v2687_v58 }
 0x257   :  { %v3815_v30 = vadd.s32 4294967294, %v1072_v11  ;;  %v2710_v24 = vsel %vm2702_vm15, %v2693_v3, %v2709_v22  ;;  %v2713_v57 = vsel %vm2703_vm12, %v2699_v41, 1326507024  ;;  %v1320_v42 = vshrl.u32 %v1319_v27, 23 }
 0x258   :  { %v2706_v59 = vsel %vm2702_vm15, %v2690_v48, %v2705_v60  ;;  %v2711_v16 = vsel %vm2701_vm14, %v2708_v9, %v2710_v24  ;;  %v2714_v12 = vsel %vm2702_vm15, %v2696_v36, %v2713_v57  ;;  %vm2868_vm1 = vcmp.eq.s32.totalorder %v5785_v61, 0 }
 0x259   :  { %vm3816_vm0 = vcmp.lt.s32.totalorder %v3815_v30, 0  ;;  %v2715_v10 = vsel %vm2701_vm14, %v2712_v5, %v2714_v12  ;;  %v5829_v18 = vmul.u32.u64.low %v5803_v7, %v2711_v16  ;;  %v5830_v49 = vmul.u32.u64.high %v5803_v7, %v2711_v16, %v5829_v18 }
 0x25a   :  { %v1075_v43 = vsel %vm3816_vm0, 0, %v3815_v30  ;;  %vm2867_vm2 = vcmp.lt.s32.totalorder %v5785_v61, 2  ;;  %v1060_v1 = vadd.s32 %v5750_v26, %v5747_v2  ;;  %v3825_v6 = vadd.s32 4294967169, %v1320_v42  ;;  %v5846_v26 = vpop.f32.mrb[11].mxu0 }
 0x25b   :  { %v1076_v4 = vsub.s32 32, %v1075_v43  ;;  %v1080_v46 = vsub.s32 4294967266, %v1075_v43  ;;  %vm2864_vm3 = vweird.f32 %v5531_v50  ;;  %v1091_v17 = vsel %vm1006_vm10, %v1090_v63, %v5783_v51 }
 0x25c   :  { %v2707_v29 = vsel %vm2701_vm14, %v2704_v62, %v2706_v59  ;;  %v5842_v28 = vmul.u32.u64.low %v5803_v7, %v2715_v10  ;;  %v5843_v13 = vmul.u32.u64.high %v5803_v7, %v2715_v10, %v5842_v28  ;;  %v1077_v58 = vshll.u32 %v5797_v14, %v1075_v43 }
 0x25d   :  { %v1078_v35 = vshrl.u32 %v1060_v1, %v1076_v4  ;;  %v1081_v48 = vadd.s32 127, %v1080_v46  ;;  %v1326_v2 = vadd.s32 1, %v3825_v6  ;;  %vm2871_vm4 = vcmp.eq.s32.totalorder %v5785_v61, 2 }
 0x25e   :  { %v2726_v3 = vadd.s32 1, %v5830_v49  ;;  %v1316_v31 = vand.u32 2147483647, %v5793_v38  ;;  %v5853_v51 = vadd.f32 %v5527_v45, %v5416_v8  ;;  %v1093_v14 = vsel %vm5821_vm13, 0, %v1091_v17 }
 0x25f   :  { %v4211_v55 = vpop.eup %4210  ;;  %v1079_v53 = vor.u32 %v1078_v35, %v1077_v58  ;;  %v1082_v56 = vshll.u32 %v1081_v48, 23  ;;  %vm1327_vm5 = vcmp.gt.s32.totalorder %v1326_v2, 0  ;;  %v2723_v27 = vmul.u32 %v5803_v7, %v2707_v29 }
 0x260   :  { %v4213_v0 = vpop.eup %4212  ;;  %v2872_v36 = vxor.u32 2147483648, %v4211_v55  ;;  %vm2725_vm6 = vc.u32 %v5843_v13, %v5829_v18  ;;  %v1328_v34 = vsel %vm1327_vm5, %v1326_v2, 0  ;;  %v5863_v41 = vadd.f32 %v5527_v45, %v5497_v52 }
 0x261   :  { %v2869_v63 = vxor.u32 2147483648, %v4213_v0  ;;  %v1083_v20 = vor.u32 4788187, %v1082_v56  ;;  %v2727_v8 = vsel %vm2725_vm6, %v2726_v3, %v5830_v49  ;;  %v1323_v9 = vand.u32 8388607, %v1316_v31 }
 0x262   :  { %v2873_v11 = vsel %vm2871_vm4, %v2872_v36, %v4213_v0  ;;  %v2728_v60 = vadd.s32 %v2727_v8, %v2723_v27  ;;  %v1330_v7 = vand.u32 31, %v1328_v34  ;;  %v1086_v5 = vcvt.s32.f32 %v1079_v53 }
 0x263   :  { %v2870_v30 = vsel %vm2868_vm1, %v4211_v55, %v2869_v63  ;;  %v1084_v22 = vand.u32 2147483647, %v1083_v20  ;;  %v1097_v62 = vadd.s32 3, %v1093_v14  ;;  %v2983_v45 = vand.u32 2139095040, %v5853_v51 }
 0x264   :  { %v2874_v24 = vsel %vm2867_vm2, %v2870_v30, %v2873_v11  ;;  %v2729_v57 = vadd.s32 536870912, %v2728_v60  ;;  %v1331_v52 = vsub.s32 32, %v1330_v7  ;;  %v1333_v16 = vshll.u32 %v4315_v15, %v1330_v7 }
 0x265   :  { %v2875_v42 = vsel %vm2864_vm3, nan, %v2874_v24  ;;  %v1087_v59 = vmul.f32 %v1086_v5, %v1084_v22  ;;  %v1336_v12 = vshll.u32 %v4316_v19, %v1330_v7  ;;  %v1339_v61 = vshll.u32 %v4317_v21, %v1330_v7  ;;  %v5907_v5 = vpop.f32.mrb[11].mxu1 }
 0x266   :  { %3731 = vst [vmem:[#allocation2 + $0xb8] sm:$0xff] %v2875_v42  ;;  %v2730_v43 = vshrl.u32 %v2729_v57, 30  ;;  %v1334_v10 = vshrl.u32 %v4316_v19, %v1331_v52  ;;  %v1337_v49 = vshrl.u32 %v4317_v21, %v1331_v52  ;;  %v1340_v4 = vshrl.u32 %v4318_v23, %v1331_v52 }
 0x267   :  { %v1088_v1 = vxor.u32 2147483648, %v1087_v59  ;;  %v1342_v46 = vshll.u32 %v4318_v23, %v1330_v7  ;;  %v1343_v50 = vshrl.u32 %v4319_v25, %v1331_v52  ;;  %v5884_v6 = vand.u32 3, %v1097_v62 }
 0x268   :  { %vm2670_vm7 = vcmp.lt.s32.totalorder %v5693_v47, 0  ;;  %v2731_v17 = vshll.u32 %v2730_v43, 30  ;;  %v1329_v29 = vshrl.u32 %v1328_v34, 5  ;;  %v1335_v28 = vor.u32 %v1334_v10, %v1333_v16 }
 0x269   :  { %v1089_v58 = vsel %vm1006_vm10, %v1088_v1, %v1087_v59  ;;  %v1338_v35 = vor.u32 %v1337_v49, %v1336_v12  ;;  %v1341_v48 = vor.u32 %v1340_v4, %v1339_v61  ;;  %v1344_v2 = vor.u32 %v1343_v50, %v1342_v46 }
 0x26a   :  { %v1092_v3 = vsel %vm5821_vm13, %v5592_v44, %v1089_v58  ;;  %v5892_v55 = vsub.s32 %v2728_v60, %v2731_v17  ;;  %v1345_v53 = vshll.u32 %v4319_v25, %v1330_v7  ;;  %v1346_v56 = vshrl.u32 %v4320_v32, %v1331_v52 }
 0x26b   :  { %4214 = vcosq.f32 %v1092_v3  ;;  %v1324_v14 = vor.u32 8388608, %v1323_v9  ;;  %v2980_v0 = vand.u32 2147483647, %v5853_v51  ;;  %v2984_v36 = vshrl.u32 %v2983_v45, 23 }
 0x26c   :  { %4216 = vsinq.f32 %v1092_v3  ;;  %vm5899_vm8 = vcmp.le.f32.partialorder %v2668_v40, 0.7853982  ;;  %v2734_v39 = vsub.s32 0, %v5892_v55  ;;  %v1332_v34 = vshrl.u32 %v4315_v15, %v1331_v52 }
 0x26d   :  { %v1347_v63 = vor.u32 %v1346_v56, %v1345_v53  ;;  %v2754_v20 = vsub.s32 4, %v2730_v43  ;;  %vm1348_vm9 = vcmp.lt.s32.totalorder %v1329_v29, 1  ;;  %vm1350_vm10 = vcmp.lt.s32.totalorder %v1329_v29, 3 }
 0x26e   :  { %vm1351_vm11 = vcmp.lt.s32.totalorder %v1329_v29, 4  ;;  %v3878_v8 = vmin.u32 %v2734_v39, %v5892_v55  ;;  %v1356_v60 = vsel %vm1348_vm9, %v1335_v28, %v1338_v35  ;;  %v1360_v40 = vsel %vm1348_vm9, %v1338_v35, %v1341_v48 }
 0x26f   :  { %v1353_v11 = vsel %vm1351_vm11, %v1341_v48, 2102212464  ;;  %v1357_v9 = vsel %vm1351_vm11, %v1344_v2, 920167782  ;;  %v1361_v30 = vsel %vm1351_vm11, %v1347_v63, 1326507024  ;;  %v1352_v24 = vsel %vm1348_vm9, %v1332_v34, %v1335_v28 }
 0x270   :  { %v1358_v7 = vsel %vm1350_vm10, %v1341_v48, %v1357_v9  ;;  %v1364_v22 = vshll.u32 %v1324_v14, 8  ;;  %v2736_v62 = vclz %v3878_v8  ;;  %vm1349_vm12 = vcmp.lt.s32.totalorder %v1329_v29, 2 }
 0x271   :  { %v1354_v57 = vsel %vm1350_vm10, %v1338_v35, %v1353_v11  ;;  %v2755_v52 = vsel %vm2670_vm7, %v2754_v20, %v2730_v43  ;;  %v1359_v45 = vsel %vm1349_vm12, %v1356_v60, %v1358_v7  ;;  %v1362_v42 = vsel %vm1350_vm10, %v1344_v2, %v1361_v30 }
 0x272   :  { %v3889_v59 = vadd.s32 4294967169, %v2984_v36  ;;  %vm1096_vm13 = vweird.f32 %v5592_v44  ;;  %v3879_v16 = vadd.s32 4294967294, %v2736_v62  ;;  %v1363_v12 = vsel %vm1349_vm12, %v1360_v40, %v1362_v42 }
 0x273   :  { %v5914_v10 = vmul.u32.u64.low %v1364_v22, %v1359_v45  ;;  %v5915_v49 = vmul.u32.u64.high %v1364_v22, %v1359_v45, %v5914_v10  ;;  %vm1099_vm14 = vcmp.lt.s32.totalorder %v5884_v6, 2  ;;  %v1355_v61 = vsel %vm1349_vm12, %v1352_v24, %v1354_v57 }
 0x274   :  { %v5919_v1 = vmul.u32.u64.low %v1364_v22, %v1363_v12  ;;  %v5920_v4 = vmul.u32.u64.high %v1364_v22, %v1363_v12, %v5919_v1  ;;  %vm1100_vm15 = vcmp.eq.s32.totalorder %v5884_v6, 0  ;;  %vm1103_vm0 = vcmp.eq.s32.totalorder %v5884_v6, 2 }
 0x275   :  { %vm3880_vm1 = vcmp.lt.s32.totalorder %v3879_v16, 0  ;;  %v2990_v43 = vadd.s32 1, %v3889_v59  ;;  %v4215_v46 = vpop.eup %4214  ;;  %v2724_v50 = vadd.s32 %v5829_v18, %v5843_v13  ;;  %v2757_v29 = vsel %vm5899_vm8, 0, %v2755_v52 }
 0x276   :  { %v2739_v17 = vsel %vm3880_vm1, 0, %v3879_v16  ;;  %v2987_v28 = vand.u32 8388607, %v2980_v0  ;;  %v4217_v58 = vpop.eup %4216  ;;  %v1104_v35 = vxor.u32 2147483648, %v4215_v46  ;;  %v1371_v3 = vmul.u32 %v1364_v22, %v1355_v61 }
 0x277   :  { %v2740_v48 = vsub.s32 32, %v2739_v17  ;;  %v2744_v2 = vsub.s32 4294967266, %v2739_v17  ;;  %v1101_v53 = vxor.u32 2147483648, %v4217_v58  ;;  %v2741_v56 = vshll.u32 %v5892_v55, %v2739_v17 }
 0x278   :  { %vm1373_vm2 = vc.u32 %v5920_v4, %v5914_v10  ;;  %v1374_v18 = vadd.s32 1, %v5915_v49  ;;  %v1105_v13 = vsel %vm1103_vm0, %v1104_v35, %v4217_v58  ;;  %vm2991_vm3 = vcmp.gt.s32.totalorder %v2990_v43, 0 }
 0x279   :  { %v2742_v14 = vshrl.u32 %v2724_v50, %v2740_v48  ;;  %v2745_v36 = vadd.s32 127, %v2744_v2  ;;  %v1102_v39 = vsel %vm1100_vm15, %v4215_v46, %v1101_v53  ;;  %v2761_v34 = vadd.s32 3, %v2757_v29 }
 0x27a   :  { %v1375_v63 = vsel %vm1373_vm2, %v1374_v18, %v5915_v49  ;;  %v2992_v20 = vsel %vm2991_vm3, %v2990_v43, 0  ;;  %v1106_v55 = vsel %vm1099_vm14, %v1102_v39, %v1105_v13  ;;  %v2988_v62 = vor.u32 8388608, %v2987_v28 }
 0x27b   :  { %v2743_v8 = vor.u32 %v2742_v14, %v2741_v56  ;;  %v2746_v11 = vshll.u32 %v2745_v36, 23  ;;  %v1376_v60 = vadd.s32 %v1375_v63, %v1371_v3  ;;  %v1107_v9 = vsel %vm1096_vm13, nan, %v1106_v55 }
 0x27c   :  { %v2994_v7 = vand.u32 31, %v2992_v20  ;;  %3714 = vst [vmem:[#allocation2 + $0x30] sm:$0xff] %v1107_v9  ;;  %v5943_v22 = vand.u32 3, %v2761_v34  ;;  %v1215_v6 = vand.u32 2139095040, %v5863_v41  ;;  %v2993_v42 = vshrl.u32 %v2992_v20, 5 }
 0x27d   :  { %v2747_v40 = vor.u32 4788187, %v2746_v11  ;;  %v1377_v30 = vadd.s32 536870912, %v1376_v60  ;;  %v2750_v52 = vcvt.s32.f32 %v2743_v8  ;;  %v1212_v35 = vand.u32 2147483647, %v5863_v41 }
 0x27e   :  { %v2995_v24 = vsub.s32 32, %v2994_v7  ;;  %v3003_v61 = vshll.u32 %v4317_v21, %v2994_v7  ;;  %v2997_v43 = vshll.u32 %v4315_v15, %v2994_v7  ;;  %v3000_v46 = vshll.u32 %v4316_v19, %v2994_v7 }
 0x27f   :  { %v2748_v57 = vand.u32 2147483647, %v2747_v40  ;;  %v5945_v45 = vshrl.u32 %v1377_v30, 30  ;;  %v3006_v50 = vshll.u32 %v4318_v23, %v2994_v7  ;;  %v3009_v53 = vshll.u32 %v4319_v25, %v2994_v7 }
 0x280   :  { %v2998_v59 = vshrl.u32 %v4316_v19, %v2995_v24  ;;  %v3001_v44 = vshrl.u32 %v4317_v21, %v2995_v24  ;;  %v3004_v16 = vshrl.u32 %v4318_v23, %v2995_v24  ;;  %v3007_v1 = vshrl.u32 %v4319_v25, %v2995_v24 }
 0x281   :  { %v2751_v12 = vmul.f32 %v2750_v52, %v2748_v57  ;;  %v1379_v49 = vshll.u32 %v5945_v45, 30  ;;  %v3010_v17 = vshrl.u32 %v4320_v32, %v2995_v24  ;;  %v5965_v13 = vshll.u32 %v2988_v62, 8 }
 0x282   :  { %v3005_v58 = vor.u32 %v3004_v16, %v3003_v61  ;;  %v2999_v48 = vor.u32 %v2998_v59, %v2997_v43  ;;  %v3002_v2 = vor.u32 %v3001_v44, %v3000_v46  ;;  %v3008_v3 = vor.u32 %v3007_v1, %v3006_v50 }
 0x283   :  { %v2752_v29 = vxor.u32 2147483648, %v2751_v12  ;;  %v5958_v28 = vsub.s32 %v1376_v60, %v1379_v49  ;;  %v1216_v14 = vshrl.u32 %v1215_v6, 23  ;;  %v2996_v39 = vshrl.u32 %v4315_v15, %v2995_v24 }
 0x284   :  { %v3011_v34 = vor.u32 %v3010_v17, %v3009_v53  ;;  %vm3015_vm4 = vcmp.lt.s32.totalorder %v2993_v42, 4  ;;  %vm3012_vm5 = vcmp.lt.s32.totalorder %v2993_v42, 1  ;;  %vm3014_vm6 = vcmp.lt.s32.totalorder %v2993_v42, 3 }
 0x285   :  { %v2753_v56 = vsel %vm2670_vm7, %v2752_v29, %v2751_v12  ;;  %v1382_v18 = vsub.s32 0, %v5958_v28  ;;  %v3017_v20 = vsel %vm3015_vm4, %v3005_v58, 2102212464  ;;  %v3020_v55 = vsel %vm3012_vm5, %v2999_v48, %v3002_v2 }
 0x286   :  { %v2756_v36 = vsel %vm5899_vm8, %v5693_v47, %v2753_v56  ;;  %v3021_v8 = vsel %vm3015_vm4, %v3008_v3, 920167782  ;;  %vm5976_vm7 = vcmp.le.f32.partialorder %v1316_v31, 0.7853982  ;;  %v3016_v60 = vsel %vm3012_vm5, %v2996_v39, %v2999_v48 }
 0x287   :  { %4218 = vcosq.f32 %v2756_v36  ;;  %v3826_v63 = vmin.u32 %v1382_v18, %v5958_v28  ;;  %v3018_v9 = vsel %vm3014_vm6, %v3002_v2, %v3017_v20  ;;  %v3024_v7 = vsel %vm3012_vm5, %v3002_v2, %v3005_v58 }
 0x288   :  { %4220 = vsinq.f32 %v2756_v36  ;;  %vm3013_vm8 = vcmp.lt.s32.totalorder %v2993_v42, 2  ;;  %v3022_v40 = vsel %vm3014_vm6, %v3005_v58, %v3021_v8  ;;  %v3025_v30 = vsel %vm3015_vm4, %v3011_v34, 1326507024 }
 0x289   :  { %v1384_v11 = vclz %v3826_v63  ;;  %v3821_v62 = vadd.s32 4294967169, %v1216_v14  ;;  %v1402_v57 = vsub.s32 4, %v5945_v45  ;;  %v3023_v52 = vsel %vm3013_vm8, %v3020_v55, %v3022_v40  ;;  %v6009_v14 = vpop.f32.mrb[12].mxu0  ;;  %v6017_v55 = vld [vmem:[%s7133_s2] ss:$0 sm:$0xff] }
 0x28a   :  { %v3026_v6 = vsel %vm3014_vm6, %v3008_v3, %v3025_v30  ;;  %v3019_v59 = vsel %vm3013_vm8, %v3016_v60, %v3018_v9  ;;  %v5983_v31 = vmul.u32.u64.low %v5965_v13, %v3023_v52  ;;  %v5984_v16 = vmul.u32.u64.high %v5965_v13, %v3023_v52, %v5983_v31 }
 0x28b   :  { %v3827_v24 = vadd.s32 4294967294, %v1384_v11  ;;  %v3027_v44 = vsel %vm3013_vm8, %v3024_v7, %v3026_v6  ;;  %v1222_v42 = vadd.s32 1, %v3821_v62  ;;  %vm2760_vm10 = vweird.f32 %v5693_v47 }
 0x28c   :  { %v5988_v12 = vmul.u32.u64.low %v5965_v13, %v3027_v44  ;;  %v5989_v49 = vmul.u32.u64.high %v5965_v13, %v3027_v44, %v5988_v12  ;;  %vm2767_vm11 = vcmp.eq.s32.totalorder %v5943_v22, 2  ;;  %vm1318_vm12 = vcmp.lt.s32.totalorder %v5793_v38, 0 }
 0x28d   :  { %vm3828_vm9 = vcmp.lt.s32.totalorder %v3827_v24, 0  ;;  %v1372_v61 = vadd.s32 %v5914_v10, %v5920_v4  ;;  %v1403_v50 = vsel %vm1318_vm12, %v1402_v57, %v5945_v45  ;;  %vm1223_vm13 = vcmp.gt.s32.totalorder %v1222_v42, 0 }
 0x28e   :  { %v1387_v1 = vsel %vm3828_vm9, 0, %v3827_v24  ;;  %v3035_v17 = vmul.u32 %v5965_v13, %v3019_v59  ;;  %v3038_v29 = vadd.s32 1, %v5984_v16  ;;  %v1219_v58 = vand.u32 8388607, %v1212_v35 }
 0x28f   :  { %v1388_v43 = vsub.s32 32, %v1387_v1  ;;  %v1392_v46 = vsub.s32 4294967266, %v1387_v1  ;;  %v1224_v48 = vsel %vm1223_vm13, %v1222_v42, 0  ;;  %v1389_v3 = vshll.u32 %v5958_v28, %v1387_v1 }
 0x290   :  { %vm3037_vm14 = vc.u32 %v5989_v49, %v5983_v31  ;;  %v1405_v45 = vsel %vm5976_vm7, 0, %v1403_v50  ;;  %v1226_v13 = vand.u32 31, %v1224_v48  ;;  %vm2764_vm15 = vcmp.eq.s32.totalorder %v5943_v22, 0 }
 0x291   :  { %v4219_v2 = vpop.eup %4218  ;;  %v1390_v10 = vshrl.u32 %v1372_v61, %v1388_v43  ;;  %v1393_v4 = vadd.s32 127, %v1392_v46  ;;  %v3039_v18 = vsel %vm3037_vm14, %v3038_v29, %v5984_v16  ;;  %v6021_v8 = vadd.f32 %v6017_v55, %v5572_v54 }
 0x292   :  { %v4221_v53 = vpop.eup %4220  ;;  %v2768_v56 = vxor.u32 2147483648, %v4219_v2  ;;  %v3040_v63 = vadd.s32 %v3039_v18, %v3035_v17  ;;  %v1227_v20 = vsub.s32 32, %v1226_v13  ;;  %vm2763_vm0 = vcmp.lt.s32.totalorder %v5943_v22, 2 }
 0x293   :  { %v2765_v36 = vxor.u32 2147483648, %v4221_v53  ;;  %v1391_v39 = vor.u32 %v1390_v10, %v1389_v3  ;;  %v1394_v34 = vshll.u32 %v1393_v4, 23  ;;  %v1409_v40 = vadd.s32 3, %v1405_v45 }
 0x294   :  { %v2769_v28 = vsel %vm2767_vm11, %v2768_v56, %v4221_v53  ;;  %v3041_v9 = vadd.s32 536870912, %v3040_v63  ;;  %v1220_v30 = vor.u32 8388608, %v1219_v58  ;;  %v6026_v62 = vadd.f32 %v6017_v55, %v5666_v33 }
 0x295   :  { %v2766_v11 = vsel %vm2764_vm15, %v4219_v2, %v2765_v36  ;;  %v1395_v60 = vor.u32 4788187, %v1394_v34  ;;  %v1398_v52 = vcvt.s32.f32 %v1391_v39  ;;  %v1225_v54 = vshrl.u32 %v1224_v48, 5 }
 0x296   :  { %v2770_v7 = vsel %vm2763_vm0, %v2766_v11, %v2769_v28  ;;  %v3042_v6 = vshrl.u32 %v3041_v9, 30  ;;  %v1230_v22 = vshrl.u32 %v4316_v19, %v1227_v20  ;;  %v1233_v59 = vshrl.u32 %v4317_v21, %v1227_v20 }
 0x297   :  { %v2771_v24 = vsel %vm2760_vm10, nan, %v2770_v7  ;;  %v1396_v57 = vand.u32 2147483647, %v1395_v60  ;;  %v1236_v44 = vshrl.u32 %v4318_v23, %v1227_v20  ;;  %v1235_v42 = vshll.u32 %v4317_v21, %v1226_v13 }
 0x298   :  { %3730 = vst [vmem:[#allocation2 + $0xb0] sm:$0xff] %v2771_v24  ;;  %v3043_v12 = vshll.u32 %v3042_v6, 30  ;;  %v1239_v33 = vshrl.u32 %v4319_v25, %v1227_v20  ;;  %vm2982_vm1 = vcmp.lt.s32.totalorder %v5853_v51, 0  ;;  %v1229_v47 = vshll.u32 %v4315_v15, %v1226_v13 }
 0x299   :  { %v1399_v16 = vmul.f32 %v1398_v52, %v1396_v57  ;;  %v1232_v61 = vshll.u32 %v4316_v19, %v1226_v13  ;;  %v1238_v1 = vshll.u32 %v4318_v23, %v1226_v13  ;;  %v1242_v43 = vshrl.u32 %v4320_v32, %v1227_v20 }
 0x29a   :  { %v6040_v50 = vand.u32 3, %v1409_v40  ;;  %v6042_v17 = vsub.s32 %v3040_v63, %v3043_v12  ;;  %v1237_v29 = vor.u32 %v1236_v44, %v1235_v42  ;;  %v1231_v58 = vor.u32 %v1230_v22, %v1229_v47  ;;  %v6063_v40 = vpop.f32.mrb[12].mxu1 }
 0x29b   :  { %v1400_v46 = vxor.u32 2147483648, %v1399_v16  ;;  %v1234_v48 = vor.u32 %v1233_v59, %v1232_v61  ;;  %v1240_v2 = vor.u32 %v1239_v33, %v1238_v1  ;;  %v1241_v3 = vshll.u32 %v4319_v25, %v1226_v13 }
 0x29c   :  { %v3046_v4 = vsub.s32 0, %v6042_v17  ;;  %v1228_v53 = vshrl.u32 %v4315_v15, %v1227_v20  ;;  %v1260_v56 = vshll.u32 %v1220_v30, 8  ;;  %v3066_v18 = vsub.s32 4, %v3042_v6 }
 0x29d   :  { %v1401_v10 = vsel %vm1318_vm12, %v1400_v46, %v1399_v16  ;;  %v1243_v36 = vor.u32 %v1242_v43, %v1241_v3  ;;  %vm1247_vm2 = vcmp.lt.s32.totalorder %v1225_v54, 4  ;;  %vm6054_vm3 = vcmp.le.f32.partialorder %v2980_v0, 0.7853982 }
 0x29e   :  { %v1404_v45 = vsel %vm5976_vm7, %v5793_v38, %v1401_v10  ;;  %v3890_v39 = vmin.u32 %v3046_v4, %v6042_v17  ;;  %vm1244_vm4 = vcmp.lt.s32.totalorder %v1225_v54, 1  ;;  %v1249_v34 = vsel %vm1247_vm2, %v1237_v29, 2102212464 }
 0x29f   :  { %4222 = vcosq.f32 %v1404_v45  ;;  %vm1245_vm5 = vcmp.lt.s32.totalorder %v1225_v54, 2  ;;  %v1252_v63 = vsel %vm1244_vm4, %v1231_v58, %v1234_v48  ;;  %v1253_v27 = vsel %vm1247_vm2, %v1240_v2, 920167782 }
 0x2a0   :  { %4224 = vsinq.f32 %v1404_v45  ;;  %v3048_v28 = vclz %v3890_v39  ;;  %vm1246_vm6 = vcmp.lt.s32.totalorder %v1225_v54, 3  ;;  %v1248_v20 = vsel %vm1244_vm4, %v1228_v53, %v1231_v58 }
 0x2a1   :  { %v1256_v11 = vsel %vm1244_vm4, %v1234_v48, %v1237_v29  ;;  %v1250_v60 = vsel %vm1246_vm6, %v1234_v48, %v1249_v34  ;;  %v1254_v9 = vsel %vm1246_vm6, %v1237_v29, %v1253_v27  ;;  %v1257_v0 = vsel %vm1247_vm2, %v1243_v36, 1326507024 }
 0x2a2   :  { %v2879_v7 = vand.u32 2139095040, %v6021_v8  ;;  %v3891_v30 = vadd.s32 4294967294, %v3048_v28  ;;  %v3067_v24 = vsel %vm2982_vm1, %v3066_v18, %v3042_v6  ;;  %v1255_v57 = vsel %vm1245_vm5, %v1252_v63, %v1254_v9 }
 0x2a3   :  { %v1258_v52 = vsel %vm1246_vm6, %v1240_v2, %v1257_v0  ;;  %v6069_v59 = vmul.u32.u64.low %v1260_v56, %v1255_v57  ;;  %v6070_v44 = vmul.u32.u64.high %v1260_v56, %v1255_v57, %v6069_v59  ;;  %v1251_v12 = vsel %vm1245_vm5, %v1248_v20, %v1250_v60 }
 0x2a4   :  { %v1259_v22 = vsel %vm1245_vm5, %v1256_v11, %v1258_v52  ;;  %v2880_v16 = vshrl.u32 %v2879_v7, 23  ;;  %vm3892_vm7 = vcmp.lt.s32.totalorder %v3891_v30, 0  ;;  %vm1411_vm8 = vcmp.lt.s32.totalorder %v6040_v50, 2 }
 0x2a5   :  { %v6074_v42 = vmul.u32.u64.low %v1260_v56, %v1259_v22  ;;  %v6075_v33 = vmul.u32.u64.high %v1260_v56, %v1259_v22, %v6074_v42  ;;  %vm1412_vm9 = vcmp.eq.s32.totalorder %v6040_v50, 0  ;;  %v3051_v6 = vsel %vm3892_vm7, 0, %v3891_v30 }
 0x2a6   :  { %v3885_v47 = vadd.s32 4294967169, %v2880_v16  ;;  %v3036_v61 = vadd.s32 %v5983_v31, %v5989_v49  ;;  %v3052_v1 = vsub.s32 32, %v3051_v6  ;;  %v3056_v43 = vsub.s32 4294967266, %v3051_v6 }
 0x2a7   :  { %v2876_v46 = vand.u32 2147483647, %v6021_v8  ;;  %v3069_v54 = vsel %vm6054_vm3, 0, %v3067_v24  ;;  %v1267_v29 = vmul.u32 %v1260_v56, %v1251_v12  ;;  %v1270_v58 = vadd.s32 1, %v6070_v44 }
 0x2a8   :  { %v2886_v48 = vadd.s32 1, %v3885_v47  ;;  %v3053_v3 = vshll.u32 %v6042_v17, %v3051_v6  ;;  %v3054_v10 = vshrl.u32 %v3036_v61, %v3052_v1  ;;  %v3057_v4 = vadd.s32 127, %v3056_v43 }
 0x2a9   :  { %v4223_v2 = vpop.eup %4222  ;;  %vm1269_vm10 = vc.u32 %v6075_v33, %v6069_v59  ;;  %vm1415_vm11 = vcmp.eq.s32.totalorder %v6040_v50, 2  ;;  %v3073_v34 = vadd.s32 3, %v3069_v54  ;;  %v2883_v17 = vand.u32 8388607, %v2876_v46 }
 0x2aa   :  { %v4225_v31 = vpop.eup %4224  ;;  %v1416_v49 = vxor.u32 2147483648, %v4223_v2  ;;  %v1271_v53 = vsel %vm1269_vm10, %v1270_v58, %v6070_v44  ;;  %vm2887_vm12 = vcmp.gt.s32.totalorder %v2886_v48, 0  ;;  %v3055_v56 = vor.u32 %v3054_v10, %v3053_v3 }
 0x2ab   :  { %v1413_v45 = vxor.u32 2147483648, %v4225_v31  ;;  %v3058_v18 = vshll.u32 %v3057_v4, 23  ;;  %v1272_v36 = vadd.s32 %v1271_v53, %v1267_v29  ;;  %v2888_v63 = vsel %vm2887_vm12, %v2886_v48, 0 }
 0x2ac   :  { %v1417_v39 = vsel %vm1415_vm11, %v1416_v49, %v4225_v31  ;;  %v1527_v11 = vand.u32 2139095040, %v6026_v62  ;;  %vm1408_vm13 = vweird.f32 %v5793_v38  ;;  %v2890_v9 = vand.u32 31, %v2888_v63 }
 0x2ad   :  { %v1414_v27 = vsel %vm1412_vm9, %v4223_v2, %v1413_v45  ;;  %v3059_v28 = vor.u32 4788187, %v3058_v18  ;;  %v1273_v20 = vadd.s32 536870912, %v1272_v36  ;;  %v3062_v30 = vcvt.s32.f32 %v3055_v56 }
 0x2ae   :  { %v1418_v60 = vsel %vm1411_vm8, %v1414_v27, %v1417_v39  ;;  %v6100_v57 = vand.u32 3, %v3073_v34  ;;  %v2884_v52 = vor.u32 8388608, %v2883_v17  ;;  %v2891_v22 = vsub.s32 32, %v2890_v9 }
 0x2af   :  { %v1419_v0 = vsel %vm1408_vm13, nan, %v1418_v60  ;;  %v3060_v7 = vand.u32 2147483647, %v3059_v28  ;;  %v6098_v24 = vshrl.u32 %v1273_v20, 30  ;;  %v1524_v44 = vand.u32 2147483647, %v6026_v62 }
 0x2b0   :  { %3717 = vst [vmem:[#allocation2 + $0x48] sm:$0xff] %v1419_v0  ;;  %v2893_v38 = vshll.u32 %v4315_v15, %v2890_v9  ;;  %v1528_v50 = vshrl.u32 %v1527_v11, 23  ;;  %v2894_v42 = vshrl.u32 %v4316_v19, %v2891_v22  ;;  %v2896_v6 = vshll.u32 %v4316_v19, %v2890_v9 }
 0x2b1   :  { %v3063_v16 = vmul.f32 %v3062_v30, %v3060_v7  ;;  %v1275_v12 = vshll.u32 %v6098_v24, 30  ;;  %v2897_v47 = vshrl.u32 %v4317_v21, %v2891_v22  ;;  %v2900_v61 = vshrl.u32 %v4318_v23, %v2891_v22 }
 0x2b2   :  { %v2899_v54 = vshll.u32 %v4317_v21, %v2890_v9  ;;  %v2903_v29 = vshrl.u32 %v4319_v25, %v2891_v22  ;;  %v2889_v58 = vshrl.u32 %v2888_v63, 5  ;;  %v2895_v48 = vor.u32 %v2894_v42, %v2893_v38 }
 0x2b3   :  { %v3064_v1 = vxor.u32 2147483648, %v3063_v16  ;;  %v6109_v43 = vsub.s32 %v1272_v36, %v1275_v12  ;;  %v2902_v2 = vshll.u32 %v4318_v23, %v2890_v9  ;;  %v6114_v3 = vshll.u32 %v2884_v52, 8 }
 0x2b4   :  { %v2898_v31 = vor.u32 %v2897_v47, %v2896_v6  ;;  %v2901_v49 = vor.u32 %v2900_v61, %v2899_v54  ;;  %vm1214_vm14 = vcmp.lt.s32.totalorder %v5863_v41, 0  ;;  %v2905_v56 = vshll.u32 %v4319_v25, %v2890_v9  ;;  %v6155_v54 = vpop.f32.mrb[13].mxu0 }
 0x2b5   :  { %v3065_v10 = vsel %vm2982_vm1, %v3064_v1, %v3063_v16  ;;  %v1278_v4 = vsub.s32 0, %v6109_v43  ;;  %v2904_v45 = vor.u32 %v2903_v29, %v2902_v2  ;;  %v2906_v18 = vshrl.u32 %v4320_v32, %v2891_v22 }
 0x2b6   :  { %v3068_v53 = vsel %vm6054_vm3, %v5853_v51, %v3065_v10  ;;  %v1268_v36 = vadd.s32 %v6069_v59, %v6075_v33  ;;  %v3833_v34 = vadd.s32 4294967169, %v1528_v50  ;;  %v1298_v17 = vsub.s32 4, %v6098_v24 }
 0x2b7   :  { %4226 = vcosq.f32 %v3068_v53  ;;  %v3822_v39 = vmin.u32 %v1278_v4, %v6109_v43  ;;  %v2892_v13 = vshrl.u32 %v4315_v15, %v2891_v22  ;;  %v2907_v63 = vor.u32 %v2906_v18, %v2905_v56 }
 0x2b8   :  { %4228 = vsinq.f32 %v3068_v53  ;;  %vm6132_vm15 = vcmp.le.f32.partialorder %v1212_v35, 0.7853982  ;;  %vm2908_vm0 = vcmp.lt.s32.totalorder %v2889_v58, 1  ;;  %vm2909_vm1 = vcmp.lt.s32.totalorder %v2889_v58, 2 }
 0x2b9   :  { %v1280_v28 = vclz %v3822_v39  ;;  %vm2911_vm2 = vcmp.lt.s32.totalorder %v2889_v58, 4  ;;  %vm2910_vm3 = vcmp.lt.s32.totalorder %v2889_v58, 3  ;;  %v2916_v33 = vsel %vm2908_vm0, %v2895_v48, %v2898_v31 }
 0x2ba   :  { %v2913_v59 = vsel %vm2911_vm2, %v2901_v49, 2102212464  ;;  %v2917_v20 = vsel %vm2911_vm2, %v2904_v45, 920167782  ;;  %vm3079_vm4 = vcmp.eq.s32.totalorder %v6100_v57, 2  ;;  %v2912_v60 = vsel %vm2908_vm0, %v2892_v13, %v2895_v48 }
 0x2bb   :  { %v3823_v11 = vadd.s32 4294967294, %v1280_v28  ;;  %v2918_v9 = vsel %vm2910_vm3, %v2901_v49, %v2917_v20  ;;  %v2920_v0 = vsel %vm2908_vm0, %v2898_v31, %v2901_v49  ;;  %vm3076_vm5 = vcmp.eq.s32.totalorder %v6100_v57, 0 }
 0x2bc   :  { %v2914_v35 = vsel %vm2910_vm3, %v2898_v31, %v2913_v59  ;;  %v2919_v7 = vsel %vm2909_vm1, %v2916_v33, %v2918_v9  ;;  %v2921_v30 = vsel %vm2911_vm2, %v2907_v63, 1326507024  ;;  %v1534_v52 = vadd.s32 1, %v3833_v34 }
 0x2bd   :  { %vm3075_vm6 = vcmp.lt.s32.totalorder %v6100_v57, 2  ;;  %vm3824_vm7 = vcmp.lt.s32.totalorder %v3823_v11, 0  ;;  %v2922_v22 = vsel %vm2910_vm3, %v2904_v45, %v2921_v30  ;;  %vm3072_vm8 = vweird.f32 %v5853_v51 }
 0x2be   :  { %v6144_v16 = vmul.u32.u64.low %v6114_v3, %v2919_v7  ;;  %v6145_v12 = vmul.u32.u64.high %v6114_v3, %v2919_v7, %v6144_v16  ;;  %v1283_v38 = vsel %vm3824_vm7, 0, %v3823_v11  ;;  %v2923_v50 = vsel %vm2909_vm1, %v2920_v0, %v2922_v22 }
 0x2bf   :  { %v1531_v42 = vand.u32 8388607, %v1524_v44  ;;  %vm1535_vm9 = vcmp.gt.s32.totalorder %v1534_v52, 0  ;;  %v1284_v6 = vsub.s32 32, %v1283_v38  ;;  %v1288_v47 = vsub.s32 4294967266, %v1283_v38 }
 0x2c0   :  { %v1299_v61 = vsel %vm1214_vm14, %v1298_v17, %v6098_v24  ;;  %v1536_v1 = vsel %vm1535_vm9, %v1534_v52, 0  ;;  %v2915_v29 = vsel %vm2909_vm1, %v2912_v60, %v2914_v35  ;;  %v1285_v31 = vshll.u32 %v6109_v43, %v1283_v38 }
 0x2c1   :  { %v6159_v48 = vmul.u32.u64.low %v6114_v3, %v2923_v50  ;;  %v6160_v2 = vmul.u32.u64.high %v6114_v3, %v2923_v50, %v6159_v48  ;;  %v1538_v10 = vand.u32 31, %v1536_v1  ;;  %v4227_v4 = vpop.eup %4226  ;;  %v1286_v49 = vshrl.u32 %v1268_v36, %v1284_v6 }
 0x2c2   :  { %v1289_v53 = vadd.s32 127, %v1288_v47  ;;  %v2934_v45 = vadd.s32 1, %v6145_v12  ;;  %v4229_v56 = vpop.eup %4228  ;;  %v3080_v18 = vxor.u32 2147483648, %v4227_v4  ;;  %v1301_v24 = vsel %vm6132_vm15, 0, %v1299_v61 }
 0x2c3   :  { %v1532_v39 = vor.u32 8388608, %v1531_v42  ;;  %v1539_v58 = vsub.s32 32, %v1538_v10  ;;  %v3077_v34 = vxor.u32 2147483648, %v4229_v56  ;;  %v1287_v17 = vor.u32 %v1286_v49, %v1285_v31 }
 0x2c4   :  { %v1290_v13 = vshll.u32 %v1289_v53, 23  ;;  %v2931_v63 = vmul.u32 %v6114_v3, %v2915_v29  ;;  %v3081_v28 = vsel %vm3079_vm4, %v3080_v18, %v4229_v56  ;;  %vm2933_vm10 = vc.u32 %v6160_v2, %v6144_v16 }
 0x2c5   :  { %v6171_v43 = vshrl.u32 %v1536_v1, 5  ;;  %v1541_v36 = vshll.u32 %v4315_v15, %v1538_v10  ;;  %v3078_v59 = vsel %vm3076_vm5, %v4227_v4, %v3077_v34  ;;  %v2935_v20 = vsel %vm2933_vm10, %v2934_v45, %v6145_v12 }
 0x2c6   :  { %v1291_v33 = vor.u32 4788187, %v1290_v13  ;;  %v1544_v11 = vshll.u32 %v4316_v19, %v1538_v10  ;;  %v3082_v3 = vsel %vm3075_vm6, %v3078_v59, %v3081_v28  ;;  %v2936_v60 = vadd.s32 %v2935_v20, %v2931_v63 }
 0x2c7   :  { %v1542_v9 = vshrl.u32 %v4316_v19, %v1539_v58  ;;  %v1545_v0 = vshrl.u32 %v4317_v21, %v1539_v58  ;;  %v3083_v35 = vsel %vm3072_vm8, nan, %v3082_v3  ;;  %v1294_v30 = vcvt.s32.f32 %v1287_v17 }
 0x2c8   :  { %v1292_v7 = vand.u32 2147483647, %v1291_v33  ;;  %v1548_v52 = vshrl.u32 %v4318_v23, %v1539_v58  ;;  %3733 = vst [vmem:[#allocation2 + $0xc8] sm:$0xff] %v3083_v35  ;;  %v2937_v22 = vadd.s32 536870912, %v2936_v60  ;;  %v1547_v12 = vshll.u32 %v4317_v21, %v1538_v10  ;;  %v6237_v35 = vpop.f32.mrb[13].mxu1 }
 0x2c9   :  { %v1550_v38 = vshll.u32 %v4318_v23, %v1538_v10  ;;  %v1551_v57 = vshrl.u32 %v4319_v25, %v1539_v58  ;;  %v1543_v42 = vor.u32 %v1542_v9, %v1541_v36  ;;  %v1546_v6 = vor.u32 %v1545_v0, %v1544_v11 }
 0x2ca   :  { %v1295_v50 = vmul.f32 %v1294_v30, %v1292_v7  ;;  %v1554_v47 = vshrl.u32 %v4320_v32, %v1539_v58  ;;  %v2938_v61 = vshrl.u32 %v2937_v22, 30  ;;  %v1305_v29 = vadd.s32 3, %v1301_v24 }
 0x2cb   :  { %v1552_v51 = vor.u32 %v1551_v57, %v1550_v38  ;;  %v1549_v48 = vor.u32 %v1548_v52, %v1547_v12  ;;  %v1553_v4 = vshll.u32 %v4319_v25, %v1538_v10  ;;  %vm1556_vm11 = vcmp.lt.s32.totalorder %v6171_v43, 1 }
 0x2cc   :  { %v1296_v1 = vxor.u32 2147483648, %v1295_v50  ;;  %v2939_v31 = vshll.u32 %v2938_v61, 30  ;;  %vm1559_vm12 = vcmp.lt.s32.totalorder %v6171_v43, 4  ;;  %v6192_v49 = vshll.u32 %v1532_v39, 8 }
 0x2cd   :  { %v1555_v45 = vor.u32 %v1554_v47, %v1553_v4  ;;  %v1564_v56 = vsel %vm1556_vm11, %v1543_v42, %v1546_v6  ;;  %v1565_v18 = vsel %vm1559_vm12, %v1552_v51, 920167782  ;;  %v1540_v34 = vshrl.u32 %v4315_v15, %v1539_v58 }
 0x2ce   :  { %v1297_v53 = vsel %vm1214_vm14, %v1296_v1, %v1295_v50  ;;  %v6203_v24 = vsub.s32 %v2936_v60, %v2939_v31  ;;  %vm1558_vm13 = vcmp.lt.s32.totalorder %v6171_v43, 3  ;;  %vm1557_vm14 = vcmp.lt.s32.totalorder %v6171_v43, 2 }
 0x2cf   :  { %v1300_v10 = vsel %vm6132_vm15, %v5863_v41, %v1297_v53  ;;  %v1561_v39 = vsel %vm1559_vm12, %v1549_v48, 2102212464  ;;  %v1566_v17 = vsel %vm1558_vm13, %v1549_v48, %v1565_v18  ;;  %v1568_v58 = vsel %vm1556_vm11, %v1546_v6, %v1549_v48 }
 0x2d0   :  { %4230 = vcosq.f32 %v1300_v10  ;;  %v2942_v13 = vsub.s32 0, %v6203_v24  ;;  %v1567_v27 = vsel %vm1557_vm14, %v1564_v56, %v1566_v17  ;;  %v2962_v63 = vsub.s32 4, %v2938_v61 }
 0x2d1   :  { %4232 = vsinq.f32 %v1300_v10  ;;  %v1569_v28 = vsel %vm1559_vm12, %v1555_v45, 1326507024  ;;  %v6220_v36 = vmul.u32.u64.low %v6192_v49, %v1567_v27  ;;  %v6221_v59 = vmul.u32.u64.high %v6192_v49, %v1567_v27, %v6220_v36 }
 0x2d2   :  { %v1306_v33 = vand.u32 3, %v1305_v29  ;;  %v3886_v20 = vmin.u32 %v2942_v13, %v6203_v24  ;;  %v1570_v11 = vsel %vm1558_vm13, %v1552_v51, %v1569_v28  ;;  %v1560_v3 = vsel %vm1556_vm11, %v1540_v34, %v1543_v42 }
 0x2d3   :  { %v1562_v60 = vsel %vm1558_vm13, %v1546_v6, %v1561_v39  ;;  %v1571_v9 = vsel %vm1557_vm14, %v1568_v58, %v1570_v11  ;;  %v6235_v0 = vadd.f32 %v6017_v55, %v5795_v37  ;;  %vm2878_vm15 = vcmp.lt.s32.totalorder %v6021_v8, 0 }
 0x2d4   :  { %v2944_v7 = vclz %v3886_v20  ;;  %v2963_v30 = vsel %vm2878_vm15, %v2962_v63, %v2938_v61  ;;  %v6243_v52 = vmul.u32.u64.low %v6192_v49, %v1571_v9  ;;  %v6244_v22 = vmul.u32.u64.high %v6192_v49, %v1571_v9, %v6243_v52 }
 0x2d5   :  { %vm1304_vm0 = vweird.f32 %v5863_v41  ;;  %v1563_v38 = vsel %vm1557_vm14, %v1560_v3, %v1562_v60  ;;  %v3191_v37 = vand.u32 2139095040, %v6235_v0  ;;  %v6252_v57 = vadd.f32 %v6017_v55, %v5846_v26 }
 0x2d6   :  { %v3887_v12 = vadd.s32 4294967294, %v2944_v7  ;;  %vm1308_vm1 = vcmp.eq.s32.totalorder %v1306_v33, 0  ;;  %vm1311_vm2 = vcmp.eq.s32.totalorder %v1306_v33, 2  ;;  %vm6256_vm3 = vcmp.le.f32.partialorder %v2876_v46, 0.7853982 }
 0x2d7   :  { %v1582_v42 = vadd.s32 1, %v6221_v59  ;;  %v2932_v43 = vadd.s32 %v6144_v16, %v6160_v2  ;;  %v2965_v6 = vsel %vm6256_vm3, 0, %v2963_v30  ;;  %v3192_v47 = vshrl.u32 %v3191_v37, 23 }
 0x2d8   :  { %vm3888_vm4 = vcmp.lt.s32.totalorder %v3887_v12, 0  ;;  %v1579_v51 = vmul.u32 %v6192_v49, %v1563_v38  ;;  %vm1581_vm5 = vc.u32 %v6244_v22, %v6220_v36  ;;  %v3188_v46 = vand.u32 2147483647, %v6235_v0 }
 0x2d9   :  { %v2947_v61 = vsel %vm3888_vm4, 0, %v3887_v12  ;;  %v1423_v16 = vand.u32 2139095040, %v6252_v57  ;;  %v1583_v53 = vsel %vm1581_vm5, %v1582_v42, %v6221_v59  ;;  %v3897_v45 = vadd.s32 4294967169, %v3192_v47 }
 0x2da   :  { %v4231_v26 = vpop.eup %4230  ;;  %v2948_v48 = vsub.s32 32, %v2947_v61  ;;  %v2952_v4 = vsub.s32 4294967266, %v2947_v61  ;;  %v2949_v31 = vshll.u32 %v6203_v24, %v2947_v61  ;;  %v1584_v10 = vadd.s32 %v1583_v53, %v1579_v51 }
 0x2db   :  { %v4233_v1 = vpop.eup %4232  ;;  %v1312_v29 = vxor.u32 2147483648, %v4231_v26  ;;  %vm1307_vm6 = vcmp.lt.s32.totalorder %v1306_v33, 2  ;;  %v2969_v39 = vadd.s32 3, %v2965_v6  ;;  %v3198_v17 = vadd.s32 1, %v3897_v45 }
 0x2dc   :  { %v1309_v2 = vxor.u32 2147483648, %v4233_v1  ;;  %v2950_v49 = vshrl.u32 %v2932_v43, %v2948_v48  ;;  %v2953_v18 = vadd.s32 127, %v2952_v4  ;;  %v1585_v63 = vadd.s32 536870912, %v1584_v10 }
 0x2dd   :  { %v1313_v56 = vsel %vm1311_vm2, %v1312_v29, %v4233_v1  ;;  %v3195_v28 = vand.u32 8388607, %v3188_v46  ;;  %vm3199_vm7 = vcmp.gt.s32.totalorder %v3198_v17, 0  ;;  %v1424_v3 = vshrl.u32 %v1423_v16, 23 }
 0x2de   :  { %v1310_v34 = vsel %vm1308_vm1, %v4231_v26, %v1309_v2  ;;  %v2951_v27 = vor.u32 %v2950_v49, %v2949_v31  ;;  %v2954_v58 = vshll.u32 %v2953_v18, 23  ;;  %v1586_v20 = vshrl.u32 %v1585_v63, 30 }
 0x2df   :  { %v1314_v13 = vsel %vm1307_vm6, %v1310_v34, %v1313_v56  ;;  %v3200_v11 = vsel %vm3199_vm7, %v3198_v17, 0  ;;  %v6278_v33 = vand.u32 3, %v2969_v39  ;;  %vm1526_vm8 = vcmp.lt.s32.totalorder %v6026_v62, 0 }
 0x2e0   :  { %v1315_v24 = vsel %vm1304_vm0, nan, %v1314_v13  ;;  %v2955_v59 = vor.u32 4788187, %v2954_v58  ;;  %v3202_v60 = vand.u32 31, %v3200_v11  ;;  %v2958_v7 = vcvt.s32.f32 %v2951_v27 }
 0x2e1   :  { %3716 = vst [vmem:[#allocation2 + $0x40] sm:$0xff] %v1315_v24  ;;  %v1587_v30 = vshll.u32 %v1586_v20, 30  ;;  %v6283_v41 = vadd.f32 %v6017_v55, %v5907_v5  ;;  %v1580_v52 = vadd.s32 %v6220_v36, %v6244_v22  ;;  %v3196_v12 = vor.u32 8388608, %v3195_v28 }
 0x2e2   :  { %v2956_v9 = vand.u32 2147483647, %v2955_v59  ;;  %v3203_v38 = vsub.s32 32, %v3202_v60  ;;  %v1420_v37 = vand.u32 2147483647, %v6252_v57  ;;  %v6290_v6 = vshrl.u32 %v3200_v11, 5 }
 0x2e3   :  { %v6288_v43 = vsub.s32 %v1584_v10, %v1587_v30  ;;  %v3829_v47 = vadd.s32 4294967169, %v1424_v3  ;;  %v1610_v26 = vsub.s32 4, %v1586_v20  ;;  %v3205_v61 = vshll.u32 %v4315_v15, %v3202_v60 }
 0x2e4   :  { %v2959_v42 = vmul.f32 %v2958_v7, %v2956_v9  ;;  %v3206_v51 = vshrl.u32 %v4316_v19, %v3203_v38  ;;  %v3209_v5 = vshrl.u32 %v4317_v21, %v3203_v38  ;;  %v3208_v22 = vshll.u32 %v4316_v19, %v3202_v60 }
 0x2e5   :  { %v1590_v36 = vsub.s32 0, %v6288_v43  ;;  %v3212_v29 = vshrl.u32 %v4318_v23, %v3203_v38  ;;  %v3211_v4 = vshll.u32 %v4317_v21, %v3202_v60  ;;  %v3214_v16 = vshll.u32 %v4318_v23, %v3202_v60 }
 0x2e6   :  { %v2960_v1 = vxor.u32 2147483648, %v2959_v42  ;;  %v3207_v48 = vor.u32 %v3206_v51, %v3205_v61  ;;  %v3215_v2 = vshrl.u32 %v4319_v25, %v3203_v38  ;;  %v3210_v45 = vor.u32 %v3209_v5, %v3208_v22 }
 0x2e7   :  { %v3834_v53 = vmin.u32 %v1590_v36, %v6288_v43  ;;  %v3217_v56 = vshll.u32 %v4319_v25, %v3202_v60  ;;  %v3213_v18 = vor.u32 %v3212_v29, %v3211_v4  ;;  %v3218_v34 = vshrl.u32 %v4320_v32, %v3203_v38  ;;  %v6346_v29 = vpop.f32.mrb[14].mxu0 }
 0x2e8   :  { %v2961_v31 = vsel %vm2878_vm15, %v2960_v1, %v2959_v42  ;;  %v3216_v10 = vor.u32 %v3215_v2, %v3214_v16  ;;  %v6309_v17 = vshll.u32 %v3196_v12, 8  ;;  %v1430_v13 = vadd.s32 1, %v3829_v47 }
 0x2e9   :  { %v2964_v49 = vsel %vm6256_vm3, %v6021_v8, %v2961_v31  ;;  %v1592_v39 = vclz %v3834_v53  ;;  %vm6313_vm9 = vcmp.le.f32.partialorder %v1524_v44, 0.7853982  ;;  %v1611_v50 = vsel %vm1526_vm8, %v1610_v26, %v1586_v20 }
 0x2ea   :  { %4234 = vcosq.f32 %v2964_v49  ;;  %v3204_v58 = vshrl.u32 %v4315_v15, %v3203_v38  ;;  %v3219_v63 = vor.u32 %v3218_v34, %v3217_v56  ;;  %vm3220_vm10 = vcmp.lt.s32.totalorder %v6290_v6, 1 }
 0x2eb   :  { %4236 = vsinq.f32 %v2964_v49  ;;  %v3835_v24 = vadd.s32 4294967294, %v1592_v39  ;;  %vm3222_vm11 = vcmp.lt.s32.totalorder %v6290_v6, 3  ;;  %vm3223_vm12 = vcmp.lt.s32.totalorder %v6290_v6, 4 }
 0x2ec   :  { %v3225_v28 = vsel %vm3223_vm12, %v3213_v18, 2102212464  ;;  %v3228_v59 = vsel %vm3220_vm10, %v3207_v48, %v3210_v45  ;;  %v3229_v11 = vsel %vm3223_vm12, %v3216_v10, 920167782  ;;  %v3232_v44 = vsel %vm3220_vm10, %v3210_v45, %v3213_v18 }
 0x2ed   :  { %vm3836_vm13 = vcmp.lt.s32.totalorder %v3835_v24, 0  ;;  %vm3221_vm14 = vcmp.lt.s32.totalorder %v6290_v6, 2  ;;  %v3230_v20 = vsel %vm3222_vm11, %v3213_v18, %v3229_v11  ;;  %v3233_v3 = vsel %vm3223_vm12, %v3219_v63, 1326507024 }
 0x2ee   :  { %v1595_v60 = vsel %vm3836_vm13, 0, %v3835_v24  ;;  %v3224_v9 = vsel %vm3220_vm10, %v3204_v58, %v3207_v48  ;;  %v3231_v7 = vsel %vm3221_vm14, %v3228_v59, %v3230_v20  ;;  %v3234_v30 = vsel %vm3222_vm11, %v3216_v10, %v3233_v3 }
 0x2ef   :  { %vm2971_vm15 = vcmp.lt.s32.totalorder %v6278_v33, 2  ;;  %v1596_v12 = vsub.s32 32, %v1595_v60  ;;  %v1600_v38 = vsub.s32 4294967266, %v1595_v60  ;;  %v3226_v42 = vsel %vm3222_vm11, %v3210_v45, %v3225_v28 }
 0x2f0   :  { %v3235_v47 = vsel %vm3221_vm14, %v3232_v44, %v3234_v30  ;;  %vm2968_vm0 = vweird.f32 %v6021_v8  ;;  %v6341_v51 = vmul.u32.u64.low %v6309_v17, %v3231_v7  ;;  %v6342_v5 = vmul.u32.u64.high %v6309_v17, %v3231_v7, %v6341_v51 }
 0x2f1   :  { %v6337_v26 = vmul.u32.u64.low %v6309_v17, %v3235_v47  ;;  %v6338_v61 = vmul.u32.u64.high %v6309_v17, %v3235_v47, %v6337_v26  ;;  %v1597_v1 = vshll.u32 %v6288_v43, %v1595_v60  ;;  %v1598_v36 = vshrl.u32 %v1580_v52, %v1596_v12 }
 0x2f2   :  { %v1601_v22 = vadd.s32 127, %v1600_v38  ;;  %vm1431_vm1 = vcmp.gt.s32.totalorder %v1430_v13, 0  ;;  %vm2972_vm2 = vcmp.eq.s32.totalorder %v6278_v33, 0  ;;  %v3227_v48 = vsel %vm3221_vm14, %v3224_v9, %v3226_v42 }
 0x2f3   :  { %v1427_v4 = vand.u32 8388607, %v1420_v37  ;;  %v1432_v16 = vsel %vm1431_vm1, %v1430_v13, 0  ;;  %v1599_v31 = vor.u32 %v1598_v36, %v1597_v1  ;;  %v1613_v43 = vsel %vm6313_vm9, 0, %v1611_v50 }
 0x2f4   :  { %v4235_v2 = vpop.eup %4234  ;;  %v1602_v53 = vshll.u32 %v1601_v22, 23  ;;  %v1434_v52 = vand.u32 31, %v1432_v16  ;;  %vm2975_vm3 = vcmp.eq.s32.totalorder %v6278_v33, 2  ;;  %vm3245_vm4 = vc.u32 %v6338_v61, %v6341_v51 }
 0x2f5   :  { %v4237_v45 = vpop.eup %4236  ;;  %v2976_v56 = vxor.u32 2147483648, %v4235_v2  ;;  %v3246_v6 = vadd.s32 1, %v6342_v5  ;;  %v3243_v10 = vmul.u32 %v6309_v17, %v3227_v48  ;;  %v1617_v13 = vadd.s32 3, %v1613_v43 }
 0x2f6   :  { %v2973_v49 = vxor.u32 2147483648, %v4237_v45  ;;  %v1603_v18 = vor.u32 4788187, %v1602_v53  ;;  %v1435_v34 = vsub.s32 32, %v1434_v52  ;;  %v1428_v50 = vor.u32 8388608, %v1427_v4 }
 0x2f7   :  { %v2977_v39 = vsel %vm2975_vm3, %v2976_v56, %v4237_v45  ;;  %v3247_v58 = vsel %vm3245_vm4, %v3246_v6, %v6342_v5  ;;  %v1606_v28 = vcvt.s32.f32 %v1599_v31  ;;  %v1437_v44 = vshll.u32 %v4315_v15, %v1434_v52 }
 0x2f8   :  { %v2974_v63 = vsel %vm2972_vm2, %v4235_v2, %v2973_v49  ;;  %v1604_v24 = vand.u32 2147483647, %v1603_v18  ;;  %v3248_v59 = vadd.s32 %v3247_v58, %v3243_v10  ;;  %v1438_v20 = vshrl.u32 %v4316_v19, %v1435_v34 }
 0x2f9   :  { %v2978_v11 = vsel %vm2971_vm15, %v2974_v63, %v2977_v39  ;;  %v1441_v17 = vshrl.u32 %v4317_v21, %v1435_v34  ;;  %v1444_v7 = vshrl.u32 %v4318_v23, %v1435_v34  ;;  %v1433_v30 = vshrl.u32 %v1432_v16, 5 }
 0x2fa   :  { %v2979_v3 = vsel %vm2968_vm0, nan, %v2978_v11  ;;  %v1607_v60 = vmul.f32 %v1606_v28, %v1604_v24  ;;  %v3249_v9 = vadd.s32 536870912, %v3248_v59  ;;  %v1440_v12 = vshll.u32 %v4316_v19, %v1434_v52 }
 0x2fb   :  { %3732 = vst [vmem:[#allocation2 + $0xc0] sm:$0xff] %v2979_v3  ;;  %v1443_v33 = vshll.u32 %v4317_v21, %v1434_v52  ;;  %v1447_v38 = vshrl.u32 %v4319_v25, %v1435_v34  ;;  %v1439_v26 = vor.u32 %v1438_v20, %v1437_v44  ;;  %v1446_v5 = vshll.u32 %v4318_v23, %v1434_v52 }
 0x2fc   :  { %v1608_v42 = vxor.u32 2147483648, %v1607_v60  ;;  %v3250_v47 = vshrl.u32 %v3249_v9, 30  ;;  %vm3190_vm5 = vcmp.lt.s32.totalorder %v6235_v0, 0  ;;  %v1442_v8 = vor.u32 %v1441_v17, %v1440_v12 }
 0x2fd   :  { %v1445_v1 = vor.u32 %v1444_v7, %v1443_v33  ;;  %v1449_v36 = vshll.u32 %v4319_v25, %v1434_v52  ;;  %v1450_v22 = vshrl.u32 %v4320_v32, %v1435_v34  ;;  %v6380_v4 = vand.u32 3, %v1617_v13 }
 0x2fe   :  { %v1609_v48 = vsel %vm1526_vm8, %v1608_v42, %v1607_v60  ;;  %v3251_v16 = vshll.u32 %v3250_v47, 30  ;;  %v1448_v2 = vor.u32 %v1447_v38, %v1446_v5  ;;  %v1436_v53 = vshrl.u32 %v4315_v15, %v1435_v34 }
 0x2ff   :  { %v1612_v31 = vsel %vm6313_vm9, %v6026_v62, %v1609_v48  ;;  %v1451_v43 = vor.u32 %v1450_v22, %v1449_v36  ;;  %v6386_v45 = vshll.u32 %v1428_v50, 8  ;;  %vm1452_vm6 = vcmp.lt.s32.totalorder %v1433_v30, 1 }
 0x300   :  { %4238 = vcosq.f32 %v1612_v31  ;;  %v6388_v52 = vsub.s32 %v3248_v59, %v3251_v16  ;;  %vm1455_vm7 = vcmp.lt.s32.totalorder %v1433_v30, 4  ;;  %vm1453_vm8 = vcmp.lt.s32.totalorder %v1433_v30, 2 }
 0x301   :  { %4240 = vsinq.f32 %v1612_v31  ;;  %v1457_v56 = vsel %vm1455_vm7, %v1445_v1, 2102212464  ;;  %v1460_v6 = vsel %vm1452_vm6, %v1439_v26, %v1442_v8  ;;  %v3274_v18 = vsub.s32 4, %v3250_v47 }
 0x302   :  { %v3254_v49 = vsub.s32 0, %v6388_v52  ;;  %vm1454_vm10 = vcmp.lt.s32.totalorder %v1433_v30, 3  ;;  %v1461_v27 = vsel %vm1455_vm7, %v1448_v2, 920167782  ;;  %v1456_v10 = vsel %vm1452_vm6, %v1436_v53, %v1439_v26  ;;  %v6418_v30 = vpop.f32.mrb[14].mxu1 }
 0x303   :  { %v1462_v39 = vsel %vm1454_vm10, %v1445_v1, %v1461_v27  ;;  %v1464_v34 = vsel %vm1452_vm6, %v1442_v8, %v1445_v1  ;;  %v1465_v13 = vsel %vm1455_vm7, %v1451_v43, 1326507024  ;;  %v1458_v50 = vsel %vm1454_vm10, %v1442_v8, %v1457_v56 }
 0x304   :  { %v3898_v58 = vmin.u32 %v3254_v49, %v6388_v52  ;;  %v1463_v63 = vsel %vm1453_vm8, %v1460_v6, %v1462_v39  ;;  %v1466_v24 = vsel %vm1454_vm10, %v1448_v2, %v1465_v13  ;;  %v3087_v44 = vand.u32 2139095040, %v6283_v41 }
 0x305   :  { %v1467_v28 = vsel %vm1453_vm8, %v1464_v34, %v1466_v24  ;;  %v6395_v59 = vmul.u32.u64.low %v6386_v45, %v1463_v63  ;;  %v6396_v11 = vmul.u32.u64.high %v6386_v45, %v1463_v63, %v6395_v59  ;;  %v3275_v17 = vsel %vm3190_vm5, %v3274_v18, %v3250_v47 }
 0x306   :  { %v3256_v20 = vclz %v3898_v58  ;;  %v3084_v3 = vand.u32 2147483647, %v6283_v41  ;;  %v1459_v60 = vsel %vm1453_vm8, %v1456_v10, %v1458_v50  ;;  %v3088_v12 = vshrl.u32 %v3087_v44, 23 }
 0x307   :  { %v6404_v9 = vmul.u32.u64.low %v6386_v45, %v1467_v28  ;;  %v6405_v7 = vmul.u32.u64.high %v6386_v45, %v1467_v28, %v6404_v9  ;;  %vm1619_vm9 = vcmp.lt.s32.totalorder %v6380_v4, 2  ;;  %vm6410_vm11 = vcmp.le.f32.partialorder %v3188_v46, 0.7853982 }
 0x308   :  { %v3899_v38 = vadd.s32 4294967294, %v3256_v20  ;;  %v6416_v42 = vadd.f32 %v6017_v55, %v6009_v14  ;;  %vm1620_vm12 = vcmp.eq.s32.totalorder %v6380_v4, 0  ;;  %vm1623_vm13 = vcmp.eq.s32.totalorder %v6380_v4, 2 }
 0x309   :  { %v1478_v47 = vadd.s32 1, %v6396_v11  ;;  %v3893_v26 = vadd.s32 4294967169, %v3088_v12  ;;  %v3244_v46 = vadd.s32 %v6341_v51, %v6338_v61  ;;  %v3277_v8 = vsel %vm6410_vm11, 0, %v3275_v17 }
 0x30a   :  { %v4239_v5 = vpop.eup %4238  ;;  %vm3900_vm14 = vcmp.lt.s32.totalorder %v3899_v38, 0  ;;  %v1475_v14 = vmul.u32 %v6386_v45, %v1459_v60  ;;  %vm1477_vm15 = vc.u32 %v6405_v7, %v6395_v59  ;;  %v3091_v22 = vand.u32 8388607, %v3084_v3 }
 0x30b   :  { %v4241_v55 = vpop.eup %4240  ;;  %v1624_v1 = vxor.u32 2147483648, %v4239_v5  ;;  %v3259_v36 = vsel %vm3900_vm14, 0, %v3899_v38  ;;  %v1735_v31 = vand.u32 2139095040, %v6416_v42  ;;  %v1479_v53 = vsel %vm1477_vm15, %v1478_v47, %v6396_v11 }
 0x30c   :  { %v1621_v48 = vxor.u32 2147483648, %v4241_v55  ;;  %v3260_v16 = vsub.s32 32, %v3259_v36  ;;  %v3264_v2 = vsub.s32 4294967266, %v3259_v36  ;;  %v3261_v51 = vshll.u32 %v6388_v52, %v3259_v36 }
 0x30d   :  { %v1625_v61 = vsel %vm1623_vm13, %v1624_v1, %v4241_v55  ;;  %v3094_v43 = vadd.s32 1, %v3893_v26  ;;  %v1480_v49 = vadd.s32 %v1479_v53, %v1475_v14  ;;  %vm1616_vm0 = vweird.f32 %v6026_v62 }
 0x30e   :  { %v1622_v45 = vsel %vm1620_vm12, %v4239_v5, %v1621_v48  ;;  %v3262_v56 = vshrl.u32 %v3244_v46, %v3260_v16  ;;  %v3265_v6 = vadd.s32 127, %v3264_v2  ;;  %v3281_v27 = vadd.s32 3, %v3277_v8 }
 0x30f   :  { %v1626_v18 = vsel %vm1619_vm9, %v1622_v45, %v1625_v61  ;;  %vm3095_vm1 = vcmp.gt.s32.totalorder %v3094_v43, 0  ;;  %v1481_v52 = vadd.s32 536870912, %v1480_v49  ;;  %v3092_v13 = vor.u32 8388608, %v3091_v22 }
 0x310   :  { %v1627_v10 = vsel %vm1616_vm0, nan, %v1626_v18  ;;  %v3263_v39 = vor.u32 %v3262_v56, %v3261_v51  ;;  %v3266_v34 = vshll.u32 %v3265_v6, 23  ;;  %v3096_v58 = vsel %vm3095_vm1, %v3094_v43, 0 }
 0x311   :  { %3719 = vst [vmem:[#allocation2 + $0x58] sm:$0xff] %v1627_v10  ;;  %v1482_v63 = vshrl.u32 %v1481_v52, 30  ;;  %v1736_v24 = vshrl.u32 %v1735_v31, 23  ;;  %v3098_v28 = vand.u32 31, %v3096_v58  ;;  %v6441_v20 = vand.u32 3, %v3281_v27 }
 0x312   :  { %v3267_v50 = vor.u32 4788187, %v3266_v34  ;;  %v3270_v44 = vcvt.s32.f32 %v3263_v39  ;;  %vm1422_vm2 = vcmp.lt.s32.totalorder %v6252_v57, 0  ;;  %v6445_v4 = vadd.s32 %v6395_v59, %v6405_v7 }
 0x313   :  { %v1483_v62 = vshll.u32 %v1482_v63, 30  ;;  %v3099_v17 = vsub.s32 32, %v3098_v28  ;;  %v6447_v60 = vshll.u32 %v3092_v13, 8  ;;  %v1732_v9 = vand.u32 2147483647, %v6416_v42 }
 0x314   :  { %v3268_v11 = vand.u32 2147483647, %v3267_v50  ;;  %v6452_v47 = vshrl.u32 %v3096_v58, 5  ;;  %v3841_v26 = vadd.s32 4294967169, %v1736_v24  ;;  %v1506_v5 = vsub.s32 4, %v1482_v63 }
 0x315   :  { %v6450_v38 = vsub.s32 %v1480_v49, %v1483_v62  ;;  %v3101_v46 = vshll.u32 %v4315_v15, %v3098_v28  ;;  %v3102_v8 = vshrl.u32 %v4316_v19, %v3099_v17  ;;  %v3105_v14 = vshrl.u32 %v4317_v21, %v3099_v17  ;;  %v6499_v62 = vpop.f32.mrb[15].mxu0 }
 0x316   :  { %v3271_v12 = vmul.f32 %v3270_v44, %v3268_v11  ;;  %vm6459_vm3 = vcmp.le.f32.partialorder %v1420_v37, 0.7853982  ;;  %v3104_v1 = vshll.u32 %v4316_v19, %v3098_v28  ;;  %v3108_v36 = vshrl.u32 %v4318_v23, %v3099_v17 }
 0x317   :  { %v1486_v55 = vsub.s32 0, %v6450_v38  ;;  %v3103_v22 = vor.u32 %v3102_v8, %v3101_v46  ;;  %v3107_v48 = vshll.u32 %v4317_v21, %v3098_v28  ;;  %v3110_v16 = vshll.u32 %v4318_v23, %v3098_v28 }
 0x318   :  { %v3272_v59 = vxor.u32 2147483648, %v3271_v12  ;;  %v3111_v2 = vshrl.u32 %v4319_v25, %v3099_v17  ;;  %v3106_v61 = vor.u32 %v3105_v14, %v3104_v1  ;;  %v3113_v51 = vshll.u32 %v4319_v25, %v3098_v28 }
 0x319   :  { %v3830_v37 = vmin.u32 %v1486_v55, %v6450_v38  ;;  %v3109_v43 = vor.u32 %v3108_v36, %v3107_v48  ;;  %v3114_v56 = vshrl.u32 %v4320_v32, %v3099_v17  ;;  %vm3116_vm4 = vcmp.lt.s32.totalorder %v6452_v47, 1 }
 0x31a   :  { %v3273_v31 = vsel %vm3190_vm5, %v3272_v59, %v3271_v12  ;;  %v3112_v45 = vor.u32 %v3111_v2, %v3110_v16  ;;  %v1742_v49 = vadd.s32 1, %v3841_v26  ;;  %v1507_v18 = vsel %vm1422_vm2, %v1506_v5, %v1482_v63 }
 0x31b   :  { %v3276_v53 = vsel %vm6410_vm11, %v6235_v0, %v3273_v31  ;;  %v1488_v6 = vclz %v3830_v37  ;;  %v3100_v27 = vshrl.u32 %v4315_v15, %v3099_v17  ;;  %v3115_v10 = vor.u32 %v3114_v56, %v3113_v51 }
 0x31c   :  { %4242 = vcosq.f32 %v3276_v53  ;;  %vm3118_vm5 = vcmp.lt.s32.totalorder %v6452_v47, 3  ;;  %vm3119_vm6 = vcmp.lt.s32.totalorder %v6452_v47, 4  ;;  %v3124_v33 = vsel %vm3116_vm4, %v3103_v22, %v3106_v61 }
 0x31d   :  { %4244 = vsinq.f32 %v3276_v53  ;;  %v3831_v39 = vadd.s32 4294967294, %v1488_v6  ;;  %v3121_v34 = vsel %vm3119_vm6, %v3109_v43, 2102212464  ;;  %v3125_v52 = vsel %vm3119_vm6, %v3112_v45, 920167782 }
 0x31e   :  { %v3128_v13 = vsel %vm3116_vm4, %v3106_v61, %v3109_v43  ;;  %v3129_v58 = vsel %vm3119_vm6, %v3115_v10, 1326507024  ;;  %vm3117_vm8 = vcmp.lt.s32.totalorder %v6452_v47, 2  ;;  %v3126_v50 = vsel %vm3118_vm5, %v3109_v43, %v3125_v52  ;;  %v6529_v47 = vld [vmem:[%s7133_s2] ss:$0 sm:$0xff] }
 0x31f   :  { %vm3832_vm7 = vcmp.lt.s32.totalorder %v3831_v39, 0  ;;  %v3130_v63 = vsel %vm3118_vm5, %v3112_v45, %v3129_v58  ;;  %vm3284_vm10 = vcmp.eq.s32.totalorder %v6441_v20, 0  ;;  %v1509_v28 = vsel %vm6459_vm3, 0, %v1507_v18 }
 0x320   :  { %v1491_v24 = vsel %vm3832_vm7, 0, %v3831_v39  ;;  %v3127_v11 = vsel %vm3117_vm8, %v3124_v33, %v3126_v50  ;;  %v3131_v44 = vsel %vm3117_vm8, %v3128_v13, %v3130_v63  ;;  %vm3283_vm9 = vcmp.lt.s32.totalorder %v6441_v20, 2 }
 0x321   :  { %v1492_v17 = vsub.s32 32, %v1491_v24  ;;  %v1496_v12 = vsub.s32 4294967266, %v1491_v24  ;;  %v3120_v26 = vsel %vm3116_vm4, %v3100_v27, %v3103_v22  ;;  %v3122_v5 = vsel %vm3118_vm5, %v3106_v61, %v3121_v34 }
 0x322   :  { %vm3280_vm11 = vweird.f32 %v6235_v0  ;;  %v6508_v46 = vmul.u32.u64.low %v6447_v60, %v3131_v44  ;;  %v6509_v8 = vmul.u32.u64.high %v6447_v60, %v3131_v44, %v6508_v46  ;;  %v1493_v55 = vshll.u32 %v6450_v38, %v1491_v24 }
 0x323   :  { %v6512_v14 = vmul.u32.u64.low %v6447_v60, %v3127_v11  ;;  %v6513_v59 = vmul.u32.u64.high %v6447_v60, %v3127_v11, %v6512_v14  ;;  %v1494_v1 = vshrl.u32 %v6445_v4, %v1492_v17  ;;  %v1497_v36 = vadd.s32 127, %v1496_v12 }
 0x324   :  { %vm1743_vm12 = vcmp.gt.s32.totalorder %v1742_v49, 0  ;;  %v1513_v22 = vadd.s32 3, %v1509_v28  ;;  %v3123_v48 = vsel %vm3117_vm8, %v3120_v26, %v3122_v5  ;;  %v1739_v16 = vand.u32 8388607, %v1732_v9 }
 0x325   :  { %v1744_v2 = vsel %vm1743_vm12, %v1742_v49, 0  ;;  %vm3287_vm13 = vcmp.eq.s32.totalorder %v6441_v20, 2  ;;  %v1495_v37 = vor.u32 %v1494_v1, %v1493_v55  ;;  %v1498_v61 = vshll.u32 %v1497_v36, 23 }
 0x326   :  { %v4243_v31 = vpop.eup %4242  ;;  %v1746_v51 = vand.u32 31, %v1744_v2  ;;  %vm3141_vm14 = vc.u32 %v6509_v8, %v6512_v14  ;;  %v3142_v4 = vadd.s32 1, %v6513_v59  ;;  %v6533_v43 = vadd.f32 %v6529_v47, %v6063_v40 }
 0x327   :  { %v4245_v53 = vpop.eup %4244  ;;  %v3288_v38 = vxor.u32 2147483648, %v4243_v31  ;;  %v1499_v56 = vor.u32 4788187, %v1498_v61  ;;  %v3139_v6 = vmul.u32 %v6447_v60, %v3123_v48  ;;  %v6536_v27 = vand.u32 3, %v1513_v22 }
 0x328   :  { %v3285_v45 = vxor.u32 2147483648, %v4245_v53  ;;  %v1747_v49 = vsub.s32 32, %v1746_v51  ;;  %v3143_v10 = vsel %vm3141_vm14, %v3142_v4, %v6513_v59  ;;  %v1740_v39 = vor.u32 8388608, %v1739_v16 }
 0x329   :  { %v3289_v18 = vsel %vm3287_vm13, %v3288_v38, %v4245_v53  ;;  %v1500_v34 = vand.u32 2147483647, %v1499_v56  ;;  %v1502_v52 = vcvt.s32.f32 %v1495_v37  ;;  %v3144_v13 = vadd.s32 %v3143_v10, %v3139_v6 }
 0x32a   :  { %v3286_v33 = vsel %vm3284_vm10, %v4243_v31, %v3285_v45  ;;  %v1749_v58 = vshll.u32 %v4315_v15, %v1746_v51  ;;  %v1750_v60 = vshrl.u32 %v4316_v19, %v1747_v49  ;;  %v1753_v50 = vshrl.u32 %v4317_v21, %v1747_v49 }
 0x32b   :  { %v3290_v40 = vsel %vm3283_vm9, %v3286_v33, %v3289_v18  ;;  %v1503_v24 = vmul.f32 %v1502_v52, %v1500_v34  ;;  %v3145_v28 = vadd.s32 536870912, %v3144_v13  ;;  %v1756_v11 = vshrl.u32 %v4318_v23, %v1747_v49 }
 0x32c   :  { %v3291_v63 = vsel %vm3280_vm11, nan, %v3290_v40  ;;  %v1745_v44 = vshrl.u32 %v1744_v2, 5  ;;  %v1752_v17 = vshll.u32 %v4316_v19, %v1746_v51  ;;  %v1755_v20 = vshll.u32 %v4317_v21, %v1746_v51 }
 0x32d   :  { %3735 = vst [vmem:[#allocation2 + $0xd8] sm:$0xff] %v3291_v63  ;;  %v1759_v12 = vshrl.u32 %v4319_v25, %v1747_v49  ;;  %v1504_v26 = vxor.u32 2147483648, %v1503_v24  ;;  %v3146_v5 = vshrl.u32 %v3145_v28, 30  ;;  %v1751_v46 = vor.u32 %v1750_v60, %v1749_v58 }
 0x32e   :  { %v1758_v59 = vshll.u32 %v4318_v23, %v1746_v51  ;;  %v1754_v55 = vor.u32 %v1753_v50, %v1752_v17  ;;  %v1757_v0 = vor.u32 %v1756_v11, %v1755_v20  ;;  %v1761_v1 = vshll.u32 %v4319_v25, %v1746_v51  ;;  %v6574_v50 = vpop.f32.mrb[15].mxu1 }
 0x32f   :  { %v1762_v36 = vshrl.u32 %v4320_v32, %v1747_v49  ;;  %v1505_v22 = vsel %vm1422_vm2, %v1504_v26, %v1503_v24  ;;  %v3147_v48 = vshll.u32 %v3146_v5, 30  ;;  %v6557_v2 = vshll.u32 %v1740_v39, 8 }
 0x330   :  { %v1760_v16 = vor.u32 %v1759_v12, %v1758_v59  ;;  %v1508_v31 = vsel %vm6459_vm3, %v6252_v57, %v1505_v22  ;;  %v1748_v37 = vshrl.u32 %v4315_v15, %v1747_v49  ;;  %v3399_v53 = vand.u32 2139095040, %v6533_v43 }
 0x331   :  { %v1763_v61 = vor.u32 %v1762_v36, %v1761_v1  ;;  %4246 = vcosq.f32 %v1508_v31  ;;  %v6564_v51 = vsub.s32 %v3144_v13, %v3147_v48  ;;  %vm1764_vm15 = vcmp.lt.s32.totalorder %v1745_v44, 1 }
 0x332   :  { %vm1767_vm0 = vcmp.lt.s32.totalorder %v1745_v44, 4  ;;  %4248 = vsinq.f32 %v1508_v31  ;;  %vm1765_vm1 = vcmp.lt.s32.totalorder %v1745_v44, 2  ;;  %v1772_v4 = vsel %vm1764_vm15, %v1751_v46, %v1754_v55 }
 0x333   :  { %v1769_v38 = vsel %vm1767_vm0, %v1757_v0, 2102212464  ;;  %v3150_v45 = vsub.s32 0, %v6564_v51  ;;  %v3170_v56 = vsub.s32 4, %v3146_v5  ;;  %vm1766_vm2 = vcmp.lt.s32.totalorder %v1745_v44, 3 }
 0x334   :  { %v1773_v7 = vsel %vm1767_vm0, %v1760_v16, 920167782  ;;  %v1768_v6 = vsel %vm1764_vm15, %v1748_v37, %v1751_v46  ;;  %v1776_v49 = vsel %vm1764_vm15, %v1754_v55, %v1757_v0  ;;  %v1777_v10 = vsel %vm1767_vm0, %v1763_v61, 1326507024 }
 0x335   :  { %v1774_v18 = vsel %vm1766_vm2, %v1757_v0, %v1773_v7  ;;  %v3894_v39 = vmin.u32 %v3150_v45, %v6564_v51  ;;  %v1770_v33 = vsel %vm1766_vm2, %v1754_v55, %v1769_v38  ;;  %v1778_v52 = vsel %vm1766_vm2, %v1760_v16, %v1777_v10 }
 0x336   :  { %v1775_v34 = vsel %vm1765_vm1, %v1772_v4, %v1774_v18  ;;  %v1779_v13 = vsel %vm1765_vm1, %v1776_v49, %v1778_v52  ;;  %v3400_v60 = vshrl.u32 %v3399_v53, 23  ;;  %vm6578_vm3 = vcmp.le.f32.partialorder %v3084_v3, 0.7853982 }
 0x337   :  { %v6571_v40 = vmul.u32.u64.low %v6557_v2, %v1775_v34  ;;  %v6572_v58 = vmul.u32.u64.high %v6557_v2, %v1775_v34, %v6571_v40  ;;  %vm3086_vm4 = vcmp.lt.s32.totalorder %v6283_v41, 0  ;;  %v3152_v24 = vclz %v3894_v39 }
 0x338   :  { %vm1512_vm5 = vweird.f32 %v6252_v57  ;;  %v3171_v28 = vsel %vm3086_vm4, %v3170_v56, %v3146_v5  ;;  %v6587_v11 = vmul.u32.u64.low %v6557_v2, %v1779_v13  ;;  %v6588_v17 = vmul.u32.u64.high %v6557_v2, %v1779_v13, %v6587_v11 }
 0x339   :  { %v3905_v20 = vadd.s32 4294967169, %v3400_v60  ;;  %v3895_v12 = vadd.s32 4294967294, %v3152_v24  ;;  %v1771_v26 = vsel %vm1765_vm1, %v1768_v6, %v1770_v33  ;;  %v3396_v3 = vand.u32 2147483647, %v6533_v43 }
 0x33a   :  { %v6594_v46 = vadd.f32 %v6529_v47, %v6155_v54  ;;  %vm1515_vm6 = vcmp.lt.s32.totalorder %v6536_v27, 2  ;;  %vm1516_vm7 = vcmp.eq.s32.totalorder %v6536_v27, 0  ;;  %v1790_v5 = vadd.s32 1, %v6572_v58 }
 0x33b   :  { %v3406_v59 = vadd.s32 1, %v3905_v20  ;;  %v4247_v55 = vpop.eup %4246  ;;  %vm1519_vm8 = vcmp.eq.s32.totalorder %v6536_v27, 2  ;;  %v3140_v44 = vadd.s32 %v6512_v14, %v6509_v8  ;;  %vm3896_vm10 = vcmp.lt.s32.totalorder %v3895_v12, 0 }
 0x33c   :  { %v3173_v0 = vsel %vm6578_vm3, 0, %v3171_v28  ;;  %v4249_v1 = vpop.eup %4248  ;;  %v1520_v54 = vxor.u32 2147483648, %v4247_v55  ;;  %v3155_v36 = vsel %vm3896_vm10, 0, %v3895_v12  ;;  %v1787_v22 = vmul.u32 %v6557_v2, %v1771_v26 }
 0x33d   :  { %vm1789_vm9 = vc.u32 %v6588_v17, %v6571_v40  ;;  %v1517_v48 = vxor.u32 2147483648, %v4249_v1  ;;  %v3156_v16 = vsub.s32 32, %v3155_v36  ;;  %v3160_v31 = vsub.s32 4294967266, %v3155_v36 }
 0x33e   :  { %v3403_v37 = vand.u32 8388607, %v3396_v3  ;;  %v1521_v61 = vsel %vm1519_vm8, %v1520_v54, %v4249_v1  ;;  %v3157_v8 = vshll.u32 %v6564_v51, %v3155_v36  ;;  %v1791_v14 = vsel %vm1789_vm9, %v1790_v5, %v6572_v58 }
 0x33f   :  { %vm3407_vm11 = vcmp.gt.s32.totalorder %v3406_v59, 0  ;;  %v1518_v53 = vsel %vm1516_vm7, %v4247_v55, %v1517_v48  ;;  %v3158_v38 = vshrl.u32 %v3140_v44, %v3156_v16  ;;  %v3161_v4 = vadd.s32 127, %v3160_v31 }
 0x340   :  { %v1792_v2 = vadd.s32 %v1791_v14, %v1787_v22  ;;  %v1522_v45 = vsel %vm1515_vm6, %v1518_v53, %v1521_v61  ;;  %v3177_v56 = vadd.s32 3, %v3173_v0  ;;  %v3408_v7 = vsel %vm3407_vm11, %v3406_v59, 0 }
 0x341   :  { %v1628_v6 = vand.u32 2147483647, %v6594_v46  ;;  %v1523_v18 = vsel %vm1512_vm5, nan, %v1522_v45  ;;  %v3159_v51 = vor.u32 %v3158_v38, %v3157_v8  ;;  %v3162_v49 = vshll.u32 %v3161_v4, 23 }
 0x342   :  { %v1793_v10 = vadd.s32 536870912, %v1792_v2  ;;  %3718 = vst [vmem:[#allocation2 + $0x50] sm:$0xff] %v1523_v18  ;;  %v3404_v39 = vor.u32 8388608, %v3403_v37  ;;  %v3410_v33 = vand.u32 31, %v3408_v7  ;;  %v6619_v13 = vand.u32 3, %v3177_v56 }
 0x343   :  { %v3163_v34 = vor.u32 4788187, %v3162_v49  ;;  %v1631_v58 = vand.u32 2139095040, %v6594_v46  ;;  %v6624_v60 = vand.u32 8388607, %v1628_v6  ;;  %v3166_v24 = vcvt.s32.f32 %v3159_v51 }
 0x344   :  { %v6617_v52 = vshrl.u32 %v1793_v10, 30  ;;  %v3411_v27 = vsub.s32 32, %v3410_v33  ;;  %v6627_v28 = vadd.s32 %v6571_v40, %v6588_v17  ;;  %v6633_v5 = vshll.u32 %v3404_v39, 8 }
 0x345   :  { %v3164_v57 = vand.u32 2147483647, %v3163_v34  ;;  %v3413_v44 = vshll.u32 %v4315_v15, %v3410_v33  ;;  %v3409_v1 = vshrl.u32 %v3408_v7, 5  ;;  %v3416_v40 = vshll.u32 %v4316_v19, %v3410_v33 }
 0x346   :  { %v1795_v11 = vshll.u32 %v6617_v52, 30  ;;  %v3414_v20 = vshrl.u32 %v4316_v19, %v3411_v27  ;;  %v3417_v12 = vshrl.u32 %v4317_v21, %v3411_v27  ;;  %v3420_v26 = vshrl.u32 %v4318_v23, %v3411_v27 }
 0x347   :  { %v3167_v59 = vmul.f32 %v3166_v24, %v3164_v57  ;;  %v3423_v0 = vshrl.u32 %v4319_v25, %v3411_v27  ;;  %v3419_v17 = vshll.u32 %v4317_v21, %v3410_v33  ;;  %v1632_v54 = vshrl.u32 %v1631_v58, 23 }
 0x348   :  { %v6635_v55 = vsub.s32 %v1792_v2, %v1795_v11  ;;  %v3415_v48 = vor.u32 %v3414_v20, %v3413_v44  ;;  %v3422_v16 = vshll.u32 %v4318_v23, %v3410_v33  ;;  %v3418_v31 = vor.u32 %v3417_v12, %v3416_v40 }
 0x349   :  { %v3168_v36 = vxor.u32 2147483648, %v3167_v59  ;;  %v3421_v37 = vor.u32 %v3420_v26, %v3419_v17  ;;  %v3425_v61 = vshll.u32 %v4319_v25, %v3410_v33  ;;  %v3426_v8 = vshrl.u32 %v4320_v32, %v3411_v27 }
 0x34a   :  { %v1798_v22 = vsub.s32 0, %v6635_v55  ;;  %v3424_v38 = vor.u32 %v3423_v0, %v3422_v16  ;;  %v1636_v4 = vor.u32 8388608, %v6624_v60  ;;  %v3412_v45 = vshrl.u32 %v4315_v15, %v3411_v27 }
 0x34b   :  { %v3169_v14 = vsel %vm3086_vm4, %v3168_v36, %v3167_v59  ;;  %v3427_v56 = vor.u32 %v3426_v8, %v3425_v61  ;;  %v3837_v7 = vadd.s32 4294967169, %v1632_v54  ;;  %vm3428_vm12 = vcmp.lt.s32.totalorder %v3409_v1, 1 }
 0x34c   :  { %v3842_v53 = vmin.u32 %v1798_v22, %v6635_v55  ;;  %v3172_v2 = vsel %vm6578_vm3, %v6283_v41, %v3169_v14  ;;  %vm3431_vm13 = vcmp.lt.s32.totalorder %v3409_v1, 4  ;;  %vm1734_vm14 = vcmp.lt.s32.totalorder %v6416_v42, 0 }
 0x34d   :  { %4250 = vcosq.f32 %v3172_v2  ;;  %vm3429_vm15 = vcmp.lt.s32.totalorder %v3409_v1, 2  ;;  %v3433_v51 = vsel %vm3431_vm13, %v3421_v37, 2102212464  ;;  %v3436_v49 = vsel %vm3428_vm12, %v3415_v48, %v3418_v31 }
 0x34e   :  { %v1800_v18 = vclz %v3842_v53  ;;  %4252 = vsinq.f32 %v3172_v2  ;;  %vm3430_vm0 = vcmp.lt.s32.totalorder %v3409_v1, 3  ;;  %v3437_v39 = vsel %vm3431_vm13, %v3424_v38, 920167782 }
 0x34f   :  { %v3440_v33 = vsel %vm3428_vm12, %v3418_v31, %v3421_v37  ;;  %v3432_v63 = vsel %vm3428_vm12, %v3412_v45, %v3415_v48  ;;  %v3438_v34 = vsel %vm3430_vm0, %v3421_v37, %v3437_v39  ;;  %v3441_v58 = vsel %vm3431_vm13, %v3427_v56, 1326507024 }
 0x350   :  { %v3843_v10 = vadd.s32 4294967294, %v1800_v18  ;;  %v1638_v27 = vadd.s32 1, %v3837_v7  ;;  %v3434_v60 = vsel %vm3430_vm0, %v3418_v31, %v3433_v51  ;;  %v3439_v57 = vsel %vm3429_vm15, %v3436_v49, %v3438_v34 }
 0x351   :  { %v3442_v24 = vsel %vm3430_vm0, %v3424_v38, %v3441_v58  ;;  %v6657_v12 = vmul.u32.u64.low %v6633_v5, %v3439_v57  ;;  %v6658_v26 = vmul.u32.u64.high %v6633_v5, %v3439_v57, %v6657_v12  ;;  %v1818_v0 = vsub.s32 4, %v6617_v52 }
 0x352   :  { %vm3844_vm1 = vcmp.lt.s32.totalorder %v3843_v10, 0  ;;  %v3443_v20 = vsel %vm3429_vm15, %v3440_v33, %v3442_v24  ;;  %vm1639_vm2 = vcmp.gt.s32.totalorder %v1638_v27, 0  ;;  %vm3176_vm3 = vweird.f32 %v6283_v41 }
 0x353   :  { %v1803_v11 = vsel %vm3844_vm1, 0, %v3843_v10  ;;  %v3435_v40 = vsel %vm3429_vm15, %v3432_v63, %v3434_v60  ;;  %v6665_v17 = vmul.u32.u64.low %v6633_v5, %v3443_v20  ;;  %v6666_v54 = vmul.u32.u64.high %v6633_v5, %v3443_v20, %v6665_v17 }
 0x354   :  { %v1804_v59 = vsub.s32 32, %v1803_v11  ;;  %v1808_v44 = vsub.s32 4294967266, %v1803_v11  ;;  %v1640_v36 = vsel %vm1639_vm2, %v1638_v27, 0  ;;  %v1805_v22 = vshll.u32 %v6635_v55, %v1803_v11 }
 0x355   :  { %v1642_v31 = vand.u32 31, %v1640_v36  ;;  %vm3179_vm4 = vcmp.lt.s32.totalorder %v6619_v13, 2  ;;  %vm3180_vm5 = vcmp.eq.s32.totalorder %v6619_v13, 0  ;;  %vm6674_vm6 = vcmp.le.f32.partialorder %v1732_v9, 0.7853982 }
 0x356   :  { %v1806_v48 = vshrl.u32 %v6627_v28, %v1804_v59  ;;  %v1809_v16 = vadd.s32 127, %v1808_v44  ;;  %v3454_v37 = vadd.s32 1, %v6658_v26  ;;  %vm3183_vm7 = vcmp.eq.s32.totalorder %v6619_v13, 2 }
 0x357   :  { %v4251_v61 = vpop.eup %4250  ;;  %v1819_v28 = vsel %vm1734_vm14, %v1818_v0, %v6617_v52  ;;  %v3451_v38 = vmul.u32 %v6633_v5, %v3435_v40  ;;  %vm3453_vm8 = vc.u32 %v6666_v54, %v6657_v12  ;;  %v1643_v9 = vsub.s32 32, %v1642_v31 }
 0x358   :  { %v1807_v55 = vor.u32 %v1806_v48, %v1805_v22  ;;  %v1810_v8 = vshll.u32 %v1809_v16, 23  ;;  %v4253_v14 = vpop.eup %4252  ;;  %v3184_v53 = vxor.u32 2147483648, %v4251_v61  ;;  %v3455_v56 = vsel %vm3453_vm8, %v3454_v37, %v6658_v26 }
 0x359   :  { %v3181_v2 = vxor.u32 2147483648, %v4253_v14  ;;  %v6687_v7 = vshll.u32 %v1636_v4, 8  ;;  %v1821_v51 = vsel %vm6674_vm6, 0, %v1819_v28  ;;  %v3456_v49 = vadd.s32 %v3455_v56, %v3451_v38 }
 0x35a   :  { %v1811_v45 = vor.u32 4788187, %v1810_v8  ;;  %v3185_v18 = vsel %vm3183_vm7, %v3184_v53, %v4253_v14  ;;  %v6693_v52 = vadd.f32 %v6529_v47, %v6237_v35  ;;  %v1814_v39 = vcvt.s32.f32 %v1807_v55 }
 0x35b   :  { %v3182_v5 = vsel %vm3180_vm5, %v4251_v61, %v3181_v2  ;;  %v6697_v33 = vshrl.u32 %v1640_v36, 5  ;;  %v3457_v63 = vadd.s32 536870912, %v3456_v49  ;;  %v1646_v34 = vshrl.u32 %v4316_v19, %v1643_v9 }
 0x35c   :  { %v1812_v10 = vand.u32 2147483647, %v1811_v45  ;;  %v3186_v4 = vsel %vm3179_vm4, %v3182_v5, %v3185_v18  ;;  %v1649_v58 = vshrl.u32 %v4317_v21, %v1643_v9  ;;  %v1645_v60 = vshll.u32 %v4315_v15, %v1642_v31 }
 0x35d   :  { %v3187_v27 = vsel %vm3176_vm3, nan, %v3186_v4  ;;  %v1652_v57 = vshrl.u32 %v4318_v23, %v1643_v9  ;;  %v3458_v24 = vshrl.u32 %v3457_v63, 30  ;;  %v1648_v11 = vshll.u32 %v4316_v19, %v1642_v31 }
 0x35e   :  { %v1815_v35 = vmul.f32 %v1814_v39, %v1812_v10  ;;  %3734 = vst [vmem:[#allocation2 + $0xd0] sm:$0xff] %v3187_v27  ;;  %v1651_v13 = vshll.u32 %v4317_v21, %v1642_v31  ;;  %v1655_v20 = vshrl.u32 %v4319_v25, %v1643_v9  ;;  %v1654_v59 = vshll.u32 %v4318_v23, %v1642_v31 }
 0x35f   :  { %v1657_v44 = vshll.u32 %v4319_v25, %v1642_v31  ;;  %v1658_v41 = vshrl.u32 %v4320_v32, %v1643_v9  ;;  %v1825_v0 = vadd.s32 3, %v1821_v51  ;;  %v3459_v40 = vshll.u32 %v3458_v24, 30 }
 0x360   :  { %v1816_v26 = vxor.u32 2147483648, %v1815_v35  ;;  %v1647_v17 = vor.u32 %v1646_v34, %v1645_v60  ;;  %v1650_v36 = vor.u32 %v1649_v58, %v1648_v11  ;;  %v1653_v48 = vor.u32 %v1652_v57, %v1651_v13 }
 0x361   :  { %v1656_v16 = vor.u32 %v1655_v20, %v1654_v59  ;;  %v1659_v37 = vor.u32 %v1658_v41, %v1657_v44  ;;  %v6718_v55 = vsub.s32 %v3456_v49, %v3459_v40  ;;  %v1644_v31 = vshrl.u32 %v4315_v15, %v1643_v9 }
 0x362   :  { %v1817_v22 = vsel %vm1734_vm14, %v1816_v26, %v1815_v35  ;;  %v3295_v8 = vand.u32 2139095040, %v6693_v52  ;;  %vm1660_vm10 = vcmp.lt.s32.totalorder %v6697_v33, 1  ;;  %vm1661_vm9 = vcmp.lt.s32.totalorder %v6697_v33, 2 }
 0x363   :  { %v1820_v61 = vsel %vm6674_vm6, %v6416_v42, %v1817_v22  ;;  %vm1662_vm11 = vcmp.lt.s32.totalorder %v6697_v33, 3  ;;  %v3462_v28 = vsub.s32 0, %v6718_v55  ;;  %vm1663_vm12 = vcmp.lt.s32.totalorder %v6697_v33, 4 }
 0x364   :  { %4254 = vcosq.f32 %v1820_v61  ;;  %v1668_v1 = vsel %vm1660_vm10, %v1647_v17, %v1650_v36  ;;  %v1665_v14 = vsel %vm1663_vm12, %v1653_v48, 2102212464  ;;  %v1669_v53 = vsel %vm1663_vm12, %v1656_v16, 920167782 }
 0x365   :  { %4256 = vsinq.f32 %v1820_v61  ;;  %v1672_v38 = vsel %vm1660_vm10, %v1650_v36, %v1653_v48  ;;  %v1673_v9 = vsel %vm1663_vm12, %v1659_v37, 1326507024  ;;  %v3906_v2 = vmin.u32 %v3462_v28, %v6718_v55 }
 0x366   :  { %v3482_v45 = vsub.s32 4, %v3458_v24  ;;  %v1670_v56 = vsel %vm1662_vm11, %v1653_v48, %v1669_v53  ;;  %v1674_v18 = vsel %vm1662_vm11, %v1656_v16, %v1673_v9  ;;  %v1826_v51 = vand.u32 3, %v1825_v0 }
 0x367   :  { %v1671_v49 = vsel %vm1661_vm9, %v1668_v1, %v1670_v56  ;;  %v1675_v5 = vsel %vm1661_vm9, %v1672_v38, %v1674_v18  ;;  %v3296_v10 = vshrl.u32 %v3295_v8, 23  ;;  %vm3398_vm13 = vcmp.lt.s32.totalorder %v6533_v43, 0 }
 0x368   :  { %v3464_v39 = vclz %v3906_v2  ;;  %v1664_v4 = vsel %vm1660_vm10, %v1644_v31, %v1647_v17  ;;  %v1666_v63 = vsel %vm1662_vm11, %v1650_v36, %v1665_v14  ;;  %vm1824_vm14 = vweird.f32 %v6416_v42 }
 0x369   :  { %v6746_v34 = vmul.u32.u64.low %v6687_v7, %v1675_v5  ;;  %v6747_v58 = vmul.u32.u64.high %v6687_v7, %v1675_v5, %v6746_v34  ;;  %v6750_v27 = vmul.u32.u64.low %v6687_v7, %v1671_v49  ;;  %v6751_v35 = vmul.u32.u64.high %v6687_v7, %v1671_v49, %v6750_v27 }
 0x36a   :  { %vm6757_vm15 = vcmp.le.f32.partialorder %v3396_v3, 0.7853982  ;;  %v3907_v57 = vadd.s32 4294967294, %v3464_v39  ;;  %v3483_v11 = vsel %vm3398_vm13, %v3482_v45, %v3458_v24  ;;  %v3901_v13 = vadd.s32 4294967169, %v3296_v10 }
 0x36b   :  { %vm1827_vm0 = vcmp.lt.s32.totalorder %v1826_v51, 2  ;;  %vm1828_vm1 = vcmp.eq.s32.totalorder %v1826_v51, 0  ;;  %vm1831_vm2 = vcmp.eq.s32.totalorder %v1826_v51, 2  ;;  %v1667_v20 = vsel %vm1661_vm9, %v1664_v4, %v1666_v63 }
 0x36c   :  { %v3452_v26 = vadd.s32 %v6657_v12, %v6666_v54  ;;  %vm3908_vm3 = vcmp.lt.s32.totalorder %v3907_v57, 0  ;;  %v3292_v3 = vand.u32 2147483647, %v6693_v52  ;;  %v3302_v59 = vadd.s32 1, %v3901_v13 }
 0x36d   :  { %v3467_v41 = vsel %vm3908_vm3, 0, %v3907_v57  ;;  %v3485_v0 = vsel %vm6757_vm15, 0, %v3483_v11  ;;  %vm1685_vm4 = vc.u32 %v6747_v58, %v6750_v27  ;;  %v1686_v24 = vadd.s32 1, %v6751_v35 }
 0x36e   :  { %v4255_v44 = vpop.eup %4254  ;;  %v3468_v17 = vsub.s32 32, %v3467_v41  ;;  %v3472_v36 = vsub.s32 4294967266, %v3467_v41  ;;  %v1683_v12 = vmul.u32 %v6687_v7, %v1667_v20  ;;  %v3469_v22 = vshll.u32 %v6718_v55, %v3467_v41 }
 0x36f   :  { %v4257_v40 = vpop.eup %4256  ;;  %v1832_v33 = vxor.u32 2147483648, %v4255_v44  ;;  %v1687_v48 = vsel %vm1685_vm4, %v1686_v24, %v6751_v35  ;;  %vm3303_vm5 = vcmp.gt.s32.totalorder %v3302_v59, 0  ;;  %v3489_v28 = vadd.s32 3, %v3485_v0 }
 0x370   :  { %v1829_v54 = vxor.u32 2147483648, %v4257_v40  ;;  %v3470_v37 = vshrl.u32 %v3452_v26, %v3468_v17  ;;  %v3473_v61 = vadd.s32 127, %v3472_v36  ;;  %v1688_v31 = vadd.s32 %v1687_v48, %v1683_v12 }
 0x371   :  { %v1833_v16 = vsel %vm1831_vm2, %v1832_v33, %v4257_v40  ;;  %v3299_v1 = vand.u32 8388607, %v3292_v3  ;;  %v3304_v14 = vsel %vm3303_vm5, %v3302_v59, 0  ;;  %v6785_v39 = vand.u32 3, %v3489_v28 }
 0x372   :  { %v1830_v8 = vsel %vm1828_vm1, %v4255_v44, %v1829_v54  ;;  %v3471_v53 = vor.u32 %v3470_v37, %v3469_v22  ;;  %v3474_v38 = vshll.u32 %v3473_v61, 23  ;;  %v1689_v55 = vadd.s32 536870912, %v1688_v31 }
 0x373   :  { %v1834_v7 = vsel %vm1827_vm0, %v1830_v8, %v1833_v16  ;;  %v3306_v2 = vand.u32 31, %v3304_v14  ;;  %v3300_v18 = vor.u32 8388608, %v3299_v1  ;;  %v6793_v34 = vadd.f32 %v6529_v47, %v6346_v29 }
 0x374   :  { %v1835_v9 = vsel %vm1824_vm14, nan, %v1834_v7  ;;  %v3475_v45 = vor.u32 4788187, %v3474_v38  ;;  %v6783_v56 = vshrl.u32 %v1689_v55, 30  ;;  %v3478_v10 = vcvt.s32.f32 %v3471_v53 }
 0x375   :  { %3721 = vst [vmem:[#allocation2 + $0x68] sm:$0xff] %v1835_v9  ;;  %v3307_v49 = vsub.s32 32, %v3306_v2  ;;  %v3309_v11 = vshll.u32 %v4315_v15, %v3306_v2  ;;  %v3305_v20 = vshrl.u32 %v3304_v14, 5  ;;  %v3312_v26 = vshll.u32 %v4316_v19, %v3306_v2 }
 0x376   :  { %v3476_v5 = vand.u32 2147483647, %v3475_v45  ;;  %v1691_v51 = vshll.u32 %v6783_v56, 30  ;;  %v3315_v59 = vshll.u32 %v4317_v21, %v3306_v2  ;;  %v6801_v44 = vshll.u32 %v3300_v18, 8 }
 0x377   :  { %v3310_v4 = vshrl.u32 %v4316_v19, %v3307_v49  ;;  %v3313_v63 = vshrl.u32 %v4317_v21, %v3307_v49  ;;  %v3316_v42 = vshrl.u32 %v4318_v23, %v3307_v49  ;;  %v3319_v13 = vshrl.u32 %v4319_v25, %v3307_v49 }
 0x378   :  { %v3479_v35 = vmul.f32 %v3478_v10, %v3476_v5  ;;  %v6795_v57 = vsub.s32 %v1688_v31, %v1691_v51  ;;  %v3318_v29 = vshll.u32 %v4318_v23, %v3306_v2  ;;  %v3321_v17 = vshll.u32 %v4319_v25, %v3306_v2 }
 0x379   :  { %v3311_v24 = vor.u32 %v3310_v4, %v3309_v11  ;;  %v3314_v40 = vor.u32 %v3313_v63, %v3312_v26  ;;  %v3317_v33 = vor.u32 %v3316_v42, %v3315_v59  ;;  %v3322_v36 = vshrl.u32 %v4320_v32, %v3307_v49 }
 0x37a   :  { %v3480_v41 = vxor.u32 2147483648, %v3479_v35  ;;  %v1694_v0 = vsub.s32 0, %v6795_v57  ;;  %v3320_v22 = vor.u32 %v3319_v13, %v3318_v29  ;;  %v1943_v48 = vand.u32 2139095040, %v6793_v34 }
 0x37b   :  { %v1714_v37 = vsub.s32 4, %v6783_v56  ;;  %v3308_v61 = vshrl.u32 %v4315_v15, %v3307_v49  ;;  %v3323_v31 = vor.u32 %v3322_v36, %v3321_v17  ;;  %vm1630_vm6 = vcmp.lt.s32.totalorder %v6594_v46, 0 }
 0x37c   :  { %v3481_v12 = vsel %vm3398_vm13, %v3480_v41, %v3479_v35  ;;  %v3838_v54 = vmin.u32 %v1694_v0, %v6795_v57  ;;  %vm3324_vm7 = vcmp.lt.s32.totalorder %v3305_v20, 1  ;;  %vm3327_vm8 = vcmp.lt.s32.totalorder %v3305_v20, 4 }
 0x37d   :  { %v3484_v16 = vsel %vm6757_vm15, %v6533_v43, %v3481_v12  ;;  %vm3325_vm10 = vcmp.lt.s32.totalorder %v3305_v20, 2  ;;  %v3329_v28 = vsel %vm3327_vm8, %v3317_v33, 2102212464  ;;  %v3332_v1 = vsel %vm3324_vm7, %v3311_v24, %v3314_v40 }
 0x37e   :  { %4258 = vcosq.f32 %v3484_v16  ;;  %v1696_v8 = vclz %v3838_v54  ;;  %vm3326_vm9 = vcmp.lt.s32.totalorder %v3305_v20, 3  ;;  %v3333_v7 = vsel %vm3327_vm8, %v3320_v22, 920167782 }
 0x37f   :  { %4260 = vsinq.f32 %v3484_v16  ;;  %v3336_v60 = vsel %vm3324_vm7, %v3314_v40, %v3317_v33  ;;  %vm6819_vm11 = vcmp.le.f32.partialorder %v1628_v6, 0.7853982  ;;  %v3328_v38 = vsel %vm3324_vm7, %v3308_v61, %v3311_v24 }
 0x380   :  { %v3839_v14 = vadd.s32 4294967294, %v1696_v8  ;;  %v3334_v55 = vsel %vm3326_vm9, %v3317_v33, %v3333_v7  ;;  %v3337_v9 = vsel %vm3327_vm8, %v3323_v31, 1326507024  ;;  %v1944_v2 = vshrl.u32 %v1943_v48, 23 }
 0x381   :  { %v3330_v45 = vsel %vm3326_vm9, %v3314_v40, %v3329_v28  ;;  %v3335_v18 = vsel %vm3325_vm10, %v3332_v1, %v3334_v55  ;;  %v3338_v49 = vsel %vm3326_vm9, %v3320_v22, %v3337_v9  ;;  %vm3491_vm13 = vcmp.lt.s32.totalorder %v6785_v39, 2 }
 0x382   :  { %vm3840_vm12 = vcmp.lt.s32.totalorder %v3839_v14, 0  ;;  %v3339_v10 = vsel %vm3325_vm10, %v3336_v60, %v3338_v49  ;;  %v6826_v51 = vmul.u32.u64.low %v6801_v44, %v3335_v18  ;;  %v6827_v4 = vmul.u32.u64.high %v6801_v44, %v3335_v18, %v6826_v51 }
 0x383   :  { %v1699_v5 = vsel %vm3840_vm12, 0, %v3839_v14  ;;  %v1684_v6 = vadd.s32 %v6750_v27, %v6747_v58  ;;  %v3849_v35 = vadd.s32 4294967169, %v1944_v2  ;;  %vm3488_vm14 = vweird.f32 %v6533_v43 }
 0x384   :  { %v1700_v63 = vsub.s32 32, %v1699_v5  ;;  %v1704_v42 = vsub.s32 4294967266, %v1699_v5  ;;  %vm3492_vm15 = vcmp.eq.s32.totalorder %v6785_v39, 0  ;;  %v3331_v11 = vsel %vm3325_vm10, %v3328_v38, %v3330_v45 }
 0x385   :  { %v6837_v13 = vmul.u32.u64.low %v6801_v44, %v3339_v10  ;;  %v6838_v26 = vmul.u32.u64.high %v6801_v44, %v3339_v10, %v6837_v13  ;;  %v1701_v59 = vshll.u32 %v6795_v57, %v1699_v5  ;;  %v1950_v24 = vadd.s32 1, %v3849_v35 }
 0x386   :  { %v1702_v41 = vshrl.u32 %v1684_v6, %v1700_v63  ;;  %v1705_v0 = vadd.s32 127, %v1704_v42  ;;  %vm3495_vm0 = vcmp.eq.s32.totalorder %v6785_v39, 2  ;;  %v1715_v58 = vsel %vm1630_vm6, %v1714_v37, %v6783_v56 }
 0x387   :  { %v3350_v27 = vadd.s32 1, %v6827_v4  ;;  %v6848_v20 = vadd.f32 %v6529_v47, %v6418_v30  ;;  %v1940_v57 = vand.u32 2147483647, %v6793_v34  ;;  %vm1951_vm1 = vcmp.gt.s32.totalorder %v1950_v24, 0 }
 0x388   :  { %v4259_v29 = vpop.eup %4258  ;;  %v1703_v40 = vor.u32 %v1702_v41, %v1701_v59  ;;  %v1706_v33 = vshll.u32 %v1705_v0, 23  ;;  %v3347_v12 = vmul.u32 %v6801_v44, %v3331_v11  ;;  %vm3349_vm2 = vc.u32 %v6838_v26, %v6826_v51 }
 0x389   :  { %v4261_v17 = vpop.eup %4260  ;;  %v3496_v36 = vxor.u32 2147483648, %v4259_v29  ;;  %v1952_v56 = vsel %vm1951_vm1, %v1950_v24, 0  ;;  %v1717_v30 = vsel %vm6819_vm11, 0, %v1715_v58  ;;  %v3351_v48 = vsel %vm3349_vm2, %v3350_v27, %v6827_v4 }
 0x38a   :  { %v3493_v54 = vxor.u32 2147483648, %v4261_v17  ;;  %v1707_v22 = vor.u32 4788187, %v1706_v33  ;;  %v3352_v37 = vadd.s32 %v3351_v48, %v3347_v12  ;;  %v1954_v61 = vand.u32 31, %v1952_v56 }
 0x38b   :  { %v3497_v16 = vsel %vm3495_vm0, %v3496_v36, %v4261_v17  ;;  %v6861_v31 = vadd.f32 %v6529_v47, %v6499_v62  ;;  %v1710_v28 = vcvt.s32.f32 %v1703_v40  ;;  %v1947_v1 = vand.u32 8388607, %v1940_v57 }
 0x38c   :  { %v3494_v44 = vsel %vm3492_vm15, %v4259_v29, %v3493_v54  ;;  %v1708_v8 = vand.u32 2147483647, %v1707_v22  ;;  %v1721_v7 = vadd.s32 3, %v1717_v30  ;;  %v3353_v60 = vadd.s32 536870912, %v3352_v37 }
 0x38d   :  { %v3498_v14 = vsel %vm3491_vm13, %v3494_v44, %v3497_v16  ;;  %v1955_v38 = vsub.s32 32, %v1954_v61  ;;  %v1957_v62 = vshll.u32 %v4315_v15, %v1954_v61  ;;  %v1960_v47 = vshll.u32 %v4316_v19, %v1954_v61 }
 0x38e   :  { %v3499_v55 = vsel %vm3488_vm14, nan, %v3498_v14  ;;  %v1711_v9 = vmul.f32 %v1710_v28, %v1708_v8  ;;  %v6873_v2 = vshrl.u32 %v3353_v60, 30  ;;  %v1963_v39 = vshll.u32 %v4317_v21, %v1954_v61 }
 0x38f   :  { %3737 = vst [vmem:[#allocation2 + $0xe8] sm:$0xff] %v3499_v55  ;;  %v1958_v45 = vshrl.u32 %v4316_v19, %v1955_v38  ;;  %v1961_v18 = vshrl.u32 %v4317_v21, %v1955_v38  ;;  %v1964_v5 = vshrl.u32 %v4318_v23, %v1955_v38  ;;  %v1966_v43 = vshll.u32 %v4318_v23, %v1954_v61 }
 0x390   :  { %v1712_v49 = vxor.u32 2147483648, %v1711_v9  ;;  %v1967_v10 = vshrl.u32 %v4319_v25, %v1955_v38  ;;  %v3355_v4 = vshll.u32 %v6873_v2, 30  ;;  %v1953_v6 = vshrl.u32 %v1952_v56, 5 }
 0x391   :  { %v1959_v63 = vor.u32 %v1958_v45, %v1957_v62  ;;  %v3607_v42 = vand.u32 2139095040, %v6848_v20  ;;  %v1962_v11 = vor.u32 %v1961_v18, %v1960_v47  ;;  %v1965_v13 = vor.u32 %v1964_v5, %v1963_v39 }
 0x392   :  { %v1713_v35 = vsel %vm1630_vm6, %v1712_v49, %v1711_v9  ;;  %v1968_v59 = vor.u32 %v1967_v10, %v1966_v43  ;;  %v6888_v0 = vsub.s32 %v3352_v37, %v3355_v4  ;;  %v1969_v24 = vshll.u32 %v4319_v25, %v1954_v61 }
 0x393   :  { %v1716_v41 = vsel %vm6819_vm11, %v6594_v46, %v1713_v35  ;;  %v1970_v58 = vshrl.u32 %v4320_v32, %v1955_v38  ;;  %v6892_v27 = vand.u32 3, %v1721_v7  ;;  %v1948_v29 = vor.u32 8388608, %v1947_v1 }
 0x394   :  { %4262 = vcosq.f32 %v1716_v41  ;;  %v3604_v40 = vand.u32 2147483647, %v6848_v20  ;;  %vm3294_vm3 = vcmp.lt.s32.totalorder %v6693_v52, 0  ;;  %v3358_v33 = vsub.s32 0, %v6888_v0 }
 0x395   :  { %4264 = vsinq.f32 %v1716_v41  ;;  %v1971_v17 = vor.u32 %v1970_v58, %v1969_v24  ;;  %v3608_v53 = vshrl.u32 %v3607_v42, 23  ;;  %v1956_v36 = vshrl.u32 %v4315_v15, %v1955_v38 }
 0x396   :  { %vm1972_vm4 = vcmp.lt.s32.totalorder %v1953_v6, 1  ;;  %vm1974_vm5 = vcmp.lt.s32.totalorder %v1953_v6, 3  ;;  %vm1975_vm6 = vcmp.lt.s32.totalorder %v1953_v6, 4  ;;  %v3902_v12 = vmin.u32 %v3358_v33, %v6888_v0 }
 0x397   :  { %v1977_v56 = vsel %vm1975_vm6, %v1965_v13, 2102212464  ;;  %v1980_v54 = vsel %vm1972_vm4, %v1959_v63, %v1962_v11  ;;  %v1981_v22 = vsel %vm1975_vm6, %v1968_v59, 920167782  ;;  %v1984_v48 = vsel %vm1972_vm4, %v1962_v11, %v1965_v13 }
 0x398   :  { %v1982_v30 = vsel %vm1974_vm5, %v1965_v13, %v1981_v22  ;;  %v1985_v16 = vsel %vm1975_vm6, %v1971_v17, 1326507024  ;;  %v1988_v37 = vshll.u32 %v1948_v29, 8  ;;  %vm6902_vm7 = vcmp.le.f32.partialorder %v3292_v3, 0.7853982 }
 0x399   :  { %v3360_v44 = vclz %v3902_v12  ;;  %vm1973_vm8 = vcmp.lt.s32.totalorder %v1953_v6, 2  ;;  %v1976_v8 = vsel %vm1972_vm4, %v1956_v36, %v1959_v63  ;;  %v1978_v28 = vsel %vm1974_vm5, %v1962_v11, %v1977_v56 }
 0x39a   :  { %v3378_v1 = vsub.s32 4, %v6873_v2  ;;  %v1983_v14 = vsel %vm1973_vm8, %v1980_v54, %v1982_v30  ;;  %v1986_v7 = vsel %vm1974_vm5, %v1968_v59, %v1985_v16  ;;  %v3913_v60 = vadd.s32 4294967169, %v3608_v53 }
 0x39b   :  { %vm1720_vm10 = vweird.f32 %v6594_v46  ;;  %v3903_v38 = vadd.s32 4294967294, %v3360_v44  ;;  %v1987_v55 = vsel %vm1973_vm8, %v1984_v48, %v1986_v7  ;;  %vm1723_vm9 = vcmp.lt.s32.totalorder %v6892_v27, 2 }
 0x39c   :  { %v6910_v9 = vmul.u32.u64.low %v1988_v37, %v1983_v14  ;;  %v6911_v3 = vmul.u32.u64.high %v1988_v37, %v1983_v14, %v6910_v9  ;;  %v1979_v62 = vsel %vm1973_vm8, %v1976_v8, %v1978_v28  ;;  %vm1724_vm11 = vcmp.eq.s32.totalorder %v6892_v27, 0 }
 0x39d   :  { %v6915_v47 = vmul.u32.u64.low %v1988_v37, %v1987_v55  ;;  %v6916_v45 = vmul.u32.u64.high %v1988_v37, %v1987_v55, %v6915_v47  ;;  %vm1727_vm12 = vcmp.eq.s32.totalorder %v6892_v27, 2  ;;  %vm3904_vm13 = vcmp.lt.s32.totalorder %v3903_v38, 0 }
 0x39e   :  { %v3614_v18 = vadd.s32 1, %v3913_v60  ;;  %v4263_v39 = vpop.eup %4262  ;;  %v3348_v49 = vadd.s32 %v6826_v51, %v6838_v26  ;;  %v3363_v5 = vsel %vm3904_vm13, 0, %v3903_v38  ;;  %v3379_v43 = vsel %vm3294_vm3, %v3378_v1, %v6873_v2 }
 0x39f   :  { %v3611_v10 = vand.u32 8388607, %v3604_v40  ;;  %v4265_v4 = vpop.eup %4264  ;;  %v1728_v6 = vxor.u32 2147483648, %v4263_v39  ;;  %v3364_v63 = vsub.s32 32, %v3363_v5  ;;  %v3368_v42 = vsub.s32 4294967266, %v3363_v5 }
 0x3a0   :  { %v1995_v35 = vmul.u32 %v1988_v37, %v1979_v62  ;;  %v1725_v11 = vxor.u32 2147483648, %v4265_v4  ;;  %v3365_v13 = vshll.u32 %v6888_v0, %v3363_v5  ;;  %vm1997_vm14 = vc.u32 %v6916_v45, %v6910_v9 }
 0x3a1   :  { %v1998_v51 = vadd.s32 1, %v6911_v3  ;;  %v1729_v26 = vsel %vm1727_vm12, %v1728_v6, %v4265_v4  ;;  %v3366_v2 = vshrl.u32 %v3348_v49, %v3364_v63  ;;  %v3369_v59 = vadd.s32 127, %v3368_v42 }
 0x3a2   :  { %vm3615_vm15 = vcmp.gt.s32.totalorder %v3614_v18, 0  ;;  %v1726_v41 = vsel %vm1724_vm11, %v4263_v39, %v1725_v11  ;;  %v3381_v24 = vsel %vm6902_vm7, 0, %v3379_v43  ;;  %v3612_v30 = vor.u32 8388608, %v3611_v10 }
 0x3a3   :  { %v1999_v58 = vsel %vm1997_vm14, %v1998_v51, %v6911_v3  ;;  %v3616_v0 = vsel %vm3615_vm15, %v3614_v18, 0  ;;  %v1730_v29 = vsel %vm1723_vm9, %v1726_v41, %v1729_v26  ;;  %v3367_v33 = vor.u32 %v3366_v2, %v3365_v13 }
 0x3a4   :  { %v3370_v17 = vshll.u32 %v3369_v59, 23  ;;  %v2000_v53 = vadd.s32 %v1999_v58, %v1995_v35  ;;  %v1731_v36 = vsel %vm1720_vm10, nan, %v1730_v29  ;;  %v3618_v12 = vand.u32 31, %v3616_v0 }
 0x3a5   :  { %3720 = vst [vmem:[#allocation2 + $0x60] sm:$0xff] %v1731_v36  ;;  %v3385_v22 = vadd.s32 3, %v3381_v24  ;;  %v3374_v37 = vcvt.s32.f32 %v3367_v33  ;;  %v1839_v27 = vand.u32 2139095040, %v6861_v31  ;;  %v3617_v8 = vshrl.u32 %v3616_v0, 5 }
 0x3a6   :  { %v3371_v56 = vor.u32 4788187, %v3370_v17  ;;  %v2001_v54 = vadd.s32 536870912, %v2000_v53  ;;  %v3619_v48 = vsub.s32 32, %v3618_v12  ;;  %v3627_v60 = vshll.u32 %v4317_v21, %v3618_v12 }
 0x3a7   :  { %v3621_v55 = vshll.u32 %v4315_v15, %v3618_v12  ;;  %v3624_v3 = vshll.u32 %v4316_v19, %v3618_v12  ;;  %v3630_v62 = vshll.u32 %v4318_v23, %v3618_v12  ;;  %v6955_v39 = vand.u32 3, %v3385_v22 }
 0x3a8   :  { %v3372_v16 = vand.u32 2147483647, %v3371_v56  ;;  %v6942_v44 = vshrl.u32 %v2001_v54, 30  ;;  %v3622_v28 = vshrl.u32 %v4316_v19, %v3619_v48  ;;  %v3625_v1 = vshrl.u32 %v4317_v21, %v3619_v48 }
 0x3a9   :  { %v3628_v46 = vshrl.u32 %v4318_v23, %v3619_v48  ;;  %v3631_v38 = vshrl.u32 %v4319_v25, %v3619_v48  ;;  %v3634_v47 = vshrl.u32 %v4320_v32, %v3619_v48  ;;  %v3633_v6 = vshll.u32 %v4319_v25, %v3618_v12 }
 0x3aa   :  { %v3375_v14 = vmul.f32 %v3374_v37, %v3372_v16  ;;  %v2003_v7 = vshll.u32 %v6942_v44, 30  ;;  %v3623_v43 = vor.u32 %v3622_v28, %v3621_v55  ;;  %v3626_v10 = vor.u32 %v3625_v1, %v3624_v3 }
 0x3ab   :  { %v3629_v5 = vor.u32 %v3628_v46, %v3627_v60  ;;  %v3632_v4 = vor.u32 %v3631_v38, %v3630_v62  ;;  %v3652_v35 = vshll.u32 %v3612_v30, 8  ;;  %v1840_v11 = vshrl.u32 %v1839_v27, 23 }
 0x3ac   :  { %v3376_v18 = vxor.u32 2147483648, %v3375_v14  ;;  %v6957_v49 = vsub.s32 %v2000_v53, %v2003_v7  ;;  %v3620_v51 = vshrl.u32 %v4315_v15, %v3619_v48  ;;  %v3635_v26 = vor.u32 %v3634_v47, %v3633_v6 }
 0x3ad   :  { %vm3639_vm0 = vcmp.lt.s32.totalorder %v3617_v8, 4  ;;  %vm3636_vm1 = vcmp.lt.s32.totalorder %v3617_v8, 1  ;;  %vm3638_vm2 = vcmp.lt.s32.totalorder %v3617_v8, 3  ;;  %v3845_v53 = vadd.s32 4294967169, %v1840_v11 }
 0x3ae   :  { %v3377_v63 = vsel %vm3294_vm3, %v3376_v18, %v3375_v14  ;;  %v2006_v42 = vsub.s32 0, %v6957_v49  ;;  %v3641_v59 = vsel %vm3639_vm0, %v3629_v5, 2102212464  ;;  %v3644_v41 = vsel %vm3636_vm1, %v3623_v43, %v3626_v10 }
 0x3af   :  { %v3380_v13 = vsel %vm6902_vm7, %v6693_v52, %v3377_v63  ;;  %v3645_v24 = vsel %vm3639_vm0, %v3632_v4, 920167782  ;;  %v3640_v0 = vsel %vm3636_vm1, %v3620_v51, %v3623_v43  ;;  %v3642_v29 = vsel %vm3638_vm2, %v3626_v10, %v3641_v59 }
 0x3b0   :  { %4266 = vcosq.f32 %v3380_v13  ;;  %v3850_v2 = vmin.u32 %v2006_v42, %v6957_v49  ;;  %v3648_v33 = vsel %vm3636_vm1, %v3626_v10, %v3629_v5  ;;  %vm3637_vm3 = vcmp.lt.s32.totalorder %v3617_v8, 2 }
 0x3b1   :  { %4268 = vsinq.f32 %v3380_v13  ;;  %v3646_v61 = vsel %vm3638_vm2, %v3629_v5, %v3645_v24  ;;  %v3649_v17 = vsel %vm3639_vm0, %v3635_v26, 1326507024  ;;  %v1836_v54 = vand.u32 2147483647, %v6861_v31 }
 0x3b2   :  { %v2008_v58 = vclz %v3850_v2  ;;  %v3647_v12 = vsel %vm3637_vm3, %v3644_v41, %v3646_v61  ;;  %v3650_v56 = vsel %vm3638_vm2, %v3632_v4, %v3649_v17  ;;  %v3643_v22 = vsel %vm3637_vm3, %v3640_v0, %v3642_v29 }
 0x3b3   :  { %v3651_v30 = vsel %vm3637_vm3, %v3648_v33, %v3650_v56  ;;  %v6969_v48 = vmul.u32.u64.low %v3652_v35, %v3647_v12  ;;  %v6970_v16 = vmul.u32.u64.high %v3652_v35, %v3647_v12, %v6969_v48  ;;  %v1846_v28 = vadd.s32 1, %v3845_v53 }
 0x3b4   :  { %v3851_v36 = vadd.s32 4294967294, %v2008_v58  ;;  %v6973_v37 = vmul.u32.u64.low %v3652_v35, %v3651_v30  ;;  %v6974_v27 = vmul.u32.u64.high %v3652_v35, %v3651_v30, %v6973_v37  ;;  %vm3391_vm5 = vcmp.eq.s32.totalorder %v6955_v39, 2 }
 0x3b5   :  { %vm1942_vm6 = vcmp.lt.s32.totalorder %v6793_v34, 0  ;;  %v2026_v1 = vsub.s32 4, %v6942_v44  ;;  %v1996_v46 = vadd.s32 %v6910_v9, %v6916_v45  ;;  %vm1847_vm7 = vcmp.gt.s32.totalorder %v1846_v28, 0 }
 0x3b6   :  { %vm3852_vm4 = vcmp.lt.s32.totalorder %v3851_v36, 0  ;;  %v3659_v60 = vmul.u32 %v3652_v35, %v3643_v22  ;;  %v3662_v38 = vadd.s32 1, %v6970_v16  ;;  %v1843_v55 = vand.u32 8388607, %v1836_v54 }
 0x3b7   :  { %v2011_v8 = vsel %vm3852_vm4, 0, %v3851_v36  ;;  %v1848_v3 = vsel %vm1847_vm7, %v1846_v28, 0  ;;  %vm3661_vm8 = vc.u32 %v6974_v27, %v6969_v48  ;;  %v2027_v45 = vsel %vm1942_vm6, %v2026_v1, %v6942_v44 }
 0x3b8   :  { %v2012_v14 = vsub.s32 32, %v2011_v8  ;;  %v2016_v7 = vsub.s32 4294967266, %v2011_v8  ;;  %v2013_v47 = vshll.u32 %v6957_v49, %v2011_v8  ;;  %v3663_v10 = vsel %vm3661_vm8, %v3662_v38, %v6970_v16  ;;  %v4290_v8 = vld [vmem:[%s7133_s2] ss:$0 sm:$0xff]  ;;  %s4321_s2 = smov [#allocation2]  }
 0x3b9   :  { %v1850_v4 = vand.u32 31, %v1848_v3  ;;  %v3664_v35 = vadd.s32 %v3663_v10, %v3659_v60  ;;  %vm3388_vm10 = vcmp.eq.s32.totalorder %v6955_v39, 0  ;;  %vm6996_vm9 = vcmp.le.f32.partialorder %v1940_v57, 0.7853982  ;;  %s3745_s11 = sshll.u32 %s4321_s2, 4  ;;  %s3746_s11 = int_to_ptr.vmem [resolvable:$true] %s3745_s11 }
 0x3ba   :  { %v4267_v62 = vpop.eup %4266  ;;  %v2014_v18 = vshrl.u32 %v1996_v46, %v2012_v14  ;;  %v2017_v5 = vadd.s32 127, %v2016_v7  ;;  %vm3387_vm11 = vcmp.lt.s32.totalorder %v6955_v39, 2  ;;  %vm3384_vm12 = vweird.f32 %v6693_v52  ;;  %s4291_s12 = scalar_lea.vmem %s3746_s11, 4096  ;;  %p4296_p1 = scmp.lt.s32.totalorder %s3746_s11, %s3746_s11 }
 0x3bb   :  { %v4269_v43 = vpop.eup %4268  ;;  %v3392_v9 = vxor.u32 2147483648, %v4267_v62  ;;  %v1851_v13 = vsub.s32 32, %v1850_v4  ;;  %v3665_v26 = vadd.s32 536870912, %v3664_v35  ;;  %v2029_v59 = vsel %vm6996_vm9, 0, %v2027_v45  ;;  %p4292_p0 = scmp.ne.s32.totalorder %s3746_s11, %s4291_s12  ;;  %p4297_p2 = scmp.lt.s32.totalorder %s4291_s12, %s4291_s12 }
 0x3bc   :  { %v3389_v6 = vxor.u32 2147483648, %v4269_v43  ;;  %v2015_v63 = vor.u32 %v2014_v18, %v2013_v47  ;;  %v2018_v42 = vshll.u32 %v2017_v5, 23  ;;  %v1844_v41 = vor.u32 8388608, %v1843_v55 }
 0x3bd   :  { %v3393_v49 = vsel %vm3391_vm5, %v3392_v9, %v4269_v43  ;;  %v7004_v57 = vshrl.u32 %v3665_v26, 30  ;;  %v1849_v29 = vshrl.u32 %v1848_v3, 5  ;;  %v1854_v33 = vshrl.u32 %v4316_v19, %v1851_v13  ;;  %p4298_p3 = por %p4297_p2, %p4296_p1 }
 0x3be   :  { %v3390_v44 = vsel %vm3388_vm10, %v4267_v62, %v3389_v6  ;;  %v2019_v51 = vor.u32 4788187, %v2018_v42  ;;  %v2022_v0 = vcvt.s32.f32 %v2015_v63  ;;  %v1857_v39 = vshrl.u32 %v4317_v21, %v1851_v13 }
 0x3bf   :  { %v3394_v2 = vsel %vm3387_vm11, %v3390_v44, %v3393_v49  ;;  %v1860_v61 = vshrl.u32 %v4318_v23, %v1851_v13  ;;  %v3667_v52 = vshll.u32 %v7004_v57, 30  ;;  %v1859_v53 = vshll.u32 %v4317_v21, %v1850_v4  ;;  %p4299_p4 = pnand %p4298_p3, %p4292_p0 }
 0x3c0   :  { %v3395_v24 = vsel %vm3384_vm12, nan, %v3394_v2  ;;  %v2020_v58 = vand.u32 2147483647, %v2019_v51  ;;  %v1863_v36 = vshrl.u32 %v4319_v25, %v1851_v13  ;;  %v1853_v12 = vshll.u32 %v4315_v15, %v1850_v4 }
 0x3c1   :  { %3736 = vst [vmem:[#allocation2 + $0xe0] sm:$0xff] %v3395_v24  ;;  %v1856_v56 = vshll.u32 %v4316_v19, %v1850_v4  ;;  %v1862_v22 = vshll.u32 %v4318_v23, %v1850_v4  ;;  %v1866_v30 = vshrl.u32 %v4320_v32, %v1851_v13  ;;  %v7016_v37 = vsub.s32 %v3664_v35, %v3667_v52 }
 0x3c2   :  { %v2023_v17 = vmul.f32 %v2022_v0, %v2020_v58  ;;  %v1861_v28 = vor.u32 %v1860_v61, %v1859_v53  ;;  %v7022_v1 = vadd.f32 %v4290_v8, %v6574_v50  ;;  %v1855_v46 = vor.u32 %v1854_v33, %v1853_v12 }
 0x3c3   :  { %v1858_v14 = vor.u32 %v1857_v39, %v1856_v56  ;;  %v1864_v7 = vor.u32 %v1863_v36, %v1862_v22  ;;  %v1865_v60 = vshll.u32 %v4319_v25, %v1850_v4  ;;  %v2033_v55 = vadd.s32 3, %v2029_v59 }
 0x3c4   :  { %v2024_v16 = vxor.u32 2147483648, %v2023_v17  ;;  %v3670_v3 = vsub.s32 0, %v7016_v37  ;;  %v1884_v62 = vshll.u32 %v1844_v41, 8  ;;  %v1852_v18 = vshrl.u32 %v4315_v15, %v1851_v13 }
 0x3c5   :  { %v1867_v50 = vor.u32 %v1866_v30, %v1865_v60  ;;  %vm1871_vm13 = vcmp.lt.s32.totalorder %v1849_v29, 4  ;;  %vm1868_vm14 = vcmp.lt.s32.totalorder %v1849_v29, 1  ;;  %vm1869_vm15 = vcmp.lt.s32.totalorder %v1849_v29, 2 }
 0x3c6   :  { %v2025_v38 = vsel %vm1942_vm6, %v2024_v16, %v2023_v17  ;;  %v3914_v5 = vmin.u32 %v3670_v3, %v7016_v37  ;;  %v1873_v43 = vsel %vm1871_vm13, %v1861_v28, 2102212464  ;;  %v1876_v9 = vsel %vm1868_vm14, %v1855_v46, %v1858_v14 }
 0x3c7   :  { %v2028_v47 = vsel %vm6996_vm9, %v6793_v34, %v2025_v38  ;;  %v1877_v45 = vsel %vm1871_vm13, %v1864_v7, 920167782  ;;  %vm1870_vm0 = vcmp.lt.s32.totalorder %v1849_v29, 3  ;;  %v1872_v4 = vsel %vm1868_vm14, %v1852_v18, %v1855_v46 }
 0x3c8   :  { %4270 = vcosq.f32 %v2028_v47  ;;  %v3672_v10 = vclz %v3914_v5  ;;  %v1880_v6 = vsel %vm1868_vm14, %v1858_v14, %v1861_v28  ;;  %v1874_v63 = vsel %vm1870_vm0, %v1858_v14, %v1873_v43 }
 0x3c9   :  { %4272 = vsinq.f32 %v2028_v47  ;;  %v1878_v42 = vsel %vm1870_vm0, %v1861_v28, %v1877_v45  ;;  %v1881_v35 = vsel %vm1871_vm13, %v1867_v50, 1326507024  ;;  %v3503_v49 = vand.u32 2139095040, %v7022_v1 }
 0x3ca   :  { %v2034_v11 = vand.u32 3, %v2033_v55  ;;  %v3915_v13 = vadd.s32 4294967294, %v3672_v10  ;;  %v1879_v44 = vsel %vm1869_vm15, %v1876_v9, %v1878_v42  ;;  %v1882_v51 = vsel %vm1870_vm0, %v1864_v7, %v1881_v35 }
 0x3cb   :  { %v1883_v26 = vsel %vm1869_vm15, %v1880_v6, %v1882_v51  ;;  %v7036_v2 = vmul.u32.u64.low %v1884_v62, %v1879_v44  ;;  %v7037_v59 = vmul.u32.u64.high %v1884_v62, %v1879_v44, %v7036_v2  ;;  %v3504_v41 = vshrl.u32 %v3503_v49, 23 }
 0x3cc   :  { %vm3916_vm1 = vcmp.lt.s32.totalorder %v3915_v13, 0  ;;  %v1875_v24 = vsel %vm1869_vm15, %v1872_v4, %v1874_v63  ;;  %v7041_v58 = vmul.u32.u64.low %v1884_v62, %v1883_v26  ;;  %v7042_v0 = vmul.u32.u64.high %v1884_v62, %v1883_v26, %v7041_v58 }
 0x3cd   :  { %v3675_v33 = vsel %vm3916_vm1, 0, %v3915_v13  ;;  %v3909_v39 = vadd.s32 4294967169, %v3504_v41  ;;  %vm3606_vm2 = vcmp.lt.s32.totalorder %v6848_v20, 0  ;;  %v3660_v61 = vadd.s32 %v6969_v48, %v6974_v27 }
 0x3ce   :  { %v3676_v17 = vsub.s32 32, %v3675_v33  ;;  %v3680_v52 = vsub.s32 4294967266, %v3675_v33  ;;  %vm2039_vm3 = vcmp.eq.s32.totalorder %v2034_v11, 2  ;;  %v1891_v53 = vmul.u32 %v1884_v62, %v1875_v24 }
 0x3cf   :  { %v1894_v36 = vadd.s32 1, %v7037_v59  ;;  %v3510_v12 = vadd.s32 1, %v3909_v39  ;;  %v3677_v29 = vshll.u32 %v7016_v37, %v3675_v33  ;;  %vm1893_vm4 = vc.u32 %v7042_v0, %v7036_v2 }
 0x3d0   :  { %v3678_v22 = vshrl.u32 %v3660_v61, %v3676_v17  ;;  %v3681_v30 = vadd.s32 127, %v3680_v52  ;;  %v3690_v8 = vsub.s32 4, %v7004_v57  ;;  %vm2036_vm6 = vcmp.eq.s32.totalorder %v2034_v11, 0 }
 0x3d1   :  { %v1895_v48 = vsel %vm1893_vm4, %v1894_v36, %v7037_v59  ;;  %vm3511_vm5 = vcmp.gt.s32.totalorder %v3510_v12, 0  ;;  %v3500_v37 = vand.u32 2147483647, %v7022_v1  ;;  %vm2035_vm7 = vcmp.lt.s32.totalorder %v2034_v11, 2 }
 0x3d2   :  { %v4271_v56 = vpop.eup %4270  ;;  %v3679_v46 = vor.u32 %v3678_v22, %v3677_v29  ;;  %v3682_v14 = vshll.u32 %v3681_v30, 23  ;;  %v1896_v7 = vadd.s32 %v1895_v48, %v1891_v53  ;;  %v3512_v38 = vsel %vm3511_vm5, %v3510_v12, 0 }
 0x3d3   :  { %v4273_v16 = vpop.eup %4272  ;;  %v2040_v28 = vxor.u32 2147483648, %v4271_v56  ;;  %vm2032_vm8 = vweird.f32 %v6793_v34  ;;  %v3691_v18 = vsel %vm3606_vm2, %v3690_v8, %v7004_v57  ;;  %v3514_v50 = vand.u32 31, %v3512_v38 }
 0x3d4   :  { %v2037_v27 = vxor.u32 2147483648, %v4273_v16  ;;  %v3683_v3 = vor.u32 4788187, %v3682_v14  ;;  %v1897_v62 = vadd.s32 536870912, %v1896_v7  ;;  %v3686_v9 = vcvt.s32.f32 %v3679_v46 }
 0x3d5   :  { %v2041_v60 = vsel %vm2039_vm3, %v2040_v28, %v4273_v16  ;;  %vm7063_vm10 = vcmp.le.f32.partialorder %v3604_v40, 0.7853982  ;;  %v3507_v34 = vand.u32 8388607, %v3500_v37  ;;  %v3515_v4 = vsub.s32 32, %v3514_v50 }
 0x3d6   :  { %v2038_v55 = vsel %vm2036_vm6, %v4271_v56, %v2037_v27  ;;  %v3684_v43 = vand.u32 2147483647, %v3683_v3  ;;  %v7059_v45 = vshrl.u32 %v1897_v62, 30  ;;  %v3693_v57 = vsel %vm7063_vm10, 0, %v3691_v18 }
 0x3d7   :  { %v2042_v47 = vsel %vm2035_vm7, %v2038_v55, %v2041_v60  ;;  %v3517_v42 = vshll.u32 %v4315_v15, %v3514_v50  ;;  %v3518_v35 = vshrl.u32 %v4316_v19, %v3515_v4  ;;  %v3520_v49 = vshll.u32 %v4316_v19, %v3514_v50 }
 0x3d8   :  { %v2043_v5 = vsel %vm2032_vm8, nan, %v2042_v47  ;;  %v3687_v6 = vmul.f32 %v3686_v9, %v3684_v43  ;;  %v1899_v63 = vshll.u32 %v7059_v45, 30  ;;  %v3521_v40 = vshrl.u32 %v4317_v21, %v3515_v4 }
 0x3d9   :  { %3723 = vst [vmem:[#allocation2 + $0x78] sm:$0xff] %v2043_v5  ;;  %v3524_v11 = vshrl.u32 %v4318_v23, %v3515_v4  ;;  %v3523_v51 = vshll.u32 %v4317_v21, %v3514_v50  ;;  %v3527_v26 = vshrl.u32 %v4319_v25, %v3515_v4  ;;  %v3508_v59 = vor.u32 8388608, %v3507_v34 }
 0x3da   :  { %v3688_v13 = vxor.u32 2147483648, %v3687_v6  ;;  %v1900_v44 = vsub.s32 %v1896_v7, %v1899_v63  ;;  %v3513_v41 = vshrl.u32 %v3512_v38, 5  ;;  %v3519_v24 = vor.u32 %v3518_v35, %v3517_v42 }
 0x3db   :  { %v3526_v58 = vshll.u32 %v4318_v23, %v3514_v50  ;;  %v3522_v19 = vor.u32 %v3521_v40, %v3520_v49  ;;  %v3525_v61 = vor.u32 %v3524_v11, %v3523_v51  ;;  %v3529_v21 = vshll.u32 %v4319_v25, %v3514_v50 }
 0x3dc   :  { %v3689_v33 = vsel %vm3606_vm2, %v3688_v13, %v3687_v6  ;;  %v1902_v39 = vsub.s32 0, %v1900_v44  ;;  %v3530_v53 = vshrl.u32 %v4320_v32, %v3515_v4  ;;  %v3697_v12 = vadd.s32 3, %v3693_v57 }
 0x3dd   :  { %v3692_v17 = vsel %vm7063_vm10, %v6848_v20, %v3689_v33  ;;  %v3528_v52 = vor.u32 %v3527_v26, %v3526_v58  ;;  %v3548_v56 = vshll.u32 %v3508_v59, 8  ;;  %v3516_v22 = vshrl.u32 %v4315_v15, %v3515_v4 }
 0x3de   :  { %4274 = vcosq.f32 %v3692_v17  ;;  %v3846_v36 = vmin.u32 %v1902_v39, %v1900_v44  ;;  %v3531_v23 = vor.u32 %v3530_v53, %v3529_v21  ;;  %vm3532_vm9 = vcmp.lt.s32.totalorder %v3513_v41, 1 }
 0x3df   :  { %4276 = vsinq.f32 %v3692_v17  ;;  %vm3535_vm11 = vcmp.lt.s32.totalorder %v3513_v41, 4  ;;  %vm3534_vm12 = vcmp.lt.s32.totalorder %v3513_v41, 3  ;;  %v3540_v16 = vsel %vm3532_vm9, %v3519_v24, %v3522_v19 }
 0x3e0   :  { %v1904_v29 = vclz %v3846_v36  ;;  %v3537_v30 = vsel %vm3535_vm11, %v3525_v61, 2102212464  ;;  %v3541_v28 = vsel %vm3535_vm11, %v3528_v52, 920167782  ;;  %vm3533_vm13 = vcmp.lt.s32.totalorder %v3513_v41, 2 }
 0x3e1   :  { %v3542_v25 = vsel %vm3534_vm12, %v3525_v61, %v3541_v28  ;;  %v3544_v48 = vsel %vm3532_vm9, %v3522_v19, %v3525_v61  ;;  %v3536_v32 = vsel %vm3532_vm9, %v3516_v22, %v3519_v24  ;;  %v3538_v27 = vsel %vm3534_vm12, %v3522_v19, %v3537_v30 }
 0x3e2   :  { %v3847_v8 = vadd.s32 4294967294, %v1904_v29  ;;  %v3543_v46 = vsel %vm3533_vm13, %v3540_v16, %v3542_v25  ;;  %v3545_v14 = vsel %vm3535_vm11, %v3531_v23, 1326507024  ;;  %v3698_v3 = vand.u32 3, %v3697_v12 }
 0x3e3   :  { %v3546_v7 = vsel %vm3534_vm12, %v3528_v52, %v3545_v14  ;;  %v7089_v60 = vmul.u32.u64.low %v3548_v56, %v3543_v46  ;;  %v7090_v38 = vmul.u32.u64.high %v3548_v56, %v3543_v46, %v7089_v60  ;;  %v1892_v62 = vadd.s32 %v7036_v2, %v7042_v0 }
 0x3e4   :  { %vm3848_vm14 = vcmp.lt.s32.totalorder %v3847_v8, 0  ;;  %v3547_v55 = vsel %vm3533_vm13, %v3544_v48, %v3546_v7  ;;  %v3539_v50 = vsel %vm3533_vm13, %v3536_v32, %v3538_v27  ;;  %vm3703_vm15 = vcmp.eq.s32.totalorder %v3698_v3, 2 }
 0x3e5   :  { %v1907_v15 = vsel %vm3848_vm14, 0, %v3847_v8  ;;  %v7097_v5 = vmul.u32.u64.low %v3548_v56, %v3547_v55  ;;  %v7098_v43 = vmul.u32.u64.high %v3548_v56, %v3547_v55, %v7097_v5  ;;  %v3558_v6 = vadd.s32 1, %v7090_v38 }
 0x3e6   :  { %v1908_v47 = vsub.s32 32, %v1907_v15  ;;  %v1912_v18 = vsub.s32 4294967266, %v1907_v15  ;;  %v1909_v10 = vshll.u32 %v1900_v44, %v1907_v15  ;;  %vm3700_vm0 = vcmp.eq.s32.totalorder %v3698_v3, 0 }
 0x3e7   :  { %v3555_v0 = vmul.u32 %v3548_v56, %v3539_v50  ;;  %vm3557_vm1 = vc.u32 %v7098_v43, %v7089_v60  ;;  %vm3699_vm2 = vcmp.lt.s32.totalorder %v3698_v3, 2  ;;  %vm3696_vm3 = vweird.f32 %v6848_v20 }
 0x3e8   :  { %v4275_v9 = vpop.eup %4274  ;;  %v1910_v34 = vshrl.u32 %v1892_v62, %v1908_v47  ;;  %v1913_v4 = vadd.s32 127, %v1912_v18  ;;  %v3559_v13 = vsel %vm3557_vm1, %v3558_v6, %v7090_v38  ;;  %v1922_v33 = vsub.s32 4, %v7059_v45 }
 0x3e9   :  { %v4277_v57 = vpop.eup %4276  ;;  %v3704_v63 = vxor.u32 2147483648, %v4275_v9  ;;  %v3560_v51 = vadd.s32 %v3559_v13, %v3555_v0  ;;  %vm1838_vm4 = vcmp.lt.s32.totalorder %v6861_v31, 0  ;;  %vm1837_vm5 = vcmp.le.f32.partialorder %v1836_v54, 0.7853982 }
 0x3ea   :  { %v3701_v42 = vxor.u32 2147483648, %v4277_v57  ;;  %v1911_v35 = vor.u32 %v1910_v34, %v1909_v10  ;;  %v1914_v49 = vshll.u32 %v1913_v4, 23  ;;  %v1923_v20 = vsel %vm1838_vm4, %v1922_v33, %v7059_v45 }
 0x3eb   :  { %v3705_v2 = vsel %vm3703_vm15, %v3704_v63, %v4277_v57  ;;  %v3561_v24 = vadd.s32 536870912, %v3560_v51  ;;  %v1925_v53 = vsel %vm1837_vm5, 0, %v1923_v20  ;;  %v3556_v45 = vadd.s32 %v7089_v60, %v7098_v43 }
 0x3ec   :  { %v3702_v40 = vsel %vm3700_vm0, %v4275_v9, %v3701_v42  ;;  %v1915_v11 = vor.u32 4788187, %v1914_v49  ;;  %v1918_v41 = vcvt.s32.f32 %v1911_v35  ;;  %v1929_v23 = vadd.s32 3, %v1925_v53 }
 0x3ed   :  { %v3706_v44 = vsel %vm3699_vm2, %v3702_v40, %v3705_v2  ;;  %v3562_v39 = vshrl.u32 %v3561_v24, 30  ;;  %vm1928_vm9 = vweird.f32 %v6861_v31  ;;  %vm3502_vm11 = vcmp.lt.s32.totalorder %v7022_v1, 0 }
 0x3ee   :  { %v3707_v26 = vsel %vm3696_vm3, nan, %v3706_v44  ;;  %v1916_v59 = vand.u32 2147483647, %v1915_v11  ;;  %v1930_v22 = vand.u32 3, %v1929_v23  ;;  %vm3501_vm12 = vcmp.le.f32.partialorder %v3500_v37, 0.7853982 }
 0x3ef   :  { %3739 = vst [vmem:[#allocation2 + $0xf8] sm:$0xff] %v3707_v26  ;;  %v3563_v61 = vshll.u32 %v3562_v39, 30  ;;  %v3586_v50 = vsub.s32 4, %v3562_v39  ;;  %vm3592_vm0 = vweird.f32 %v7022_v1 }
 0x3f0   :  { %v1919_v58 = vmul.f32 %v1918_v41, %v1916_v59  ;;  %vm1932_vm7 = vcmp.eq.s32.totalorder %v1930_v22, 0  ;;  %vm1935_vm8 = vcmp.eq.s32.totalorder %v1930_v22, 2  ;;  %vm1931_vm10 = vcmp.lt.s32.totalorder %v1930_v22, 2 }
 0x3f1   :  { %v3564_v21 = vsub.s32 %v3560_v51, %v3563_v61  ;;  %v3587_v9 = vsel %vm3502_vm11, %v3586_v50, %v3562_v39 }
 0x3f2   :  { %v1920_v19 = vxor.u32 2147483648, %v1919_v58  ;;  %v3589_v10 = vsel %vm3501_vm12, 0, %v3587_v9 }
 0x3f3   :  { %v3566_v36 = vsub.s32 0, %v3564_v21  ;;  %v3593_v34 = vadd.s32 3, %v3589_v10 }
 0x3f4   :  { %v1921_v17 = vsel %vm1838_vm4, %v1920_v19, %v1919_v58 }
 0x3f5   :  { %v1924_v52 = vsel %vm1837_vm5, %v6861_v31, %v1921_v17  ;;  %v3910_v12 = vmin.u32 %v3566_v36, %v3564_v21  ;;  %v3594_v4 = vand.u32 3, %v3593_v34 }
 0x3f6   :  { %4278 = vcosq.f32 %v1924_v52 }
 0x3f7   :  { %4280 = vsinq.f32 %v1924_v52  ;;  %v3568_v56 = vclz %v3910_v12  ;;  %vm3599_vm13 = vcmp.eq.s32.totalorder %v3594_v4, 2  ;;  %vm3596_vm14 = vcmp.eq.s32.totalorder %v3594_v4, 0 }
 0x3f8   :  { %vm3595_vm15 = vcmp.lt.s32.totalorder %v3594_v4, 2 }
 0x3f9   :  { %v3911_v29 = vadd.s32 4294967294, %v3568_v56 }
 0x3fb   :  { %vm3912_vm6 = vcmp.lt.s32.totalorder %v3911_v29, 0 }
 0x3fc   :  { %v3571_v16 = vsel %vm3912_vm6, 0, %v3911_v29 }
 0x3fd   :  { %v3572_v8 = vsub.s32 32, %v3571_v16  ;;  %v3576_v25 = vsub.s32 4294967266, %v3571_v16  ;;  %v3573_v27 = vshll.u32 %v3564_v21, %v3571_v16 }
 0x3ff   :  { %v3574_v46 = vshrl.u32 %v3556_v45, %v3572_v8  ;;  %v3577_v14 = vadd.s32 127, %v3576_v25 }
 0x400   :  { %v4279_v30 = vpop.eup %4278 }
 0x401   :  { %v4281_v28 = vpop.eup %4280  ;;  %v1936_v54 = vxor.u32 2147483648, %v4279_v30  ;;  %v3575_v15 = vor.u32 %v3574_v46, %v3573_v27  ;;  %v3578_v55 = vshll.u32 %v3577_v14, 23 }
 0x402   :  { %v1933_v48 = vxor.u32 2147483648, %v4281_v28 }
 0x403   :  { %v1937_v32 = vsel %vm1935_vm8, %v1936_v54, %v4281_v28  ;;  %v3579_v62 = vor.u32 4788187, %v3578_v55  ;;  %v3582_v47 = vcvt.s32.f32 %v3575_v15 }
 0x404   :  { %v1934_v7 = vsel %vm1932_vm7, %v4279_v30, %v1933_v48 }
 0x405   :  { %v1938_v38 = vsel %vm1931_vm10, %v1934_v7, %v1937_v32  ;;  %v3580_v60 = vand.u32 2147483647, %v3579_v62 }
 0x406   :  { %v1939_v3 = vsel %vm1928_vm9, nan, %v1938_v38 }
 0x407   :  { %3722 = vst [vmem:[#allocation2 + $0x70] sm:$0xff] %v1939_v3  ;;  %v3583_v18 = vmul.f32 %v3582_v47, %v3580_v60 }
 0x409   :  { %v3584_v5 = vxor.u32 2147483648, %v3583_v18 }
 0x40b   :  { %v3585_v43 = vsel %vm3502_vm11, %v3584_v5, %v3583_v18 }
 0x40c   :  { %v3588_v31 = vsel %vm3501_vm12, %v7022_v1, %v3585_v43 }
 0x40d   :  { %4282 = vcosq.f32 %v3588_v31 }
 0x40e   :  { %4284 = vsinq.f32 %v3588_v31 }
 0x417   :  { %v4283_v6 = vpop.eup %4282 }
 0x418   :  { %v4285_v57 = vpop.eup %4284  ;;  %v3600_v63 = vxor.u32 2147483648, %v4283_v6 }
 0x419   :  { %v3597_v42 = vxor.u32 2147483648, %v4285_v57 }
 0x41a   :  { %v3601_v35 = vsel %vm3599_vm13, %v3600_v63, %v4285_v57 }
 0x41b   :  { %v3598_v37 = vsel %vm3596_vm14, %v4283_v6, %v3597_v42 }
 0x41c   :  { %v3602_v49 = vsel %vm3595_vm15, %v3598_v37, %v3601_v35 }
 0x41d   :  { %v3603_v2 = vsel %vm3592_vm0, nan, %v3602_v49 }
 0x41e   :  { %3738 = vst [vmem:[#allocation2 + $0xf0] sm:$0xff] %v3603_v2 }
 0x41f   :  { %4302 = shalt.err (!%p4299_p4)
}
 0x420   :  { %s4303_s15 = scalar_lea.hbm %s7134_s3, 4096 }
 0x421   :  { %p4304_p5 = scmp.ne.s32.totalorder %s7134_s3, %s4303_s15  ;;  %p4307_p6 = scmp.lt.u32.totalorder %s4303_s15, %s7134_s3 }
 0x423   :  { %p4309_p7 = pnand %p4307_p6, %p4304_p5 }
 0x425   :  { %4312 = shalt.err (!%p4309_p7)
}
 0x426   :  { %s4322_s20 = smov 128   ;;  %s4323_s21 = smov 8  }
 0x427   :  { %3751 = dma.vmem_to_hbm [thread:$0]  %s3746_s11, 4096, %s7134_s3, [#allocation3], %s4322_s20, %s4322_s20, %s4323_s21  }
 0x428   :  { %4313 = dma.done.wait [#allocation3], 4096  }
 0x429   :  { %4314 = vsyncadd [#allocation3], 4294963200 }
 0x42a   :  { %3755 = vsyncpa [#allocation3], 1 }

</bundles_post_ra>
